<compile_context>
chip_gen: v6e
topology: v6e:2x2x1
jax: 0.10.0
libtpu: 0.0.40
codegen_flags: <defaults>
</compile_context>

<pallas_src>
import functools
import math

import jax
import jax.numpy as jnp
from jax.experimental import pallas as pl
from jax.experimental.pallas import tpu as pltpu

LOG2 = math.log(2.0)
RBF_PAD = 128          # lane-padded RBF width; rcut is packed at lane index n_rbf


def shifted_softplus(x):
    return jax.nn.softplus(x) - LOG2


def _round_up(x, m):
    return ((x + m - 1) // m) * m


def _choose_edge_tile(n_pairs, n_atoms_pad, requested):
    # The double-buffered bf16 one-hot tiles ([Pt, N] and [N, Pt]) dominate VMEM; keep
    # them under ~24 MiB so the kernel fits the scoped-VMEM budget on v5e/v6e (128 MiB)
    # and v7x (64 MiB) alike.  Pt must be a multiple of 128 (lane tiling of onehot_i^T).
    budget = 24 * 1024 * 1024
    per_row = 2 * 2 * 2 * n_atoms_pad              # 2 one-hots x 2 buffers x bf16 bytes
    cap = max(128, (budget // per_row) // 128 * 128)
    p_need = _round_up(max(n_pairs, 1), 128)
    return max(128, min(_round_up(requested, 128), p_need, cap))


# ----------------------------------------------------------------------------
# Kernel 1: d^2 -> [GaussianRBF(d) | cosine cutoff(d) | zero pad]   (lane-dense bf16)
# ----------------------------------------------------------------------------
def rbf_cutoff_kernel(d2_ref, off_ref, out_ref, *, coeff, cutoff, n_rbf):
    d = jnp.sqrt(d2_ref[...])                                 # [Pt, 1]
    diff = d - off_ref[...]                                   # [Pt, RBF_PAD]
    g = jnp.exp(coeff * diff * diff)                          # GaussianRBF
    rc = jnp.where(d < cutoff,
                   0.5 * (jnp.cos(d * (jnp.pi / cutoff)) + 1.0),
                   0.0)                                       # CosineCutoff  [Pt, 1]
    lane = jax.lax.broadcasted_iota(jnp.int32, g.shape, 1)
    out = jnp.where(lane < n_rbf, g, jnp.where(lane == n_rbf, rc, 0.0))
    out_ref[...] = out.astype(jnp.bfloat16)


# ----------------------------------------------------------------------------
# Kernel 2: ALL SchNetInteraction blocks fused.
#   grid = (T, n_edge_tiles); T = interaction index (outer), edge tiles inner.
#   x (atom features) is the resident output block; xf / agg live in VMEM scratch.
# ----------------------------------------------------------------------------
def fused_interactions_kernel(
        x0_ref, fij_ref, oh_j_ref, oh_i_ref,
        w_in2f_ref, w_f1_ref, b_f1_ref, w_f2_ref, b_f2_ref,
        w_o1_ref, b_o1_ref, w_o2_ref, b_o2_ref,
        x_ref, xf_scr, agg_scr, *, n_rbf):
    t = pl.program_id(0)
    p = pl.program_id(1)

    # very first grid step: load the embedding into the resident state
    @pl.when(jnp.logical_and(t == 0, p == 0))
    def _():
        x_ref[...] = x0_ref[...]

    # per-interaction prologue: xf = in2f(x) (Dense, no bias), zero the aggregator
    @pl.when(p == 0)
    def _():
        xf = jnp.dot(x_ref[...].astype(jnp.bfloat16), w_in2f_ref[...],
                     preferred_element_type=jnp.float32)
        xf_scr[...] = xf.astype(jnp.bfloat16)
        agg_scr[...] = jnp.zeros_like(agg_scr)

    # --- per-edge-tile continuous-filter convolution ---
    fij = fij_ref[...]                                        # [Pt, RBF_PAD] bf16
    rcut = fij[:, n_rbf:n_rbf + 1].astype(jnp.float32)        # packed cutoff column
    h = shifted_softplus(
        jnp.dot(fij, w_f1_ref[...], preferred_element_type=jnp.float32) + b_f1_ref[...])
    w_ij = (jnp.dot(h.astype(jnp.bfloat16), w_f2_ref[...],
                    preferred_element_type=jnp.float32) + b_f2_ref[...]) * rcut  # [Pt, F]

    # gather x_j = xf[idx_j] via precomputed one-hot (bf16, MXU)
    x_j = jnp.dot(oh_j_ref[...], xf_scr[...], preferred_element_type=jnp.float32)  # [Pt, F]
    x_ij = (x_j * w_ij).astype(jnp.bfloat16)
    # scatter_add over idx_i via precomputed one-hot^T (bf16, MXU), f32 accumulation
    agg_scr[...] += jnp.dot(oh_i_ref[...], x_ij, preferred_element_type=jnp.float32)

    # per-interaction epilogue: f2out + residual, only after the last edge tile
    @pl.when(p == pl.num_programs(1) - 1)
    def _():
        v = shifted_softplus(
            jnp.dot(agg_scr[...].astype(jnp.bfloat16), w_o1_ref[...],
                    preferred_element_type=jnp.float32) + b_o1_ref[...])
        v = jnp.dot(v.astype(jnp.bfloat16), w_o2_ref[...],
                    preferred_element_type=jnp.float32) + b_o2_ref[...]
        x_ref[...] = x_ref[...] + v                           # x = x + v


# ----------------------------------------------------------------------------
# Python wrapper
# ----------------------------------------------------------------------------
def schnet_forward(atomic_numbers, r_ij, idx_i, idx_j, params, *,
                   cutoff, coeff, edge_tile=1024):
    emb = params["embedding"].astype(jnp.float32)
    offsets = params["rbf_offsets"].astype(jnp.float32)       # [1, n_rbf]
    blocks = params["interactions"]

    n_atoms = atomic_numbers.shape[0]
    n_pairs = r_ij.shape[0]
    n_rbf = offsets.shape[-1]
    A = emb.shape[-1]
    F = blocks[0]["w_in2f"].shape[-1]
    T = len(blocks)
    assert n_rbf + 1 <= RBF_PAD, "n_rbf must be < 128 to pack rcut into the RBF lanes"

    N_pad = _round_up(max(n_atoms, 1), 128)                   # lane-dense one-hots
    Pt = _choose_edge_tile(n_pairs, N_pad, edge_tile)
    P_pad = _round_up(max(n_pairs, 1), Pt)
    n_tiles = P_pad // Pt
    pad_e = P_pad - n_pairs

    # ---- XLA glue: embedding lookup, |r|^2, one-hot gather/scatter matrices ----
    # TODO(synk): nn.Embedding gather + neighbor-list preprocessing (d^2, one-hots) stay
    # as tiny XLA ops in the wrapper; the dict-based SchNet forward interface is dropped.
    x0 = jnp.take(emb, atomic_numbers, axis=0)                 # padding_idx=0 -> zero row
    x0 = jnp.pad(x0, ((0, N_pad - n_atoms), (0, 0)))

    d2 = jnp.sum(r_ij.astype(jnp.float32) ** 2, axis=1)
    d2 = jnp.pad(d2, (0, pad_e), constant_values=4.0 * cutoff * cutoff)  # padded -> rcut=0
    d2 = d2.reshape(P_pad, 1)

    idx_i_p = jnp.pad(idx_i.astype(jnp.int32), (0, pad_e), constant_values=-1)
    idx_j_p = jnp.pad(idx_j.astype(jnp.int32), (0, pad_e), constant_values=-1)
    atom_ids = jnp.arange(N_pad, dtype=jnp.int32)
    onehot_j = (idx_j_p[:, None] == atom_ids[None, :]).astype(jnp.bfloat16)     # [P_pad, N_pad]
    onehot_i_t = (idx_i_p[None, :] == atom_ids[:, None]).astype(jnp.bfloat16)   # [N_pad, P_pad]

    offsets_pad = jnp.pad(offsets, ((0, 0), (0, RBF_PAD - n_rbf)))

    # ---- Kernel 1: per-edge RBF + cutoff, packed lane-dense ----
    fij_rc = pl.pallas_call(
        functools.partial(rbf_cutoff_kernel, coeff=coeff, cutoff=cutoff, n_rbf=n_rbf),
        out_shape=jax.ShapeDtypeStruct((P_pad, RBF_PAD), jnp.bfloat16),
        grid=(n_tiles,),
        in_specs=[pl.BlockSpec((Pt, 1), lambda p: (p, 0)),
                  pl.BlockSpec((1, RBF_PAD), lambda p: (0, 0))],
        out_specs=pl.BlockSpec((Pt, RBF_PAD), lambda p: (p, 0)),
        compiler_params=pltpu.CompilerParams(dimension_semantics=("arbitrary",)),
    )(d2, offsets_pad)

    # ---- stacked per-interaction weights (leading T axis indexed by grid axis 0) ----
    def stack(name, dtype=jnp.bfloat16):
        return jnp.stack([b[name] for b in blocks]).astype(dtype)

    w_f1 = jnp.stack([b["w_f1"] for b in blocks])              # [T, n_rbf, F]
    w_f1 = jnp.pad(w_f1, ((0, 0), (0, RBF_PAD - n_rbf), (0, 0))).astype(jnp.bfloat16)

    wmap = lambda t, p: (t, 0, 0)
    in_specs = [
        pl.BlockSpec((N_pad, A), lambda t, p: (0, 0)),         # x0 (DMA'd once)
        pl.BlockSpec((Pt, RBF_PAD), lambda t, p: (p, 0)),      # f_ij | rcut
        pl.BlockSpec((Pt, N_pad), lambda t, p: (p, 0)),        # onehot_j
        pl.BlockSpec((N_pad, Pt), lambda t, p: (0, p)),        # onehot_i^T
        pl.BlockSpec((None, A, F), wmap),                      # w_in2f
        pl.BlockSpec((None, RBF_PAD, F), wmap),                # w_f1 (RBF-padded)
        pl.BlockSpec((None, 1, F), wmap),                      # b_f1
        pl.BlockSpec((None, F, F), wmap),                      # w_f2
        pl.BlockSpec((None, 1, F), wmap),                      # b_f2
        pl.BlockSpec((None, F, A), wmap),                      # w_o1
        pl.BlockSpec((None, 1, A), wmap),                      # b_o1
        pl.BlockSpec((None, A, A), wmap),                      # w_o2
        pl.BlockSpec((None, 1, A), wmap),                      # b_o2
    ]

    x_out = pl.pallas_call(
        functools.partial(fused_interactions_kernel, n_rbf=n_rbf),
        out_shape=jax.ShapeDtypeStruct((N_pad, A), jnp.float32),
        grid=(T, n_tiles),
        in_specs=in_specs,
        out_specs=pl.BlockSpec((N_pad, A), lambda t, p: (0, 0)),   # resident accumulator
        scratch_shapes=[pltpu.VMEM((N_pad, F), jnp.bfloat16),      # xf = in2f(x)
                        pltpu.VMEM((N_pad, F), jnp.float32)],      # scatter-add acc
        input_output_aliases={0: 0},                               # x updated in place
        compiler_params=pltpu.CompilerParams(
            dimension_semantics=("arbitrary", "arbitrary"),
            vmem_limit_bytes=48 * 1024 * 1024),
    )(x0, fij_rc, onehot_j, onehot_i_t,
      stack("w_in2f"), w_f1, stack("b_f1", jnp.float32),
      stack("w_f2"), stack("b_f2", jnp.float32),
      stack("w_o1"), stack("b_o1", jnp.float32),
      stack("w_o2"), stack("b_o2", jnp.float32))

    return x_out[:n_atoms]                                     # 'scalar_representation'


# ----------------------------------------------------------------------------
# Deterministic parameter init (mirrors module __init__ shapes)
# ----------------------------------------------------------------------------
def init_params(key, *, max_z, n_atom_basis, n_filters, n_rbf, n_interactions, cutoff):
    keys = jax.random.split(key, 2 + n_interactions)
    emb = jax.random.normal(keys[0], (max_z, n_atom_basis), jnp.float32) * 0.1
    emb = emb.at[0].set(0.0)  # padding_idx=0
    offsets = jnp.linspace(0.0, cutoff, n_rbf, dtype=jnp.float32).reshape(1, n_rbf)

    def dense_w(k, fan_in, fan_out):
        return jax.random.normal(k, (fan_in, fan_out), jnp.float32) / jnp.sqrt(float(fan_in))

    blocks = []
    for t in range(n_interactions):
        ks = jax.random.split(keys[2 + t], 9)
        blocks.append(dict(
            w_in2f=dense_w(ks[0], n_atom_basis, n_filters),
            w_f1=dense_w(ks[1], n_rbf, n_filters),
            b_f1=jax.random.normal(ks[2], (1, n_filters), jnp.float32) * 0.01,
            w_f2=dense_w(ks[3], n_filters, n_filters),
            b_f2=jax.random.normal(ks[4], (1, n_filters), jnp.float32) * 0.01,
            w_o1=dense_w(ks[5], n_filters, n_atom_basis),
            b_o1=jax.random.normal(ks[6], (1, n_atom_basis), jnp.float32) * 0.01,
            w_o2=dense_w(ks[7], n_atom_basis, n_atom_basis),
            b_o2=jax.random.normal(ks[8], (1, n_atom_basis), jnp.float32) * 0.01,
        ))
    return dict(embedding=emb, rbf_offsets=offsets, interactions=blocks)


# ----------------------------------------------------------------------------
# Pure-JAX f32 reference (matches the PyTorch forward semantics)
# ----------------------------------------------------------------------------
def schnet_ref(atomic_numbers, r_ij, idx_i, idx_j, params, *, cutoff, coeff):
    x = params["embedding"][atomic_numbers]
    d = jnp.linalg.norm(r_ij, axis=1)
    f_ij = jnp.exp(coeff * (d[:, None] - params["rbf_offsets"][0][None, :]) ** 2)
    rcut = jnp.where(d < cutoff, 0.5 * (jnp.cos(d * jnp.pi / cutoff) + 1.0), 0.0)
    for blk in params["interactions"]:
        xf = x @ blk["w_in2f"]
        h = shifted_softplus(f_ij @ blk["w_f1"] + blk["b_f1"])
        w_ij = (h @ blk["w_f2"] + blk["b_f2"]) * rcut[:, None]
        x_ij = xf[idx_j] * w_ij
        agg = jax.ops.segment_sum(x_ij, idx_i, num_segments=x.shape[0])
        v = shifted_softplus(agg @ blk["w_o1"] + blk["b_o1"]) @ blk["w_o2"] + blk["b_o2"]
        x = x + v
    return x


if __name__ == "__main__":
    # small SchNet config
    n_atom_basis = 32
    n_filters = 32
    n_rbf = 16
    n_interactions = 3
    max_z = 100
    cutoff = 5.0
    width = cutoff / (n_rbf - 1)          # GaussianRBF width = offset spacing
    coeff = -0.5 / (width * width)

    key = jax.random.PRNGKey(0)
    k_param, k_z, k_pos = jax.random.split(key, 3)
    params = init_params(k_param, max_z=max_z, n_atom_basis=n_atom_basis,
                         n_filters=n_filters, n_rbf=n_rbf,
                         n_interactions=n_interactions, cutoff=cutoff)

    # inputs: N atoms, full i != j neighbor list  (P = 20*19 = 380 edges ->
    # padded to 512 with edge_tile=128 so the edge-tiling/accumulation path is exercised)
    n_atoms = 20
    atomic_numbers = jax.random.randint(k_z, (n_atoms,), 1, 10, dtype=jnp.int32)
    pos = jax.random.normal(k_pos, (n_atoms, 3), jnp.float32) * 1.5
    ii, jj = jnp.meshgrid(jnp.arange(n_atoms), jnp.arange(n_atoms), indexing="ij")
    mask = (ii != jj).reshape(-1)
    idx_i = ii.reshape(-1)[mask].astype(jnp.int32)            # [P]
    idx_j = jj.reshape(-1)[mask].astype(jnp.int32)
    r_ij = pos[idx_j] - pos[idx_i]                            # [P, 3]

    fwd = jax.jit(functools.partial(schnet_forward, cutoff=cutoff, coeff=coeff,
                                    edge_tile=128))
    out = fwd(atomic_numbers, r_ij, idx_i, idx_j, params)
    out = jax.block_until_ready(out)

    ref = schnet_ref(atomic_numbers, r_ij, idx_i, idx_j, params,
                     cutoff=cutoff, coeff=coeff)
    assert out.shape == (n_atoms, n_atom_basis)
    max_err = float(jnp.max(jnp.abs(out - ref)))
    # bf16 MXU operands with f32 accumulation -> compare against the f32 reference
    # with a bf16-appropriate tolerance.
    assert jnp.allclose(out, ref, rtol=5e-2, atol=5e-2), \
        f"mismatch vs JAX reference (max abs err {max_err})"

    print("KERNEL_OK")
</pallas_src>

<mosaic_0001>
module attributes {stable_mosaic.version = 11 : i64} {
  func.func @rbf_cutoff_kernel(%arg0: i32, %arg1: memref<128x1xf32, #tpu.memory_space<vmem>>, %arg2: memref<1x128xf32, #tpu.memory_space<vmem>>, %arg3: memref<128x128xbf16, #tpu.memory_space<vmem>>) attributes {dimension_semantics = [#tpu.dimension_semantics<arbitrary>], iteration_bounds = array<i64: 3>, scalar_prefetch = 0 : i64, scratch_operands = 0 : i64, tpu.core_type = #tpu.core_type<tc>, window_params = [{transform_indices = @transform_0, window_bounds = array<i64: 128, 1>}, {pipeline_mode = #tpu.pipeline_mode<synchronous>, transform_indices = @transform_1, window_bounds = array<i64: 1, 128>}, {transform_indices = @transform_2, window_bounds = array<i64: 128, 128>}]} {
    %c0 = arith.constant 0 : index
    %c0_0 = arith.constant 0 : index
    %0 = vector.load %arg1[%c0, %c0_0] : memref<128x1xf32, #tpu.memory_space<vmem>>, vector<128x1xf32>
    %1 = math.sqrt %0 : vector<128x1xf32>
    %c0_1 = arith.constant 0 : index
    %c0_2 = arith.constant 0 : index
    %2 = vector.load %arg2[%c0_1, %c0_2] : memref<1x128xf32, #tpu.memory_space<vmem>>, vector<1x128xf32>
    %3 = vector.broadcast %1 : vector<128x1xf32> to vector<128x128xf32>
    %4 = vector.broadcast %2 : vector<1x128xf32> to vector<128x128xf32>
    %5 = arith.subf %3, %4 : vector<128x128xf32>
    %cst = arith.constant -4.500000e+00 : f32
    %6 = vector.broadcast %cst : f32 to vector<128x128xf32>
    %7 = arith.mulf %6, %5 : vector<128x128xf32>
    %8 = arith.mulf %7, %5 : vector<128x128xf32>
    %9 = math.exp %8 : vector<128x128xf32>
    %cst_3 = arith.constant 5.000000e+00 : f32
    %10 = vector.broadcast %cst_3 : f32 to vector<128x1xf32>
    %11 = arith.cmpf olt, %1, %10 : vector<128x1xf32>
    %cst_4 = arith.constant 0.628318548 : f32
    %12 = vector.broadcast %cst_4 : f32 to vector<128x1xf32>
    %13 = arith.mulf %1, %12 : vector<128x1xf32>
    %14 = math.cos %13 : vector<128x1xf32>
    %cst_5 = arith.constant 1.000000e+00 : f32
    %15 = vector.broadcast %cst_5 : f32 to vector<128x1xf32>
    %16 = arith.addf %14, %15 : vector<128x1xf32>
    %cst_6 = arith.constant 5.000000e-01 : f32
    %17 = vector.broadcast %cst_6 : f32 to vector<128x1xf32>
    %18 = arith.mulf %17, %16 : vector<128x1xf32>
    %cst_7 = arith.constant 0.000000e+00 : f32
    %19 = vector.broadcast %cst_7 : f32 to vector<128x1xf32>
    %20 = arith.select %11, %18, %19 : vector<128x1xi1>, vector<128x1xf32>
    %21 = tpu.iota {dimensions = array<i32: 1>} : vector<128x128xi32>
    %c16_i32 = arith.constant 16 : i32
    %22 = vector.broadcast %c16_i32 : i32 to vector<128x128xi32>
    %23 = arith.cmpi slt, %21, %22 : vector<128x128xi32>
    %c16_i32_8 = arith.constant 16 : i32
    %24 = vector.broadcast %c16_i32_8 : i32 to vector<128x128xi32>
    %25 = arith.cmpi eq, %21, %24 : vector<128x128xi32>
    %cst_9 = arith.constant 0.000000e+00 : f32
    %26 = vector.shape_cast %20 : vector<128x1xf32> to vector<128x1xf32>
    %27 = vector.broadcast %26 : vector<128x1xf32> to vector<128x128xf32>
    %28 = vector.broadcast %cst_9 : f32 to vector<128x128xf32>
    %29 = arith.select %25, %27, %28 : vector<128x128xi1>, vector<128x128xf32>
    %30 = arith.select %23, %9, %29 : vector<128x128xi1>, vector<128x128xf32>
    %31 = arith.truncf %30 : vector<128x128xf32> to vector<128x128xbf16>
    %c0_10 = arith.constant 0 : index
    %c0_11 = arith.constant 0 : index
    %32 = vector.load %arg3[%c0_10, %c0_11] : memref<128x128xbf16, #tpu.memory_space<vmem>>, vector<128x128xbf16>
    tpu.vector_store %arg3[%c0_10, %c0_11], %31 {strides = array<i32>} : memref<128x128xbf16, #tpu.memory_space<vmem>>, vector<128x128xbf16>,
    return
  }
  func.func @transform_0(%arg0: i32) -> (i32, i32) {
    %c0_i32 = arith.constant 0 : i32
    %c0_i32_0 = arith.constant 0 : i32
    return %arg0, %c0_i32 : i32, i32
  }
  func.func @transform_1(%arg0: i32) -> (i32, i32) {
    %c0_i32 = arith.constant 0 : i32
    %c0_i32_0 = arith.constant 0 : i32
    %c0_i32_1 = arith.constant 0 : i32
    return %c0_i32, %c0_i32_0 : i32, i32
  }
  func.func @transform_2(%arg0: i32) -> (i32, i32) {
    %c0_i32 = arith.constant 0 : i32
    %c0_i32_0 = arith.constant 0 : i32
    return %arg0, %c0_i32 : i32, i32
  }
}

module attributes {stable_mosaic.version = 11 : i64} {
  func.func @fused_interactions_kernel(%arg0: i32, %arg1: i32, %arg2: memref<128x32xf32, #tpu.memory_space<vmem>>, %arg3: memref<128x128xbf16, #tpu.memory_space<vmem>>, %arg4: memref<128x128xbf16, #tpu.memory_space<vmem>>, %arg5: memref<128x128xbf16, #tpu.memory_space<vmem>>, %arg6: memref<1x32x32xbf16, #tpu.memory_space<vmem>>, %arg7: memref<1x128x32xbf16, #tpu.memory_space<vmem>>, %arg8: memref<1x1x32xf32, #tpu.memory_space<vmem>>, %arg9: memref<1x32x32xbf16, #tpu.memory_space<vmem>>, %arg10: memref<1x1x32xf32, #tpu.memory_space<vmem>>, %arg11: memref<1x32x32xbf16, #tpu.memory_space<vmem>>, %arg12: memref<1x1x32xf32, #tpu.memory_space<vmem>>, %arg13: memref<1x32x32xbf16, #tpu.memory_space<vmem>>, %arg14: memref<1x1x32xf32, #tpu.memory_space<vmem>>, %arg15: memref<128x32xf32, #tpu.memory_space<vmem>>, %arg16: memref<128x32xbf16, #tpu.memory_space<vmem>>, %arg17: memref<128x32xf32, #tpu.memory_space<vmem>>) attributes {dimension_semantics = [#tpu.dimension_semantics<arbitrary>, #tpu.dimension_semantics<arbitrary>], iteration_bounds = array<i64: 3, 3>, scalar_prefetch = 0 : i64, scratch_operands = 2 : i64, tpu.core_type = #tpu.core_type<tc>, window_params = [{pipeline_mode = #tpu.pipeline_mode<synchronous>, transform_indices = @transform_0, window_bounds = array<i64: 128, 32>}, {transform_indices = @transform_1, window_bounds = array<i64: 128, 128>}, {transform_indices = @transform_2, window_bounds = array<i64: 128, 128>}, {transform_indices = @transform_3, window_bounds = array<i64: 128, 128>}, {transform_indices = @transform_4, window_bounds = array<i64: 1, 32, 32>}, {transform_indices = @transform_5, window_bounds = array<i64: 1, 128, 32>}, {transform_indices = @transform_6, window_bounds = array<i64: 1, 1, 32>}, {transform_indices = @transform_7, window_bounds = array<i64: 1, 32, 32>}, {transform_indices = @transform_8, window_bounds = array<i64: 1, 1, 32>}, {transform_indices = @transform_9, window_bounds = array<i64: 1, 32, 32>}, {transform_indices = @transform_10, window_bounds = array<i64: 1, 1, 32>}, {transform_indices = @transform_11, window_bounds = array<i64: 1, 32, 32>}, {transform_indices = @transform_12, window_bounds = array<i64: 1, 1, 32>}, {pipeline_mode = #tpu.pipeline_mode<synchronous>, transform_indices = @transform_13, window_bounds = array<i64: 128, 32>}]} {
    %c0_i32 = arith.constant 0 : i32
    %0 = arith.cmpi eq, %arg0, %c0_i32 : i32
    %c0_i32_0 = arith.constant 0 : i32
    %1 = arith.cmpi eq, %arg1, %c0_i32_0 : i32
    %2 = arith.andi %0, %1 : i1
    %3 = arith.extui %2 : i1 to i32
    %c0_i32_1 = arith.constant 0 : i32
    %4 = arith.cmpi ne, %3, %c0_i32_1 : i32
    scf.if %4 {
      %c0_34 = arith.constant 0 : index
      %c0_35 = arith.constant 0 : index
      %57 = vector.load %arg2[%c0_34, %c0_35] : memref<128x32xf32, #tpu.memory_space<vmem>>, vector<128x32xf32>
      %c0_36 = arith.constant 0 : index
      %c0_37 = arith.constant 0 : index
      %58 = vector.load %arg15[%c0_36, %c0_37] : memref<128x32xf32, #tpu.memory_space<vmem>>, vector<128x32xf32>
      tpu.vector_store %arg15[%c0_36, %c0_37], %57 {strides = array<i32>} : memref<128x32xf32, #tpu.memory_space<vmem>>, vector<128x32xf32>,
    } else {
    }
    %c0_i32_2 = arith.constant 0 : i32
    %5 = arith.cmpi eq, %arg1, %c0_i32_2 : i32
    %6 = arith.extui %5 : i1 to i32
    %c0_i32_3 = arith.constant 0 : i32
    %7 = arith.cmpi ne, %6, %c0_i32_3 : i32
    scf.if %7 {
      %c0_34 = arith.constant 0 : index
      %c0_35 = arith.constant 0 : index
      %57 = vector.load %arg15[%c0_34, %c0_35] : memref<128x32xf32, #tpu.memory_space<vmem>>, vector<128x32xf32>
      %58 = arith.truncf %57 : vector<128x32xf32> to vector<128x32xbf16>
      %c0_36 = arith.constant 0 : index
      %c0_37 = arith.constant 0 : index
      %c0_38 = arith.constant 0 : index
      %59 = vector.load %arg6[%c0_36, %c0_37, %c0_38] : memref<1x32x32xbf16, #tpu.memory_space<vmem>>, vector<1x32x32xbf16>
      %60 = vector.shape_cast %59 : vector<1x32x32xbf16> to vector<32x32xbf16>
      %cst_39 = arith.constant dense<0.000000e+00> : vector<128x32xf32>
      %61 = tpu.matmul %58, %60, %cst_39 {dimension_numbers = #tpu.dot_dimension_numbers<[1], [0], [0], [1], [0, 0, 1, 1], [], []>} : vector<128x32xbf16>, vector<32x32xbf16>, vector<128x32xf32> -> vector<128x32xf32>
      %62 = arith.truncf %61 : vector<128x32xf32> to vector<128x32xbf16>
      %c0_40 = arith.constant 0 : index
      %c0_41 = arith.constant 0 : index
      %63 = vector.load %arg16[%c0_40, %c0_41] : memref<128x32xbf16, #tpu.memory_space<vmem>>, vector<128x32xbf16>
      tpu.vector_store %arg16[%c0_40, %c0_41], %62 {strides = array<i32>} : memref<128x32xbf16, #tpu.memory_space<vmem>>, vector<128x32xbf16>,
      %cst_42 = arith.constant 0.000000e+00 : f32
      %64 = vector.broadcast %cst_42 : f32 to vector<128x32xf32>
      %c0_43 = arith.constant 0 : index
      %c0_44 = arith.constant 0 : index
      %65 = vector.load %arg17[%c0_43, %c0_44] : memref<128x32xf32, #tpu.memory_space<vmem>>, vector<128x32xf32>
      tpu.vector_store %arg17[%c0_43, %c0_44], %64 {strides = array<i32>} : memref<128x32xf32, #tpu.memory_space<vmem>>, vector<128x32xf32>,
    } else {
    }
    %c0 = arith.constant 0 : index
    %c0_4 = arith.constant 0 : index
    %8 = vector.load %arg3[%c0, %c0_4] : memref<128x128xbf16, #tpu.memory_space<vmem>>, vector<128x128xbf16>
    %9 = vector.extract_strided_slice %8 {offsets = [0, 16], sizes = [128, 1], strides = [1, 1]} : vector<128x128xbf16> to vector<128x1xbf16>
    %10 = arith.extf %9 : vector<128x1xbf16> to vector<128x1xf32>
    %c0_5 = arith.constant 0 : index
    %c0_6 = arith.constant 0 : index
    %c0_7 = arith.constant 0 : index
    %11 = vector.load %arg7[%c0_5, %c0_6, %c0_7] : memref<1x128x32xbf16, #tpu.memory_space<vmem>>, vector<1x128x32xbf16>
    %12 = vector.shape_cast %11 : vector<1x128x32xbf16> to vector<128x32xbf16>
    %cst = arith.constant dense<0.000000e+00> : vector<128x32xf32>
    %13 = tpu.matmul %8, %12, %cst {dimension_numbers = #tpu.dot_dimension_numbers<[1], [0], [0], [1], [0, 0, 1, 1], [], []>} : vector<128x128xbf16>, vector<128x32xbf16>, vector<128x32xf32> -> vector<128x32xf32>
    %c0_8 = arith.constant 0 : index
    %c0_9 = arith.constant 0 : index
    %c0_10 = arith.constant 0 : index
    %14 = vector.load %arg8[%c0_8, %c0_9, %c0_10] : memref<1x1x32xf32, #tpu.memory_space<vmem>>, vector<1x1x32xf32>
    %15 = vector.shape_cast %14 : vector<1x1x32xf32> to vector<1x32xf32>
    %16 = vector.broadcast %15 : vector<1x32xf32> to vector<128x32xf32>
    %17 = arith.addf %13, %16 : vector<128x32xf32>
    %cst_11 = arith.constant 0.000000e+00 : f32
    %18 = vector.broadcast %cst_11 : f32 to vector<128x32xf32>
    %19 = arith.maximumf %17, %18 : vector<128x32xf32>
    %20 = vector.broadcast %cst_11 : f32 to vector<128x32xf32>
    %21 = arith.subf %17, %20 : vector<128x32xf32>
    %22 = arith.cmpf one, %21, %21 : vector<128x32xf32>
    %23 = vector.broadcast %cst_11 : f32 to vector<128x32xf32>
    %24 = arith.addf %17, %23 : vector<128x32xf32>
    %25 = math.absf %21 : vector<128x32xf32>
    %cst_12 = arith.constant 0.000000e+00 : f32
    %26 = vector.broadcast %cst_12 : f32 to vector<128x32xf32>
    %27 = arith.subf %26, %25 : vector<128x32xf32>
    %28 = math.exp %27 : vector<128x32xf32>
    %29 = math.log1p %28 : vector<128x32xf32>
    %30 = arith.addf %19, %29 : vector<128x32xf32>
    %31 = arith.select %22, %24, %30 : vector<128x32xi1>, vector<128x32xf32>
    %cst_13 = arith.constant 0.693147182 : f32
    %32 = vector.broadcast %cst_13 : f32 to vector<128x32xf32>
    %33 = arith.subf %31, %32 : vector<128x32xf32>
    %34 = arith.truncf %33 : vector<128x32xf32> to vector<128x32xbf16>
    %c0_14 = arith.constant 0 : index
    %c0_15 = arith.constant 0 : index
    %c0_16 = arith.constant 0 : index
    %35 = vector.load %arg9[%c0_14, %c0_15, %c0_16] : memref<1x32x32xbf16, #tpu.memory_space<vmem>>, vector<1x32x32xbf16>
    %36 = vector.shape_cast %35 : vector<1x32x32xbf16> to vector<32x32xbf16>
    %cst_17 = arith.constant dense<0.000000e+00> : vector<128x32xf32>
    %37 = tpu.matmul %34, %36, %cst_17 {dimension_numbers = #tpu.dot_dimension_numbers<[1], [0], [0], [1], [0, 0, 1, 1], [], []>} : vector<128x32xbf16>, vector<32x32xbf16>, vector<128x32xf32> -> vector<128x32xf32>
    %c0_18 = arith.constant 0 : index
    %c0_19 = arith.constant 0 : index
    %c0_20 = arith.constant 0 : index
    %38 = vector.load %arg10[%c0_18, %c0_19, %c0_20] : memref<1x1x32xf32, #tpu.memory_space<vmem>>, vector<1x1x32xf32>
    %39 = vector.shape_cast %38 : vector<1x1x32xf32> to vector<1x32xf32>
    %40 = vector.broadcast %39 : vector<1x32xf32> to vector<128x32xf32>
    %41 = arith.addf %37, %40 : vector<128x32xf32>
    %42 = vector.broadcast %10 : vector<128x1xf32> to vector<128x32xf32>
    %43 = arith.mulf %41, %42 : vector<128x32xf32>
    %c0_21 = arith.constant 0 : index
    %c0_22 = arith.constant 0 : index
    %44 = vector.load %arg4[%c0_21, %c0_22] : memref<128x128xbf16, #tpu.memory_space<vmem>>, vector<128x128xbf16>
    %c0_23 = arith.constant 0 : index
    %c0_24 = arith.constant 0 : index
    %45 = vector.load %arg16[%c0_23, %c0_24] : memref<128x32xbf16, #tpu.memory_space<vmem>>, vector<128x32xbf16>
    %cst_25 = arith.constant dense<0.000000e+00> : vector<128x32xf32>
    %46 = tpu.matmul %44, %45, %cst_25 {dimension_numbers = #tpu.dot_dimension_numbers<[1], [0], [0], [1], [0, 0, 1, 1], [], []>} : vector<128x128xbf16>, vector<128x32xbf16>, vector<128x32xf32> -> vector<128x32xf32>
    %47 = arith.mulf %46, %43 : vector<128x32xf32>
    %48 = arith.truncf %47 : vector<128x32xf32> to vector<128x32xbf16>
    %c0_26 = arith.constant 0 : index
    %c0_27 = arith.constant 0 : index
    %49 = vector.load %arg17[%c0_26, %c0_27] : memref<128x32xf32, #tpu.memory_space<vmem>>, vector<128x32xf32>
    %c0_28 = arith.constant 0 : index
    %c0_29 = arith.constant 0 : index
    %50 = vector.load %arg5[%c0_28, %c0_29] : memref<128x128xbf16, #tpu.memory_space<vmem>>, vector<128x128xbf16>
    %cst_30 = arith.constant dense<0.000000e+00> : vector<128x32xf32>
    %51 = tpu.matmul %50, %48, %cst_30 {dimension_numbers = #tpu.dot_dimension_numbers<[1], [0], [0], [1], [0, 0, 1, 1], [], []>} : vector<128x128xbf16>, vector<128x32xbf16>, vector<128x32xf32> -> vector<128x32xf32>
    %52 = arith.addf %49, %51 : vector<128x32xf32>
    %c0_31 = arith.constant 0 : index
    %c0_32 = arith.constant 0 : index
    %53 = vector.load %arg17[%c0_31, %c0_32] : memref<128x32xf32, #tpu.memory_space<vmem>>, vector<128x32xf32>
    tpu.vector_store %arg17[%c0_31, %c0_32], %52 {strides = array<i32>} : memref<128x32xf32, #tpu.memory_space<vmem>>, vector<128x32xf32>,
    %c2_i32 = arith.constant 2 : i32
    %54 = arith.cmpi eq, %arg1, %c2_i32 : i32
    %55 = arith.extui %54 : i1 to i32
    %c0_i32_33 = arith.constant 0 : i32
    %56 = arith.cmpi ne, %55, %c0_i32_33 : i32
    scf.if %56 {
      %c0_34 = arith.constant 0 : index
      %c0_35 = arith.constant 0 : index
      %57 = vector.load %arg17[%c0_34, %c0_35] : memref<128x32xf32, #tpu.memory_space<vmem>>, vector<128x32xf32>
      %58 = arith.truncf %57 : vector<128x32xf32> to vector<128x32xbf16>
      %c0_36 = arith.constant 0 : index
      %c0_37 = arith.constant 0 : index
      %c0_38 = arith.constant 0 : index
      %59 = vector.load %arg11[%c0_36, %c0_37, %c0_38] : memref<1x32x32xbf16, #tpu.memory_space<vmem>>, vector<1x32x32xbf16>
      %60 = vector.shape_cast %59 : vector<1x32x32xbf16> to vector<32x32xbf16>
      %cst_39 = arith.constant dense<0.000000e+00> : vector<128x32xf32>
      %61 = tpu.matmul %58, %60, %cst_39 {dimension_numbers = #tpu.dot_dimension_numbers<[1], [0], [0], [1], [0, 0, 1, 1], [], []>} : vector<128x32xbf16>, vector<32x32xbf16>, vector<128x32xf32> -> vector<128x32xf32>
      %c0_40 = arith.constant 0 : index
      %c0_41 = arith.constant 0 : index
      %c0_42 = arith.constant 0 : index
      %62 = vector.load %arg12[%c0_40, %c0_41, %c0_42] : memref<1x1x32xf32, #tpu.memory_space<vmem>>, vector<1x1x32xf32>
      %63 = vector.shape_cast %62 : vector<1x1x32xf32> to vector<1x32xf32>
      %64 = vector.broadcast %63 : vector<1x32xf32> to vector<128x32xf32>
      %65 = arith.addf %61, %64 : vector<128x32xf32>
      %cst_43 = arith.constant 0.000000e+00 : f32
      %66 = vector.broadcast %cst_43 : f32 to vector<128x32xf32>
      %67 = arith.maximumf %65, %66 : vector<128x32xf32>
      %68 = vector.broadcast %cst_43 : f32 to vector<128x32xf32>
      %69 = arith.subf %65, %68 : vector<128x32xf32>
      %70 = arith.cmpf one, %69, %69 : vector<128x32xf32>
      %71 = vector.broadcast %cst_43 : f32 to vector<128x32xf32>
      %72 = arith.addf %65, %71 : vector<128x32xf32>
      %73 = math.absf %69 : vector<128x32xf32>
      %cst_44 = arith.constant 0.000000e+00 : f32
      %74 = vector.broadcast %cst_44 : f32 to vector<128x32xf32>
      %75 = arith.subf %74, %73 : vector<128x32xf32>
      %76 = math.exp %75 : vector<128x32xf32>
      %77 = math.log1p %76 : vector<128x32xf32>
      %78 = arith.addf %67, %77 : vector<128x32xf32>
      %79 = arith.select %70, %72, %78 : vector<128x32xi1>, vector<128x32xf32>
      %cst_45 = arith.constant 0.693147182 : f32
      %80 = vector.broadcast %cst_45 : f32 to vector<128x32xf32>
      %81 = arith.subf %79, %80 : vector<128x32xf32>
      %82 = arith.truncf %81 : vector<128x32xf32> to vector<128x32xbf16>
      %c0_46 = arith.constant 0 : index
      %c0_47 = arith.constant 0 : index
      %c0_48 = arith.constant 0 : index
      %83 = vector.load %arg13[%c0_46, %c0_47, %c0_48] : memref<1x32x32xbf16, #tpu.memory_space<vmem>>, vector<1x32x32xbf16>
      %84 = vector.shape_cast %83 : vector<1x32x32xbf16> to vector<32x32xbf16>
      %cst_49 = arith.constant dense<0.000000e+00> : vector<128x32xf32>
      %85 = tpu.matmul %82, %84, %cst_49 {dimension_numbers = #tpu.dot_dimension_numbers<[1], [0], [0], [1], [0, 0, 1, 1], [], []>} : vector<128x32xbf16>, vector<32x32xbf16>, vector<128x32xf32> -> vector<128x32xf32>
      %c0_50 = arith.constant 0 : index
      %c0_51 = arith.constant 0 : index
      %c0_52 = arith.constant 0 : index
      %86 = vector.load %arg14[%c0_50, %c0_51, %c0_52] : memref<1x1x32xf32, #tpu.memory_space<vmem>>, vector<1x1x32xf32>
      %87 = vector.shape_cast %86 : vector<1x1x32xf32> to vector<1x32xf32>
      %88 = vector.broadcast %87 : vector<1x32xf32> to vector<128x32xf32>
      %89 = arith.addf %85, %88 : vector<128x32xf32>
      %c0_53 = arith.constant 0 : index
      %c0_54 = arith.constant 0 : index
      %90 = vector.load %arg15[%c0_53, %c0_54] : memref<128x32xf32, #tpu.memory_space<vmem>>, vector<128x32xf32>
      %91 = arith.addf %90, %89 : vector<128x32xf32>
      %c0_55 = arith.constant 0 : index
      %c0_56 = arith.constant 0 : index
      %92 = vector.load %arg15[%c0_55, %c0_56] : memref<128x32xf32, #tpu.memory_space<vmem>>, vector<128x32xf32>
      tpu.vector_store %arg15[%c0_55, %c0_56], %91 {strides = array<i32>} : memref<128x32xf32, #tpu.memory_space<vmem>>, vector<128x32xf32>,
    } else {
    }
    return
  }
  func.func @transform_0(%arg0: i32, %arg1: i32) -> (i32, i32) {
    %c0_i32 = arith.constant 0 : i32
    %c0_i32_0 = arith.constant 0 : i32
    %c0_i32_1 = arith.constant 0 : i32
    return %c0_i32, %c0_i32_0 : i32, i32
  }
  func.func @transform_1(%arg0: i32, %arg1: i32) -> (i32, i32) {
    %c0_i32 = arith.constant 0 : i32
    %c0_i32_0 = arith.constant 0 : i32
    return %arg1, %c0_i32 : i32, i32
  }
  func.func @transform_2(%arg0: i32, %arg1: i32) -> (i32, i32) {
    %c0_i32 = arith.constant 0 : i32
    %c0_i32_0 = arith.constant 0 : i32
    return %arg1, %c0_i32 : i32, i32
  }
  func.func @transform_3(%arg0: i32, %arg1: i32) -> (i32, i32) {
    %c0_i32 = arith.constant 0 : i32
    %c0_i32_0 = arith.constant 0 : i32
    return %c0_i32, %arg1 : i32, i32
  }
  func.func @transform_4(%arg0: i32, %arg1: i32) -> (i32, i32, i32) {
    %c0_i32 = arith.constant 0 : i32
    %c0_i32_0 = arith.constant 0 : i32
    %c0_i32_1 = arith.constant 0 : i32
    return %arg0, %c0_i32, %c0_i32_0 : i32, i32, i32
  }
  func.func @transform_5(%arg0: i32, %arg1: i32) -> (i32, i32, i32) {
    %c0_i32 = arith.constant 0 : i32
    %c0_i32_0 = arith.constant 0 : i32
    %c0_i32_1 = arith.constant 0 : i32
    return %arg0, %c0_i32, %c0_i32_0 : i32, i32, i32
  }
  func.func @transform_6(%arg0: i32, %arg1: i32) -> (i32, i32, i32) {
    %c0_i32 = arith.constant 0 : i32
    %c0_i32_0 = arith.constant 0 : i32
    %c0_i32_1 = arith.constant 0 : i32
    return %arg0, %c0_i32, %c0_i32_0 : i32, i32, i32
  }
  func.func @transform_7(%arg0: i32, %arg1: i32) -> (i32, i32, i32) {
    %c0_i32 = arith.constant 0 : i32
    %c0_i32_0 = arith.constant 0 : i32
    %c0_i32_1 = arith.constant 0 : i32
    return %arg0, %c0_i32, %c0_i32_0 : i32, i32, i32
  }
  func.func @transform_8(%arg0: i32, %arg1: i32) -> (i32, i32, i32) {
    %c0_i32 = arith.constant 0 : i32
    %c0_i32_0 = arith.constant 0 : i32
    %c0_i32_1 = arith.constant 0 : i32
    return %arg0, %c0_i32, %c0_i32_0 : i32, i32, i32
  }
  func.func @transform_9(%arg0: i32, %arg1: i32) -> (i32, i32, i32) {
    %c0_i32 = arith.constant 0 : i32
    %c0_i32_0 = arith.constant 0 : i32
    %c0_i32_1 = arith.constant 0 : i32
    return %arg0, %c0_i32, %c0_i32_0 : i32, i32, i32
  }
  func.func @transform_10(%arg0: i32, %arg1: i32) -> (i32, i32, i32) {
    %c0_i32 = arith.constant 0 : i32
    %c0_i32_0 = arith.constant 0 : i32
    %c0_i32_1 = arith.constant 0 : i32
    return %arg0, %c0_i32, %c0_i32_0 : i32, i32, i32
  }
  func.func @transform_11(%arg0: i32, %arg1: i32) -> (i32, i32, i32) {
    %c0_i32 = arith.constant 0 : i32
    %c0_i32_0 = arith.constant 0 : i32
    %c0_i32_1 = arith.constant 0 : i32
    return %arg0, %c0_i32, %c0_i32_0 : i32, i32, i32
  }
  func.func @transform_12(%arg0: i32, %arg1: i32) -> (i32, i32, i32) {
    %c0_i32 = arith.constant 0 : i32
    %c0_i32_0 = arith.constant 0 : i32
    %c0_i32_1 = arith.constant 0 : i32
    return %arg0, %c0_i32, %c0_i32_0 : i32, i32, i32
  }
  func.func @transform_13(%arg0: i32, %arg1: i32) -> (i32, i32) {
    %c0_i32 = arith.constant 0 : i32
    %c0_i32_0 = arith.constant 0 : i32
    %c0_i32_1 = arith.constant 0 : i32
    return %c0_i32, %c0_i32_0 : i32, i32
  }
}

</mosaic_0001>

<bundles_post_ra>
// kernel: schnet_forward.2
= control target key start
LH: loop header
LB: loop body
LE: loop exit
PB: predicated region body
PF: predicated region fallthrough
CT: control target
= control target key end

     0   :  { %s2856_s9 = smov 0   ;;  %s4636_s0 = inlined_call_operand.vmem [shape: f32[384,1], index: 0, kind: input, shape index: {}]   ;;  %s4637_s1 = inlined_call_operand.vmem [shape: f32[1,128], index: 1, kind: input, shape index: {}]   ;;  %s4638_s2 = inlined_call_operand.vmem [shape: bf16[384,128], index: 2, kind: output, shape index: {}]  }
   0x1 LB: > { %s2422_s10 = sadd.s32 4294967295, %s2832_s9   ;;  %p2426_p0 = scmp.ge.s32.totalorder %s2832_s9, 1  ;;  %s2832_s9 = sphi %s2856_s9, %s12_s9  }
   0x2   : > { %p113_p1 = scmp.lt.s32.totalorder %s2832_s9, 4 }
   0x4   : > { %p114_p2 = pnand %p2426_p0, %p113_p1 }
   0x6   : > { %117 = sbr.rel (%p114_p2) target bundleno = 624 (0x270), region = 28 }
   0xb   : > { %s2427_s11 = sshll.u32 %s2422_s10, 4  ;;  %v2834_v0 = vmov 0   ;;  %v4653_v62 = vmov 683565275  }
   0xc   : > { %2657 = vset.pattern.permute.xlu1 %v2834_v0  ;;  %2656 = vset.pattern.permute.xlu0 %v2834_v0  ;;  %p136_p3 = scmp.lt.s32.totalorder %s2427_s11, 47  ;;  %v4651_v0 = vmov 2475754826  }
   0xe   : > { %s4955_s11 = smov (!%p136_p3, %s2427_s11), 47 }
   0xf   : > { %s2428_s12 = sshll.u32 %s4955_s11, 3  ;;  %s2430_s18 = sshll.u32 %s4955_s11, 2 }
  0x10   : > { %s2870_s15 = scalar_lea.vmem %s4636_s0, %s2428_s12  ;;  %s4547_s21 = scalar_lea.vmem %s4638_s2, %s2430_s18 }
  0x11   : > { %v149_v1 = vld [vmem:[%s2870_s15 + $0x10] sm:$0xff]  ;;  %v147_v2 = vld [vmem:[%s2870_s15] sm:$0xff]  ;;  %v150_v3 = vld [vmem:[%s2870_s15 + $0x18] sm:$0xff] }
  0x12   : > { %2698 = vrsqrt.f32 %v149_v1  ;;  %v148_v4 = vld [vmem:[%s2870_s15 + $0x8] sm:$0xff]  ;;  %vm179_vm0 = vcmp.eq.f32.partialorder %v149_v1, inf  ;;  %v182_v6 = vand.u32 2147483648, %v149_v1  ;;  %vm181_vm1 = vcmp.eq.f32.partialorder %v149_v1, 0.0  ;;  %v2914_v43 = vld [vmem:[%s2870_s15 + $0x20] sm:$0xff] }
  0x13   : > { %2700 = vrsqrt.f32 %v147_v2  ;;  %vm165_vm2 = vcmp.eq.f32.partialorder %v147_v2, inf  ;;  %v168_v9 = vand.u32 2147483648, %v147_v2  ;;  %vm167_vm3 = vcmp.eq.f32.partialorder %v147_v2, 0.0  ;;  %v2908_v39 = vld [vmem:[%s2870_s15 + $0x28] sm:$0xff] }
  0x14   : > { %2702 = vrsqrt.f32 %v150_v3  ;;  %vm186_vm4 = vcmp.eq.f32.partialorder %v150_v3, inf  ;;  %v189_v12 = vand.u32 2147483648, %v150_v3  ;;  %vm188_vm5 = vcmp.eq.f32.partialorder %v150_v3, 0.0 }
  0x15   : > { %2704 = vrsqrt.f32 %v148_v4  ;;  %vm172_vm6 = vcmp.eq.f32.partialorder %v148_v4, inf  ;;  %v175_v22 = vand.u32 2147483648, %v148_v4  ;;  %vm174_vm7 = vcmp.eq.f32.partialorder %v148_v4, 0.0 }
  0x16   : > { %2706 = vrsqrt.f32 %v2908_v39 }
  0x17   : > { %2708 = vrsqrt.f32 %v2914_v43 }
  0x1f   : > { %v2699_v5 = vpop.eup %2698 }
  0x20   : > { %v2701_v7 = vpop.eup %2700  ;;  %v178_v8 = vmul.f32 %v2699_v5, %v149_v1 }
  0x21   : > { %v2703_v10 = vpop.eup %2702  ;;  %v164_v11 = vmul.f32 %v2701_v7, %v147_v2 }
  0x22   : > { %v2705_v13 = vpop.eup %2704  ;;  %v180_v14 = vsel %vm179_vm0, %v149_v1, %v178_v8  ;;  %v185_v15 = vmul.f32 %v2703_v10, %v150_v3 }
  0x23   : > { %v2876_v16 = vsel %vm181_vm1, %v182_v6, %v180_v14  ;;  %v166_v17 = vsel %vm165_vm2, %v147_v2, %v164_v11  ;;  %v171_v18 = vmul.f32 %v2705_v13, %v148_v4  ;;  %v4647_v2 = vmov 2131351028  }
  0x24   : > { %288 = vperm.xlu1 %2657, %v2876_v16   ;;  %v2880_v19 = vmul.f32 0.62831855, %v2876_v16  ;;  %v2882_v20 = vsel %vm167_vm3, %v168_v9, %v166_v17  ;;  %v187_v21 = vsel %vm186_vm4, %v150_v3, %v185_v15  ;;  %v4649_v6 = vmov 920167782  }
  0x25   : > { %4762 = vst [vmem:[#allocation2_spill] sm:$0xff] %v2882_v20  ;;  %278 = vperm.xlu0 %2656, %v2882_v20   ;;  %v2886_v23 = vmul.f32 0.62831855, %v2882_v20  ;;  %v2888_v24 = vsel %vm188_vm5, %v189_v12, %v187_v21  ;;  %v173_v25 = vsel %vm172_vm6, %v148_v4, %v171_v18  ;;  %v4645_v4 = vmov 2102212464  }
  0x26   : > { %v680_v26 = vand.u32 2147483647, %v2880_v19  ;;  %v683_v27 = vand.u32 2139095040, %v2880_v19  ;;  %v2895_v30 = vmul.f32 0.62831855, %v2888_v24  ;;  %v2900_v33 = vsel %vm174_vm7, %v175_v22, %v173_v25 }
  0x27   : > { %v474_v28 = vand.u32 2147483647, %v2886_v23  ;;  %v477_v29 = vand.u32 2139095040, %v2886_v23  ;;  %4763 = vst [vmem:[#allocation3_spill] sm:$0xff] %v2900_v33  ;;  %v2911_v42 = vmul.f32 0.62831855, %v2900_v33 }
  0x28   : > { %v684_v31 = vshrl.u32 %v683_v27, 23  ;;  %v687_v32 = vand.u32 8388607, %v680_v26  ;;  %293 = vperm.xlu1 %2657, %v2888_v24   ;;  %v783_v37 = vand.u32 2147483647, %v2895_v30  ;;  %v786_v38 = vand.u32 2139095040, %v2895_v30 }
  0x29   : > { %v478_v34 = vshrl.u32 %v477_v29, 23  ;;  %v481_v35 = vand.u32 8388607, %v474_v28  ;;  %283 = vperm.xlu0 %2656, %v2900_v33   ;;  %4764 = vst [vmem:[#allocation4_spill] sm:$0xff] %v2911_v42  ;;  %v580_v52 = vand.u32 2139095040, %v2911_v42  ;;  %vm200_vm5 = vcmp.eq.f32.partialorder %v2908_v39, inf }
  0x2a   : > { %v2440_v36 = vadd.s32 4294967169, %v684_v31  ;;  %v688_v40 = vor.u32 8388608, %v687_v32  ;;  %v787_v46 = vshrl.u32 %v786_v38, 23  ;;  %v2918_v48 = vand.u32 8388607, %v783_v37 }
  0x2b   : > { %v2432_v41 = vadd.s32 4294967169, %v478_v34  ;;  %v482_v45 = vor.u32 8388608, %v481_v35  ;;  %v2937_v8 = vshrl.u32 %v580_v52, 23  ;;  %v4642_v14 = vmov 1326507024  }
  0x2c   : > { %v690_v44 = vadd.s32 1, %v2440_v36  ;;  %v2444_v49 = vadd.s32 4294967169, %v787_v46  ;;  %v2922_v51 = vshll.u32 %v688_v40, 8  ;;  %v791_v59 = vor.u32 8388608, %v2918_v48 }
  0x2d   : > { %v484_v47 = vadd.s32 1, %v2432_v41  ;;  %v2925_v56 = vshll.u32 %v482_v45, 8  ;;  %vm193_vm6 = vcmp.eq.f32.partialorder %v2914_v43, inf  ;;  %v4802_v20 = vmov 0 }
  0x2e   : > { %vm691_vm8 = vcmp.gt.s32.totalorder %v690_v44, 0  ;;  %v2930_v60 = vadd.s32 1, %v2444_v49 }
  0x2f   : > { %v692_v50 = vsel %vm691_vm8, %v690_v44, 0  ;;  %vm485_vm9 = vcmp.gt.s32.totalorder %v484_v47, 0  ;;  %v2950_v44 = vpop.eup %2706 }
  0x30   : > { %v693_v53 = vshrl.u32 %v692_v50, 5  ;;  %v694_v54 = vand.u32 31, %v692_v50  ;;  %v486_v55 = vsel %vm485_vm9, %v484_v47, 0  ;;  %v2954_v50 = vpop.eup %2708  ;;  %vm794_vm3 = vcmp.gt.s32.totalorder %v2930_v60, 0 }
  0x31   : > { %v2927_v57 = vshrl.u32 %v486_v55, 5  ;;  %v488_v58 = vand.u32 31, %v486_v55  ;;  %v3022_v48 = vmul.f32 %v2950_v44, %v2908_v39 }
  0x32   : > { %v695_v61 = vsub.s32 32, %v694_v54  ;;  %v697_v63 = vshll.u32 %v4653_v62, %v694_v54  ;;  %v700_v1 = vshll.u32 %v4651_v0, %v694_v54  ;;  %v703_v3 = vshll.u32 %v4647_v2, %v694_v54 }
  0x33   : > { %v706_v5 = vshll.u32 %v4645_v4, %v694_v54  ;;  %v709_v7 = vshll.u32 %v4649_v6, %v694_v54  ;;  %vm712_vm10 = vcmp.lt.s32.totalorder %v693_v53, 1  ;;  %vm713_vm11 = vcmp.lt.s32.totalorder %v693_v53, 2 }
  0x34   : > { %v696_v9 = vshrl.u32 %v4653_v62, %v695_v61  ;;  %v698_v10 = vshrl.u32 %v4651_v0, %v695_v61  ;;  %v701_v11 = vshrl.u32 %v4647_v2, %v695_v61  ;;  %v704_v12 = vshrl.u32 %v4645_v4, %v695_v61 }
  0x35   : > { %v707_v13 = vshrl.u32 %v4649_v6, %v695_v61  ;;  %v710_v15 = vshrl.u32 %v4642_v14, %v695_v61  ;;  %vm715_vm12 = vcmp.lt.s32.totalorder %v693_v53, 4  ;;  %v489_v22 = vsub.s32 32, %v488_v58 }
  0x36   : > { %v699_v17 = vor.u32 %v698_v10, %v697_v63  ;;  %v702_v18 = vor.u32 %v701_v11, %v700_v1  ;;  %v705_v21 = vor.u32 %v704_v12, %v703_v3  ;;  %vm714_vm13 = vcmp.lt.s32.totalorder %v693_v53, 3 }
  0x37   : > { %v708_v25 = vor.u32 %v707_v13, %v706_v5  ;;  %v711_v27 = vor.u32 %v710_v15, %v709_v7  ;;  %v491_v29 = vshll.u32 %v4653_v62, %v488_v58  ;;  %v494_v41 = vshll.u32 %v4651_v0, %v488_v58 }
  0x38   : > { %v716_v31 = vsel %vm712_vm10, %v696_v9, %v699_v17  ;;  %v717_v32 = vsel %vm715_vm12, %v705_v21, 2102212464  ;;  %v720_v34 = vsel %vm712_vm10, %v699_v17, %v702_v18  ;;  %v724_v35 = vsel %vm712_vm10, %v702_v18, %v705_v21 }
  0x39   : > { %v718_v36 = vsel %vm714_vm13, %v702_v18, %v717_v32  ;;  %v721_v38 = vsel %vm715_vm12, %v708_v25, 920167782  ;;  %v725_v40 = vsel %vm715_vm12, %v711_v27, 1326507024  ;;  %v490_v47 = vshrl.u32 %v4653_v62, %v489_v22 }
  0x3a   : > { %v722_v45 = vsel %vm714_vm13, %v705_v21, %v721_v38  ;;  %v726_v46 = vsel %vm714_vm13, %v708_v25, %v725_v40  ;;  %v492_v49 = vshrl.u32 %v4651_v0, %v489_v22  ;;  %v719_v52 = vsel %vm713_vm11, %v716_v31, %v718_v36 }
  0x3b   : > { %v723_v54 = vsel %vm713_vm11, %v720_v34, %v722_v45  ;;  %v727_v55 = vsel %vm713_vm11, %v724_v35, %v726_v46  ;;  %v495_v61 = vshrl.u32 %v4647_v2, %v489_v22  ;;  %v497_v10 = vshll.u32 %v4647_v2, %v488_v58 }
  0x3c   : > { %v2961_v63 = vmul.u32.u64.low %v2922_v51, %v727_v55  ;;  %v2962_v1 = vmul.u32.u64.high %v2922_v51, %v727_v55, %v2961_v63  ;;  %v2965_v3 = vmul.u32.u64.low %v2922_v51, %v723_v54  ;;  %v2966_v5 = vmul.u32.u64.high %v2922_v51, %v723_v54, %v2965_v3 }
  0x3d   : > { %v493_v7 = vor.u32 %v492_v49, %v491_v29  ;;  %v496_v9 = vor.u32 %v495_v61, %v494_v41  ;;  %v498_v11 = vshrl.u32 %v4645_v4, %v489_v22  ;;  %v500_v53 = vshll.u32 %v4645_v4, %v488_v58 }
  0x3e   : > { %v501_v12 = vshrl.u32 %v4649_v6, %v489_v22  ;;  %v503_v13 = vshll.u32 %v4649_v6, %v488_v58  ;;  %v504_v15 = vshrl.u32 %v4642_v14, %v489_v22  ;;  %v735_v17 = vmul.u32 %v2922_v51, %v719_v52 }
  0x3f   : > { %v499_v18 = vor.u32 %v498_v11, %v497_v10  ;;  %vm506_vm14 = vcmp.lt.s32.totalorder %v2927_v57, 1  ;;  %vm507_vm15 = vcmp.lt.s32.totalorder %v2927_v57, 2  ;;  %vm737_vm0 = vc.u32 %v2962_v1, %v2965_v3 }
  0x40   : > { %v738_v21 = vadd.s32 1, %v2966_v5  ;;  %v502_v25 = vor.u32 %v501_v12, %v500_v53  ;;  %vm508_vm1 = vcmp.lt.s32.totalorder %v2927_v57, 3  ;;  %v505_v27 = vor.u32 %v504_v15, %v503_v13 }
  0x41   : > { %vm509_vm2 = vcmp.lt.s32.totalorder %v2927_v57, 4  ;;  %v510_v58 = vsel %vm506_vm14, %v490_v47, %v493_v7  ;;  %v514_v22 = vsel %vm506_vm14, %v493_v7, %v496_v9  ;;  %v518_v32 = vsel %vm506_vm14, %v496_v9, %v499_v18 }
  0x42   : > { %v739_v51 = vsel %vm737_vm0, %v738_v21, %v2966_v5  ;;  %v511_v29 = vsel %vm509_vm2, %v499_v18, 2102212464  ;;  %v515_v31 = vsel %vm509_vm2, %v502_v25, 920167782  ;;  %v519_v38 = vsel %vm509_vm2, %v505_v27, 1326507024 }
  0x43   : > { %v740_v34 = vadd.s32 %v739_v51, %v735_v17  ;;  %v512_v35 = vsel %vm508_vm1, %v496_v9, %v511_v29  ;;  %v516_v36 = vsel %vm508_vm1, %v499_v18, %v515_v31  ;;  %v520_v45 = vsel %vm508_vm1, %v502_v25, %v519_v38 }
  0x44   : > { %v513_v40 = vsel %vm507_vm15, %v510_v58, %v512_v35  ;;  %v517_v41 = vsel %vm507_vm15, %v514_v22, %v516_v36  ;;  %v521_v47 = vsel %vm507_vm15, %v518_v32, %v520_v45  ;;  %v795_v61 = vsel %vm794_vm3, %v2930_v60, 0 }
  0x45   : > { %v741_v46 = vadd.s32 536870912, %v740_v34  ;;  %v2992_v49 = vmul.u32.u64.low %v2925_v56, %v517_v41  ;;  %v2993_v52 = vmul.u32.u64.high %v2925_v56, %v517_v41, %v2992_v49  ;;  %v797_v5 = vand.u32 31, %v795_v61 }
  0x46   : > { %v2997_v54 = vmul.u32.u64.low %v2925_v56, %v521_v47  ;;  %v2998_v55 = vmul.u32.u64.high %v2925_v56, %v521_v47, %v2997_v54  ;;  %v4641_v7 = vand.u32 2147483647, %v2911_v42  ;;  %v203_v9 = vand.u32 2147483648, %v2908_v39 }
  0x47   : > { %v3001_v63 = vshrl.u32 %v741_v46, 30  ;;  %v529_v57 = vmul.u32 %v2925_v56, %v513_v40  ;;  %v796_v10 = vshrl.u32 %v795_v61, 5  ;;  %v3008_v11 = vshll.u32 %v791_v59, 8 }
  0x48   : > { %v3011_v53 = vadd.s32 4294967169, %v2937_v8  ;;  %v532_v60 = vadd.s32 1, %v2993_v52  ;;  %v798_v13 = vsub.s32 32, %v797_v5  ;;  %v800_v15 = vshll.u32 %v4653_v62, %v797_v5 }
  0x49   : > { %v743_v12 = vshll.u32 %v3001_v63, 30  ;;  %vm531_vm4 = vc.u32 %v2998_v55, %v2992_v49  ;;  %v803_v56 = vshll.u32 %v4651_v0, %v797_v5  ;;  %v806_v17 = vshll.u32 %v4647_v2, %v797_v5 }
  0x4a   : > { %v533_v8 = vsel %vm531_vm4, %v532_v60, %v2993_v52  ;;  %v799_v18 = vshrl.u32 %v4653_v62, %v798_v13  ;;  %v801_v21 = vshrl.u32 %v4651_v0, %v798_v13  ;;  %v804_v27 = vshrl.u32 %v4647_v2, %v798_v13 }
  0x4b   : > { %v3024_v59 = vsub.s32 %v740_v34, %v743_v12  ;;  %v534_v25 = vadd.s32 %v533_v8, %v529_v57  ;;  %v807_v58 = vshrl.u32 %v4645_v4, %v798_v13  ;;  %v809_v22 = vshll.u32 %v4645_v4, %v797_v5 }
  0x4c   : > { %v802_v29 = vor.u32 %v801_v21, %v800_v15  ;;  %v810_v44 = vshrl.u32 %v4649_v6, %v798_v13  ;;  %v812_v31 = vshll.u32 %v4649_v6, %v797_v5  ;;  %v805_v34 = vor.u32 %v804_v27, %v803_v56 }
  0x4d   : > { %v746_v51 = vsub.s32 0, %v3024_v59  ;;  %v535_v32 = vadd.s32 536870912, %v534_v25  ;;  %v808_v35 = vor.u32 %v807_v58, %v806_v17  ;;  %v813_v36 = vshrl.u32 %v4642_v14, %v798_v13 }
  0x4e   : > { %v811_v40 = vor.u32 %v810_v44, %v809_v22  ;;  %vm815_vm7 = vcmp.lt.s32.totalorder %v796_v10, 1  ;;  %vm816_vm8 = vcmp.lt.s32.totalorder %v796_v10, 2  ;;  %vm817_vm9 = vcmp.lt.s32.totalorder %v796_v10, 3 }
  0x4f   : > { %v2441_v38 = vmin.u32 %v746_v51, %v3024_v59  ;;  %v3039_v41 = vshrl.u32 %v535_v32, 30  ;;  %v814_v45 = vor.u32 %v813_v36, %v812_v31  ;;  %vm818_vm10 = vcmp.lt.s32.totalorder %v796_v10, 4 }
  0x50   : > { %v819_v47 = vsel %vm815_vm7, %v799_v18, %v802_v29  ;;  %v820_v52 = vsel %vm818_vm10, %v808_v35, 2102212464  ;;  %v823_v54 = vsel %vm815_vm7, %v802_v29, %v805_v34  ;;  %v824_v57 = vsel %vm818_vm10, %v811_v40, 920167782 }
  0x51   : > { %v748_v46 = vclz %v2441_v38  ;;  %v537_v61 = vshll.u32 %v3039_v41, 30  ;;  %v821_v5 = vsel %vm817_vm9, %v805_v34, %v820_v52  ;;  %v827_v12 = vsel %vm815_vm7, %v805_v34, %v808_v35 }
  0x52   : > { %vm202_vm11 = vcmp.eq.f32.partialorder %v2908_v39, 0.0  ;;  %v825_v13 = vsel %vm817_vm9, %v808_v35, %v824_v57  ;;  %v828_v15 = vsel %vm818_vm10, %v814_v45, 1326507024  ;;  %v192_v56 = vmul.f32 %v2954_v50, %v2914_v43 }
  0x53   : > { %v2442_v60 = vadd.s32 4294967294, %v748_v46  ;;  %v3047_v17 = vsub.s32 %v534_v25, %v537_v61  ;;  %v822_v8 = vsel %vm816_vm8, %v819_v47, %v821_v5  ;;  %v826_v18 = vsel %vm816_vm8, %v823_v54, %v825_v13 }
  0x54   : > { %v829_v21 = vsel %vm817_vm9, %v811_v40, %v828_v15  ;;  %v3054_v58 = vmul.u32.u64.low %v3008_v11, %v826_v18  ;;  %v3055_v22 = vmul.u32.u64.high %v3008_v11, %v826_v18, %v3054_v58  ;;  %v736_v44 = vadd.s32 %v2965_v3, %v2962_v1 }
  0x55   : > { %vm2443_vm12 = vcmp.lt.s32.totalorder %v2442_v60, 0  ;;  %v830_v27 = vsel %vm816_vm8, %v827_v12, %v829_v21  ;;  %v540_v29 = vsub.s32 0, %v3047_v17  ;;  %vm195_vm13 = vcmp.eq.f32.partialorder %v2914_v43, 0.0 }
  0x56   : > { %v751_v51 = vsel %vm2443_vm12, 0, %v2442_v60  ;;  %v3060_v50 = vmul.u32.u64.low %v3008_v11, %v830_v27  ;;  %v3061_v25 = vmul.u32.u64.high %v3008_v11, %v830_v27, %v3060_v50  ;;  %v196_v10 = vand.u32 2147483648, %v2914_v43  ;;  %v3095_v60 = vld [vmem:[%s2870_s15 + $0x38] sm:$0xff] }
  0x57   : > { %v756_v31 = vsub.s32 4294967266, %v751_v51  ;;  %v2433_v32 = vmin.u32 %v540_v29, %v3047_v17  ;;  %v838_v34 = vmul.u32 %v3008_v11, %v822_v8  ;;  %v584_v35 = vand.u32 8388607, %v4641_v7 }
  0x58   : > { %v587_v36 = vadd.s32 1, %v3011_v53  ;;  %v752_v38 = vsub.s32 32, %v751_v51  ;;  %v841_v40 = vadd.s32 1, %v3055_v22  ;;  %v201_v1 = vsel %vm200_vm5, %v2908_v39, %v3022_v48 }
  0x59   : > { %v194_v3 = vsel %vm193_vm6, %v2914_v43, %v192_v56  ;;  %v757_v45 = vadd.s32 127, %v756_v31  ;;  %v542_v11 = vclz %v2433_v32  ;;  %vm840_vm14 = vc.u32 %v3061_v25, %v3054_v58 }
  0x5a   : > { %vm588_vm15 = vcmp.gt.s32.totalorder %v587_v36, 0  ;;  %v842_v53 = vsel %vm840_vm14, %v841_v40, %v3055_v22  ;;  %v753_v47 = vshll.u32 %v3024_v59, %v751_v51  ;;  %v754_v48 = vshrl.u32 %v736_v44, %v752_v38 }
  0x5b   : > { %v589_v46 = vsel %vm588_vm15, %v587_v36, 0  ;;  %v2434_v52 = vadd.s32 4294967294, %v542_v11  ;;  %v843_v54 = vadd.s32 %v842_v53, %v838_v34  ;;  %v585_v5 = vor.u32 8388608, %v584_v35 }
  0x5c   : > { %v591_v61 = vand.u32 31, %v589_v46  ;;  %v3088_v57 = vsel %vm202_vm11, %v203_v9, %v201_v1  ;;  %v3092_v12 = vsel %vm195_vm13, %v196_v10, %v194_v3  ;;  %v758_v13 = vshll.u32 %v757_v45, 23 }
  0x5d   : > { %4765 = vst [vmem:[#allocation5_spill] sm:$0xff] %v3088_v57  ;;  %4766 = vst [vmem:[#allocation6_spill] sm:$0xff] %v3092_v12  ;;  %vm2435_vm0 = vcmp.lt.s32.totalorder %v2434_v52, 0  ;;  %v844_v59 = vadd.s32 536870912, %v843_v54  ;;  %303 = vperm.xlu1 %2657, %v3088_v57   ;;  %298 = vperm.xlu0 %2656, %v3092_v12   ;;  %2710 = vrsqrt.f32 %v3095_v60  ;;  %v530_v43 = vadd.s32 %v2992_v49, %v2998_v55 }
  0x5e   : > { %v592_v15 = vsub.s32 32, %v591_v61  ;;  %v545_v56 = vsel %vm2435_vm0, 0, %v2434_v52  ;;  %v594_v39 = vshll.u32 %v4653_v62, %v591_v61  ;;  %v597_v21 = vshll.u32 %v4651_v0, %v591_v61 }
  0x5f   : > { %v550_v8 = vsub.s32 4294967266, %v545_v56  ;;  %v3099_v18 = vshrl.u32 %v844_v59, 30  ;;  %v755_v22 = vor.u32 %v754_v48, %v753_v47  ;;  %v759_v51 = vor.u32 4788187, %v758_v13 }
  0x60   : > { %v595_v9 = vshrl.u32 %v4651_v0, %v592_v15  ;;  %v598_v27 = vshrl.u32 %v4647_v2, %v592_v15  ;;  %v3109_v50 = vshll.u32 %v585_v5, 8  ;;  %v590_v44 = vshrl.u32 %v589_v46, 5 }
  0x61   : > { %v846_v29 = vshll.u32 %v3099_v18, 30  ;;  %v600_v31 = vshll.u32 %v4647_v2, %v591_v61  ;;  %v601_v10 = vshrl.u32 %v4645_v4, %v592_v15  ;;  %v603_v32 = vshll.u32 %v4645_v4, %v591_v61 }
  0x62   : > { %v546_v49 = vsub.s32 32, %v545_v56  ;;  %v551_v55 = vadd.s32 127, %v550_v8  ;;  %v596_v35 = vor.u32 %v595_v9, %v594_v39  ;;  %v599_v36 = vor.u32 %v598_v27, %v597_v21 }
  0x63   : > { %v3114_v34 = vsub.s32 %v843_v54, %v846_v29  ;;  %v604_v38 = vshrl.u32 %v4649_v6, %v592_v15  ;;  %v606_v40 = vshll.u32 %v4649_v6, %v591_v61  ;;  %v607_v1 = vshrl.u32 %v4642_v14, %v592_v15 }
  0x64   : > { %v760_v3 = vand.u32 2147483647, %v759_v51  ;;  %v762_v45 = vcvt.s32.f32 %v755_v22  ;;  %v593_v53 = vshrl.u32 %v4653_v62, %v592_v15  ;;  %v602_v46 = vor.u32 %v601_v10, %v600_v31 }
  0x65   : > { %v849_v11 = vsub.s32 0, %v3114_v34  ;;  %v605_v47 = vor.u32 %v604_v38, %v603_v32  ;;  %v608_v52 = vor.u32 %v607_v1, %v606_v40  ;;  %vm609_vm1 = vcmp.lt.s32.totalorder %v590_v44, 1 }
  0x66   : > { %v547_v54 = vshll.u32 %v3047_v17, %v545_v56  ;;  %v548_v48 = vshrl.u32 %v530_v43, %v546_v49  ;;  %v552_v5 = vshll.u32 %v551_v55, 23  ;;  %vm610_vm2 = vcmp.lt.s32.totalorder %v590_v44, 2 }
  0x67   : > { %v2445_v13 = vmin.u32 %v849_v11, %v3114_v34  ;;  %vm611_vm3 = vcmp.lt.s32.totalorder %v590_v44, 3  ;;  %vm612_vm4 = vcmp.lt.s32.totalorder %v590_v44, 4  ;;  %v617_v61 = vsel %vm609_vm1, %v596_v35, %v599_v36 }
  0x68   : > { %v613_v8 = vsel %vm609_vm1, %v593_v53, %v596_v35  ;;  %v614_v39 = vsel %vm612_vm4, %v602_v46, 2102212464  ;;  %v618_v9 = vsel %vm612_vm4, %v605_v47, 920167782  ;;  %v621_v27 = vsel %vm609_vm1, %v599_v36, %v602_v46 }
  0x69   : > { %v851_v59 = vclz %v2445_v13  ;;  %v615_v15 = vsel %vm611_vm3, %v599_v36, %v614_v39  ;;  %v619_v21 = vsel %vm611_vm3, %v602_v46, %v618_v9  ;;  %v622_v22 = vsel %vm612_vm4, %v608_v52, 1326507024 }
  0x6a   : > { %v763_v51 = vmul.f32 %v762_v45, %v760_v3  ;;  %v549_v17 = vor.u32 %v548_v48, %v547_v54  ;;  %v620_v43 = vsel %vm610_vm2, %v617_v61, %v619_v21  ;;  %v2711_v29 = vpop.eup %2710  ;;  %v553_v31 = vor.u32 4788187, %v552_v5 }
  0x6b   : > { %v2446_v56 = vadd.s32 4294967294, %v851_v59  ;;  %v623_v10 = vsel %vm611_vm3, %v605_v47, %v622_v22  ;;  %v3128_v32 = vmul.u32.u64.low %v3109_v50, %v620_v43  ;;  %v3129_v49 = vmul.u32.u64.high %v3109_v50, %v620_v43, %v3128_v32 }
  0x6c   : > { %v616_v55 = vsel %vm610_vm2, %v613_v8, %v615_v15  ;;  %v624_v35 = vsel %vm610_vm2, %v621_v27, %v623_v10  ;;  %v764_v1 = vxor.u32 2147483648, %v763_v51  ;;  %v556_v3 = vcvt.s32.f32 %v549_v17 }
  0x6d   : > { %vm2447_vm5 = vcmp.lt.s32.totalorder %v2446_v56, 0  ;;  %v3135_v38 = vmul.u32.u64.low %v3109_v50, %v624_v35  ;;  %v3136_v40 = vmul.u32.u64.high %v3109_v50, %v624_v35, %v3135_v38  ;;  %v213_v45 = vmul.f32 %v2711_v29, %v3095_v60 }
  0x6e   : > { %v854_v36 = vsel %vm2447_vm5, 0, %v2446_v56  ;;  %vm214_vm6 = vcmp.eq.f32.partialorder %v3095_v60, inf  ;;  %v554_v11 = vand.u32 2147483647, %v553_v31  ;;  %v632_v53 = vmul.u32 %v3109_v50, %v616_v55  ;;  %v3187_v31 = vld [vmem:[%s2870_s15 + $0x30] sm:$0xff] }
  0x6f   : > { %v635_v46 = vadd.s32 1, %v3129_v49  ;;  %v3143_v47 = vmul.f32 0.62831855, %v3088_v57  ;;  %vm4720_vm7 = vcmp.lt.s32.totalorder %v2880_v19, 0  ;;  %v839_v44 = vadd.s32 %v3054_v58, %v3061_v25 }
  0x70   : > { %v855_v52 = vsub.s32 32, %v854_v36  ;;  %v859_v54 = vsub.s32 4294967266, %v854_v36  ;;  %vm634_vm8 = vc.u32 %v3136_v40, %v3128_v32  ;;  %v3152_v5 = vmul.f32 0.62831855, %v3092_v12 }
  0x71   : > { %4767 = vst [vmem:[#allocation7_spill] sm:$0xff] %v3143_v47  ;;  %v4640_v48 = vand.u32 2147483647, %v3143_v47  ;;  %vm216_vm9 = vcmp.eq.f32.partialorder %v3095_v60, 0.0  ;;  %vm3157_vm10 = vcmp.le.f32.partialorder %v680_v26, 0.7853982  ;;  %v636_v58 = vsel %vm634_vm8, %v635_v46, %v3129_v49 }
  0x72   : > { %4768 = vst [vmem:[#allocation8_spill] sm:$0xff] %v3152_v5  ;;  %v992_v25 = vand.u32 2139095040, %v3143_v47  ;;  %v217_v13 = vand.u32 2147483648, %v3095_v60  ;;  %v765_v61 = vsel %vm4720_vm7, %v764_v1, %v763_v51  ;;  %v557_v59 = vmul.f32 %v556_v3, %v554_v11 }
  0x73   : > { %v637_v8 = vadd.s32 %v636_v58, %v632_v53  ;;  %v215_v39 = vsel %vm214_vm6, %v3095_v60, %v213_v45  ;;  %v856_v26 = vshll.u32 %v3114_v34, %v854_v36  ;;  %v857_v9 = vshrl.u32 %v839_v44, %v855_v52 }
  0x74   : > { %v860_v15 = vadd.s32 127, %v859_v54  ;;  %v993_v21 = vshrl.u32 %v992_v25, 23  ;;  %v996_v22 = vand.u32 8388607, %v4640_v48  ;;  %v889_v17 = vand.u32 2139095040, %v3152_v5 }
  0x75   : > { %v638_v27 = vadd.s32 536870912, %v637_v8  ;;  %v3175_v51 = vsel %vm216_vm9, %v217_v13, %v215_v39  ;;  %v3180_v43 = vsel %vm3157_vm10, %v2880_v19, %v765_v61  ;;  %vm4709_vm11 = vcmp.lt.s32.totalorder %v2886_v23, 0 }
  0x76   : > { %v2452_v56 = vadd.s32 4294967169, %v993_v21  ;;  %4771 = vst [vmem:[#allocation9_spill] sm:$0xff] %v3175_v51  ;;  %v890_v29 = vshrl.u32 %v889_v17, 23  ;;  %313 = vperm.xlu1 %2657, %v3175_v51   ;;  %v558_v10 = vxor.u32 2147483648, %v557_v59  ;;  %v3189_v49 = vor.u32 %v857_v9, %v856_v26 }
  0x77   : > { %v3183_v34 = vshrl.u32 %v638_v27, 30  ;;  %v861_v60 = vshll.u32 %v860_v15, 23  ;;  %v997_v36 = vor.u32 8388608, %v996_v22  ;;  %v4639_v38 = vand.u32 2147483647, %v3152_v5 }
  0x78   : > { %v999_v55 = vadd.s32 1, %v2452_v56  ;;  %v2448_v1 = vadd.s32 4294967169, %v890_v29  ;;  %2712 = vrsqrt.f32 %v3187_v31  ;;  %v210_v3 = vand.u32 2147483648, %v3187_v31 }
  0x79   : > { %4772 = vst [vmem:[#allocation10_spill] sm:$0xff] %v3183_v34  ;;  %v640_v35 = vshll.u32 %v3183_v34, 30  ;;  %2714 = vcosq.f32 %v3180_v43  ;;  %v3200_v46 = vsel %vm4709_vm11, %v558_v10, %v557_v59  ;;  %v3202_v44 = vor.u32 4788187, %v861_v60 }
  0x7a   : > { %vm1000_vm12 = vcmp.gt.s32.totalorder %v999_v55, 0  ;;  %v896_v53 = vadd.s32 1, %v2448_v1  ;;  %v633_v52 = vadd.s32 %v3128_v32, %v3136_v40  ;;  %v865_v58 = vcvt.s32.f32 %v3189_v49 }
  0x7b   : > { %v3196_v45 = vsub.s32 %v637_v8, %v640_v35  ;;  %v1001_v11 = vsel %vm1000_vm12, %v999_v55, 0  ;;  %v3208_v13 = vshll.u32 %v997_v36, 8  ;;  %v3212_v61 = vand.u32 8388607, %v4639_v38 }
  0x7c   : > { %v1003_v54 = vand.u32 31, %v1001_v11  ;;  %v1002_v8 = vshrl.u32 %v1001_v11, 5  ;;  %vm897_vm13 = vcmp.gt.s32.totalorder %v896_v53, 0  ;;  %vm3221_vm14 = vcmp.le.f32.partialorder %v474_v28, 0.7853982 }
  0x7d   : > { %v643_v25 = vsub.s32 0, %v3196_v45  ;;  %vm207_vm6 = vcmp.eq.f32.partialorder %v3187_v31, inf  ;;  %vm209_vm8 = vcmp.eq.f32.partialorder %v3187_v31, 0.0  ;;  %vm4719_vm9 = vcmp.lt.s32.totalorder %v2895_v30, 0 }
  0x7e   : > { %v1004_v39 = vsub.s32 32, %v1003_v54  ;;  %v1006_v59 = vshll.u32 %v4653_v62, %v1003_v54  ;;  %v1009_v26 = vshll.u32 %v4651_v0, %v1003_v54  ;;  %v1012_v32 = vshll.u32 %v4647_v2, %v1003_v54 }
  0x7f   : > { %v2437_v9 = vmin.u32 %v643_v25, %v3196_v45  ;;  %v1015_v40 = vshll.u32 %v4645_v4, %v1003_v54  ;;  %v1018_v10 = vshll.u32 %v4649_v6, %v1003_v54  ;;  %vm1021_vm15 = vcmp.lt.s32.totalorder %v1002_v8, 1 }
  0x80   : > { %v1005_v21 = vshrl.u32 %v4653_v62, %v1004_v39  ;;  %v1007_v27 = vshrl.u32 %v4651_v0, %v1004_v39  ;;  %v1010_v22 = vshrl.u32 %v4647_v2, %v1004_v39  ;;  %v1013_v17 = vshrl.u32 %v4645_v4, %v1004_v39 }
  0x81   : > { %v645_v56 = vclz %v2437_v9  ;;  %v1016_v29 = vshrl.u32 %v4649_v6, %v1004_v39  ;;  %v1019_v49 = vshrl.u32 %v4642_v14, %v1004_v39  ;;  %vm1022_vm0 = vcmp.lt.s32.totalorder %v1002_v8, 2 }
  0x82   : > { %v1008_v60 = vor.u32 %v1007_v27, %v1006_v59  ;;  %v1011_v28 = vor.u32 %v1010_v22, %v1009_v26  ;;  %v1014_v55 = vor.u32 %v1013_v17, %v1012_v32  ;;  %vm1023_vm1 = vcmp.lt.s32.totalorder %v1002_v8, 3 }
  0x83   : > { %v2438_v35 = vadd.s32 4294967294, %v645_v56  ;;  %v1017_v36 = vor.u32 %v1016_v29, %v1015_v40  ;;  %v1020_v1 = vor.u32 %v1019_v49, %v1018_v10  ;;  %vm1024_vm2 = vcmp.lt.s32.totalorder %v1002_v8, 4 }
  0x84   : > { %v1025_v11 = vsel %vm1021_vm15, %v1005_v21, %v1008_v60  ;;  %v1029_v25 = vsel %vm1021_vm15, %v1008_v60, %v1011_v28  ;;  %v1026_v9 = vsel %vm1024_vm2, %v1014_v55, 2102212464  ;;  %v1033_v48 = vsel %vm1021_vm15, %v1011_v28, %v1014_v55 }
  0x85   : > { %vm2439_vm3 = vcmp.lt.s32.totalorder %v2438_v35, 0  ;;  %v1030_v38 = vsel %vm1024_vm2, %v1017_v36, 920167782  ;;  %v1027_v54 = vsel %vm1023_vm1, %v1011_v28, %v1026_v9  ;;  %v1034_v59 = vsel %vm1024_vm2, %v1020_v1, 1326507024  ;;  %v2713_v26 = vpop.eup %2712 }
  0x86   : > { %v648_v7 = vsel %vm2439_vm3, 0, %v2438_v35  ;;  %v1031_v39 = vsel %vm1023_vm1, %v1014_v55, %v1030_v38  ;;  %v863_v32 = vand.u32 2147483647, %v3202_v44  ;;  %v894_v27 = vor.u32 8388608, %v3212_v61  ;;  %v3239_v22 = vpop.eup %2714  ;;  %v3248_v61 = vld [vmem:[%s2870_s15 + $0x48] sm:$0xff] }
  0x87   : > { %v649_v40 = vsub.s32 32, %v648_v7  ;;  %v3237_v21 = vmul.f32 0.62831855, %v3175_v51  ;;  %v650_v17 = vshll.u32 %v3196_v45, %v648_v7  ;;  %v1032_v56 = vsel %vm1022_vm0, %v1029_v25, %v1031_v39 }
  0x88   : > { %v1035_v29 = vsel %vm1023_vm1, %v1017_v36, %v1034_v59  ;;  %v898_v38 = vsel %vm897_vm13, %v896_v53, 0  ;;  %v653_v49 = vsub.s32 4294967266, %v648_v7  ;;  %v1028_v44 = vsel %vm1022_vm0, %v1025_v11, %v1027_v54 }
  0x89   : > { %4775 = vst [vmem:[#allocation11_spill] sm:$0xff] %v3237_v21  ;;  %v651_v10 = vshrl.u32 %v633_v52, %v649_v40  ;;  %v1036_v60 = vsel %vm1022_vm0, %v1033_v48, %v1035_v29  ;;  %v3255_v45 = vmul.u32.u64.low %v3208_v13, %v1032_v56  ;;  %v3256_v35 = vmul.u32.u64.high %v3208_v13, %v1032_v56, %v3255_v45 }
  0x8a   : > { %v3251_v28 = vmul.u32.u64.low %v3208_v13, %v1036_v60  ;;  %v3252_v55 = vmul.u32.u64.high %v3208_v13, %v1036_v60, %v3251_v28  ;;  %v3263_v7 = vsel %vm3221_vm14, %v2886_v23, %v3200_v46  ;;  %v3265_v53 = vshrl.u32 %v898_v38, 5 }
  0x8b   : > { %v900_v48 = vand.u32 31, %v898_v38  ;;  %v1198_v52 = vand.u32 2139095040, %v3237_v21  ;;  %v3268_v8 = vmul.f32 %v865_v58, %v863_v32  ;;  %v3270_v36 = vshll.u32 %v894_v27, 8 }
  0x8c   : > { %v206_v1 = vmul.f32 %v2713_v26, %v3187_v31  ;;  %2716 = vrsqrt.f32 %v3248_v61  ;;  %v654_v11 = vadd.s32 127, %v653_v49  ;;  %v1044_v25 = vmul.u32 %v3208_v13, %v1028_v44 }
  0x8d   : > { %v901_v9 = vsub.s32 32, %v900_v48  ;;  %v903_v46 = vshll.u32 %v4653_v62, %v900_v48  ;;  %v3276_v54 = vor.u32 %v651_v10, %v650_v17  ;;  %vm1046_vm4 = vc.u32 %v3252_v55, %v3255_v45 }
  0x8e   : > { %v1047_v58 = vadd.s32 1, %v3256_v35  ;;  %v906_v39 = vshll.u32 %v4651_v0, %v900_v48  ;;  %vm918_vm5 = vcmp.lt.s32.totalorder %v3265_v53, 1  ;;  %v1199_v32 = vshrl.u32 %v1198_v52, 23 }
  0x8f   : > { %v904_v59 = vshrl.u32 %v4651_v0, %v901_v9  ;;  %v907_v26 = vshrl.u32 %v4647_v2, %v901_v9  ;;  %v909_v40 = vshll.u32 %v4647_v2, %v900_v48  ;;  %v910_v27 = vshrl.u32 %v4645_v4, %v901_v9 }
  0x90   : > { %v1048_v13 = vsel %vm1046_vm4, %v1047_v58, %v3256_v35  ;;  %v912_v17 = vshll.u32 %v4645_v4, %v900_v48  ;;  %v902_v29 = vshrl.u32 %v4653_v62, %v901_v9  ;;  %v913_v44 = vshrl.u32 %v4649_v6, %v901_v9 }
  0x91   : > { %v1049_v56 = vadd.s32 %v1048_v13, %v1044_v25  ;;  %v905_v38 = vor.u32 %v904_v59, %v903_v46  ;;  %v908_v10 = vor.u32 %v907_v26, %v906_v39  ;;  %v911_v49 = vor.u32 %v910_v27, %v909_v40 }
  0x92   : > { %v915_v60 = vshll.u32 %v4649_v6, %v900_v48  ;;  %v916_v28 = vshrl.u32 %v4642_v14, %v901_v9  ;;  %v655_v35 = vshll.u32 %v654_v11, 23  ;;  %vm919_vm12 = vcmp.lt.s32.totalorder %v3265_v53, 2 }
  0x93   : > { %v1050_v52 = vadd.s32 536870912, %v1049_v56  ;;  %vm921_vm13 = vcmp.lt.s32.totalorder %v3265_v53, 4  ;;  %vm3300_vm15 = vcmp.le.f32.partialorder %v783_v37, 0.7853982  ;;  %v914_v46 = vor.u32 %v913_v44, %v912_v17 }
  0x94   : > { %v917_v58 = vor.u32 %v916_v28, %v915_v60  ;;  %vm920_vm0 = vcmp.lt.s32.totalorder %v3265_v53, 3  ;;  %v923_v39 = vsel %vm921_vm13, %v911_v49, 2102212464  ;;  %v922_v11 = vsel %vm918_vm5, %v902_v29, %v905_v38 }
  0x95   : > { %v3305_v48 = vshrl.u32 %v1050_v52, 30  ;;  %v926_v9 = vsel %vm918_vm5, %v905_v38, %v908_v10  ;;  %v930_v59 = vsel %vm918_vm5, %v908_v10, %v911_v49  ;;  %v924_v37 = vsel %vm920_vm0, %v908_v10, %v923_v39 }
  0x96   : > { %v927_v26 = vsel %vm921_vm13, %v914_v46, 920167782  ;;  %v931_v13 = vsel %vm921_vm13, %v917_v58, 1326507024  ;;  %v2460_v40 = vadd.s32 4294967169, %v1199_v32  ;;  %v867_v28 = vxor.u32 2147483648, %v3268_v8 }
  0x97   : > { %4778 = vst [vmem:[#allocation12_spill] sm:$0xff] %v3305_v48  ;;  %v656_v27 = vor.u32 4788187, %v655_v35  ;;  %v1052_v17 = vshll.u32 %v3305_v48, 30  ;;  %v928_v44 = vsel %vm920_vm0, %v911_v49, %v927_v26  ;;  %v932_v60 = vsel %vm920_vm0, %v914_v46, %v931_v13 }
  0x98   : > { %v929_v29 = vsel %vm919_vm12, %v926_v9, %v928_v44  ;;  %v933_v38 = vsel %vm919_vm12, %v930_v59, %v932_v60  ;;  %v4644_v52 = vand.u32 2147483647, %v3237_v21  ;;  %v925_v32 = vsel %vm919_vm12, %v922_v11, %v924_v37 }
  0x99   : > { %v2717_v14 = vpop.eup %2716  ;;  %v3320_v10 = vsub.s32 %v1049_v56, %v1052_v17  ;;  %v3325_v35 = vmul.u32.u64.low %v3270_v36, %v933_v38  ;;  %v3326_v49 = vmul.u32.u64.high %v3270_v36, %v933_v38, %v3325_v35  ;;  %v1205_v39 = vadd.s32 1, %v2460_v40 }
  0x9a   : > { %v3329_v46 = vmul.u32.u64.low %v3270_v36, %v929_v29  ;;  %v3330_v58 = vmul.u32.u64.high %v3270_v36, %v929_v29, %v3329_v46  ;;  %v208_v9 = vsel %vm207_vm6, %v3187_v31, %v206_v1  ;;  %v657_v59 = vand.u32 2147483647, %v656_v27 }
  0x9b   : > { %v659_v56 = vcvt.s32.f32 %v3276_v54  ;;  %v1055_v53 = vsub.s32 0, %v3320_v10  ;;  %v3342_v11 = vsel %vm209_vm8, %v210_v3, %v208_v9  ;;  %2718 = vsinq.f32 %v3180_v43 }
  0x9c   : > { %4779 = vst [vmem:[#allocation13_spill] sm:$0xff] %v3342_v11  ;;  %v868_v37 = vsel %vm4719_vm9, %v867_v28, %v3268_v8  ;;  %v1202_v1 = vand.u32 8388607, %v4644_v52  ;;  %vm1206_vm1 = vcmp.gt.s32.totalorder %v1205_v39, 0  ;;  %308 = vperm.xlu0 %2656, %v3342_v11   ;;  %v941_v26 = vmul.u32 %v3270_v36, %v925_v32 }
  0x9d   : > { %v2453_v54 = vmin.u32 %v1055_v53, %v3320_v10  ;;  %vm943_vm2 = vc.u32 %v3326_v49, %v3329_v46  ;;  %v1207_v31 = vsel %vm1206_vm1, %v1205_v39, 0  ;;  %2720 = vcosq.f32 %v3263_v7 }
  0x9e   : > { %v944_v43 = vadd.s32 1, %v3330_v58  ;;  %v1209_v3 = vand.u32 31, %v1207_v31  ;;  %v3360_v8 = vsel %vm3300_vm15, %v2895_v30, %v868_v37  ;;  %v3362_v13 = vmul.f32 %v659_v56, %v657_v59 }
  0x9f   : > { %v1045_v40 = vadd.s32 %v3255_v45, %v3252_v55  ;;  %v1057_v36 = vclz %v2453_v54  ;;  %v1203_v17 = vor.u32 8388608, %v1202_v1  ;;  %v3377_v37 = vmul.f32 0.62831855, %v3342_v11 }
  0xa0   : > { %v945_v27 = vsel %vm943_vm2, %v944_v43, %v3330_v58  ;;  %v1210_v44 = vsub.s32 32, %v1209_v3  ;;  %v1212_v60 = vshll.u32 %v4653_v62, %v1209_v3  ;;  %v1215_v38 = vshll.u32 %v4651_v0, %v1209_v3 }
  0xa1   : > { %v2454_v28 = vadd.s32 4294967294, %v1057_v36  ;;  %v946_v29 = vadd.s32 %v945_v27, %v941_v26  ;;  %v1218_v32 = vshll.u32 %v4647_v2, %v1209_v3  ;;  %v1221_v55 = vshll.u32 %v4645_v4, %v1209_v3 }
  0xa2   : > { %v1213_v35 = vshrl.u32 %v4651_v0, %v1210_v44  ;;  %v1216_v39 = vshrl.u32 %v4647_v2, %v1210_v44  ;;  %v1219_v9 = vshrl.u32 %v4645_v4, %v1210_v44  ;;  %v1208_v58 = vshrl.u32 %v1207_v31, 5 }
  0xa3   : > { %vm2455_vm3 = vcmp.lt.s32.totalorder %v2454_v28, 0  ;;  %v947_v45 = vadd.s32 536870912, %v946_v29  ;;  %v1222_v59 = vshrl.u32 %v4649_v6, %v1210_v44  ;;  %v1224_v53 = vshll.u32 %v4649_v6, %v1209_v3 }
  0xa4   : > { %v1060_v56 = vsel %vm2455_vm3, 0, %v2454_v28  ;;  %v227_v1 = vmul.f32 %v2717_v14, %v3248_v61  ;;  %v1214_v43 = vor.u32 %v1213_v35, %v1212_v60  ;;  %v3382_v36 = vshll.u32 %v1203_v17, 8 }
  0xa5   : > { %v1065_v54 = vsub.s32 4294967266, %v1060_v56  ;;  %v3380_v26 = vshrl.u32 %v947_v45, 30  ;;  %vm228_vm4 = vcmp.eq.f32.partialorder %v3248_v61, inf  ;;  %v1217_v27 = vor.u32 %v1216_v39, %v1215_v38 }
  0xa6   : > { %v1220_v31 = vor.u32 %v1219_v9, %v1218_v32  ;;  %v1223_v52 = vor.u32 %v1222_v59, %v1221_v55  ;;  %v4781_v4 = vmov 1326507024   ;;  %v1061_v2 = vsub.s32 32, %v1060_v56 }
  0xa7   : > { %4780 = vst [vmem:[#allocation14_spill] sm:$0xff] %v3380_v26  ;;  %v1225_v28 = vshrl.u32 %v4781_v4, %v1210_v44  ;;  %v949_v3 = vshll.u32 %v3380_v26, 30  ;;  %vm1227_vm5 = vcmp.lt.s32.totalorder %v1208_v58, 1  ;;  %v1211_v14 = vshrl.u32 %v4653_v62, %v1210_v44 }
  0xa8   : > { %vm1228_vm6 = vcmp.lt.s32.totalorder %v1208_v58, 2  ;;  %vm1230_vm8 = vcmp.lt.s32.totalorder %v1208_v58, 4  ;;  %v3389_v17 = vpop.eup %2718  ;;  %vm4687_vm12 = vcmp.lt.s32.totalorder %v2911_v42, 0  ;;  %v1066_v60 = vadd.s32 127, %v1065_v54 }
  0xa9   : > { %v1226_v45 = vor.u32 %v1225_v28, %v1224_v53  ;;  %v3392_v38 = vsub.s32 %v946_v29, %v949_v3  ;;  %vm1229_vm13 = vcmp.lt.s32.totalorder %v1208_v58, 3  ;;  %v1232_v32 = vsel %vm1230_vm8, %v1220_v31, 2102212464 }
  0xaa   : > { %v1235_v35 = vsel %vm1227_vm5, %v1214_v43, %v1217_v27  ;;  %v1236_v39 = vsel %vm1230_vm8, %v1223_v52, 920167782  ;;  %v1239_v9 = vsel %vm1227_vm5, %v1217_v27, %v1220_v31  ;;  %v3396_v59 = vpop.eup %2720  ;;  %v1062_v44 = vshll.u32 %v3320_v10, %v1060_v56 }
  0xab   : > { %v1240_v55 = vsel %vm1230_vm8, %v1226_v45, 1326507024  ;;  %v1063_v53 = vshrl.u32 %v1045_v40, %v1061_v2  ;;  %v952_v28 = vsub.s32 0, %v3392_v38  ;;  %v1095_v0 = vand.u32 2139095040, %v3377_v37 }
  0xac   : > { %v1231_v29 = vsel %vm1227_vm5, %v1211_v14, %v1214_v43  ;;  %v1233_v54 = vsel %vm1229_vm13, %v1217_v27, %v1232_v32  ;;  %v1237_v3 = vsel %vm1229_vm13, %v1220_v31, %v1236_v39  ;;  %v1241_v62 = vsel %vm1229_vm13, %v1223_v52, %v1240_v55 }
  0xad   : > { %v1067_v6 = vshll.u32 %v1066_v60, 23  ;;  %v2449_v57 = vmin.u32 %v952_v28, %v3392_v38  ;;  %v1238_v48 = vsel %vm1228_vm6, %v1235_v35, %v1237_v3  ;;  %v1242_v45 = vsel %vm1228_vm6, %v1239_v9, %v1241_v62 }
  0xae   : > { %v3406_v12 = vmul.u32.u64.low %v3382_v36, %v1242_v45  ;;  %v3407_v10 = vmul.u32.u64.high %v3382_v36, %v1242_v45, %v3406_v12  ;;  %v3410_v2 = vmul.u32.u64.low %v3382_v36, %v1238_v48  ;;  %v3411_v40 = vmul.u32.u64.high %v3382_v36, %v1238_v48, %v3410_v2 }
  0xaf   : > { %v661_v56 = vxor.u32 2147483648, %v3362_v13  ;;  %v954_v43 = vclz %v2449_v57  ;;  %v1234_v52 = vsel %vm1228_vm6, %v1231_v29, %v1233_v54  ;;  %v1096_v27 = vshrl.u32 %v1095_v0, 23 }
  0xb0   : > { %v1064_v31 = vor.u32 %v1063_v53, %v1062_v44  ;;  %v229_v62 = vsel %vm228_vm4, %v3248_v61, %v227_v1  ;;  %vm230_vm0 = vcmp.eq.f32.partialorder %v3248_v61, 0.0  ;;  %v231_v12 = vand.u32 2147483648, %v3248_v61  ;;  %v3443_v53 = vld [vmem:[%s2870_s15 + $0x40] sm:$0xff] }
  0xb1   : > { %v1068_v14 = vor.u32 4788187, %v1067_v6  ;;  %v2450_v60 = vadd.s32 4294967294, %v954_v43  ;;  %v2456_v48 = vadd.s32 4294967169, %v1096_v27  ;;  %v4782_v32 = vand.u32 2147483647, %v3377_v37 }
  0xb2   : > { %v1250_v57 = vmul.u32 %v3382_v36, %v1234_v52  ;;  %vm1252_vm1 = vc.u32 %v3407_v10, %v3410_v2  ;;  %v1253_v0 = vadd.s32 1, %v3411_v40  ;;  %v3427_v58 = vsel %vm230_vm0, %v231_v12, %v229_v62 }
  0xb3   : > { %v1099_v35 = vand.u32 8388607, %v4782_v32  ;;  %4783 = vst [vmem:[#allocation15_spill] sm:$0xff] %v3427_v58  ;;  %2722 = vsinq.f32 %v3263_v7  ;;  %vm2451_vm2 = vcmp.lt.s32.totalorder %v2450_v60, 0  ;;  %v1102_v61 = vadd.s32 1, %v2456_v48  ;;  %323 = vperm.xlu1 %2657, %v3427_v58  }
  0xb4   : > { %2724 = vcosq.f32 %v3360_v8  ;;  %v4784_v6 = vand.u32 2147483647, %v2911_v42  ;;  %v4785_v1 = vmov 0  ;;  %v662_v36 = vsel %vm4687_vm12, %v661_v56, %v3362_v13 }
  0xb5   : > { %v1254_v39 = vsel %vm1252_vm1, %v1253_v0, %v3411_v40  ;;  %v1069_v9 = vand.u32 2147483647, %v1068_v14  ;;  %v1071_v7 = vcvt.s32.f32 %v1064_v31  ;;  %v957_v55 = vsel %vm2451_vm2, 0, %v2450_v60 }
  0xb6   : > { %vm3434_vm3 = vcmp.le.f32.partialorder %v4784_v6, 0.7853982  ;;  %v1100_v44 = vor.u32 8388608, %v1099_v35  ;;  %2726 = vsinq.f32 %v3360_v8  ;;  %v1255_v28 = vadd.s32 %v1254_v39, %v1250_v57 }
  0xb7   : > { %v4786_v1 = vsel %vm3434_vm3, 4294967295, %v4785_v1  ;;  %vm1103_vm4 = vcmp.gt.s32.totalorder %v1102_v61, 0  ;;  %v3449_v29 = vsel %vm3434_vm3, %v2911_v42, %v662_v36  ;;  %v942_v13 = vadd.s32 %v3329_v46, %v3326_v49 }
  0xb8   : > { %4787 = vst [vmem:[#allocation16_spill] sm:$0xff] %v4786_v1  ;;  %v958_v54 = vsub.s32 32, %v957_v55  ;;  %v1104_v3 = vsel %vm1103_vm4, %v1102_v61, 0  ;;  %v962_v45 = vsub.s32 4294967266, %v957_v55  ;;  %v1256_v40 = vadd.s32 536870912, %v1255_v28 }
  0xb9   : > { %v1106_v56 = vand.u32 31, %v1104_v3  ;;  %2728 = vrsqrt.f32 %v3443_v53  ;;  %v3454_v43 = vmul.f32 %v1071_v7, %v1069_v9  ;;  %v959_v8 = vshll.u32 %v3392_v38, %v957_v55 }
  0xba   : > { %v3457_v52 = vshll.u32 %v1100_v44, 8  ;;  %v3460_v27 = vmul.f32 0.62831855, %v3427_v58  ;;  %v3462_v31 = vshrl.u32 %v1256_v40, 30  ;;  %v4790_v49 = vmov 683565275  }
  0xbb   : > { %v1107_v62 = vsub.s32 32, %v1106_v56  ;;  %v1109_v46 = vshll.u32 %v4790_v49, %v1106_v56  ;;  %v4791_v12 = vmov 2475754826   ;;  %v960_v60 = vshrl.u32 %v942_v13, %v958_v54 }
  0xbc   : > { %4788 = vst [vmem:[#allocation17_spill] sm:$0xff] %v3460_v27  ;;  %4789 = vst [vmem:[#allocation18_spill] sm:$0xff] %v3462_v31  ;;  %v1112_v14 = vshll.u32 %v4791_v12, %v1106_v56  ;;  %v1105_v48 = vshrl.u32 %v1104_v3, 5  ;;  %v4792_v32 = vmov 2131351028   ;;  %v963_v61 = vadd.s32 127, %v962_v45 }
  0xbd   : > { %v1115_v35 = vshll.u32 %v4792_v32, %v1106_v56  ;;  %v4793_v57 = vmov 2102212464   ;;  %v1258_v38 = vshll.u32 %v3462_v31, 30  ;;  %v1110_v6 = vshrl.u32 %v4791_v12, %v1107_v62 }
  0xbe   : > { %v1118_v0 = vshll.u32 %v4793_v57, %v1106_v56  ;;  %v1113_v36 = vshrl.u32 %v4792_v32, %v1107_v62  ;;  %v1108_v39 = vshrl.u32 %v4790_v49, %v1107_v62  ;;  %v1116_v9 = vshrl.u32 %v4793_v57, %v1107_v62 }
  0xbf   : > { %v4794_v7 = vmov 920167782   ;;  %v3475_v13 = vsub.s32 %v1255_v28, %v1258_v38  ;;  %v1111_v54 = vor.u32 %v1110_v6, %v1109_v46  ;;  %v1122_v45 = vshrl.u32 %v4781_v4, %v1107_v62 }
  0xc0   : > { %v1119_v55 = vshrl.u32 %v4794_v7, %v1107_v62  ;;  %v1121_v44 = vshll.u32 %v4794_v7, %v1106_v56  ;;  %v1114_v3 = vor.u32 %v1113_v36, %v1112_v14  ;;  %v961_v40 = vor.u32 %v960_v60, %v959_v8  ;;  %v3478_v51 = vpop.eup %2722 }
  0xc1   : > { %v1117_v58 = vor.u32 %v1116_v9, %v1115_v35  ;;  %vm1124_vm5 = vcmp.lt.s32.totalorder %v1105_v48, 1  ;;  %vm4686_vm6 = vcmp.lt.s32.totalorder %v3143_v47, 0  ;;  %v964_v31 = vshll.u32 %v963_v61, 23  ;;  %v3482_v56 = vpop.eup %2724 }
  0xc2   : > { %v1120_v26 = vor.u32 %v1119_v55, %v1118_v0  ;;  %v1261_v11 = vsub.s32 0, %v3475_v13  ;;  %v1123_v1 = vor.u32 %v1122_v45, %v1121_v44  ;;  %vm1126_vm8 = vcmp.lt.s32.totalorder %v1105_v48, 3 }
  0xc3   : > { %vm1125_vm13 = vcmp.lt.s32.totalorder %v1105_v48, 2  ;;  %vm1127_vm0 = vcmp.lt.s32.totalorder %v1105_v48, 4  ;;  %v1132_v28 = vsel %vm1124_vm5, %v1111_v54, %v1114_v3  ;;  %v1404_v8 = vand.u32 2139095040, %v3460_v27  ;;  %v3488_v35 = vpop.eup %2726 }
  0xc4   : > { %v2461_v62 = vmin.u32 %v1261_v11, %v3475_v13  ;;  %v1128_v46 = vsel %vm1124_vm5, %v1108_v39, %v1111_v54  ;;  %v1129_v14 = vsel %vm1127_vm0, %v1117_v58, 2102212464  ;;  %v1133_v60 = vsel %vm1127_vm0, %v1120_v26, 920167782 }
  0xc5   : > { %v1130_v0 = vsel %vm1126_vm8, %v1114_v3, %v1129_v14  ;;  %v1134_v61 = vsel %vm1126_vm8, %v1117_v58, %v1133_v60  ;;  %v1136_v38 = vsel %vm1124_vm5, %v1114_v3, %v1117_v58  ;;  %v1137_v6 = vsel %vm1127_vm0, %v1123_v1, 1326507024 }
  0xc6   : > { %v1073_v36 = vxor.u32 2147483648, %v3454_v43  ;;  %v965_v9 = vor.u32 4788187, %v964_v31  ;;  %v1263_v55 = vclz %v2461_v62  ;;  %v1135_v44 = vsel %vm1125_vm13, %v1132_v28, %v1134_v61  ;;  %v2729_v11 = vpop.eup %2728 }
  0xc7   : > { %v4795_v39 = vand.u32 2147483647, %v3143_v47  ;;  %v4796_v54 = vmov 0  ;;  %v1131_v45 = vsel %vm1125_vm13, %v1128_v46, %v1130_v0  ;;  %v1138_v14 = vsel %vm1126_vm8, %v1120_v26, %v1137_v6 }
  0xc8   : > { %v3504_v58 = vmul.u32.u64.low %v3457_v52, %v1135_v44  ;;  %v3505_v1 = vmul.u32.u64.high %v3457_v52, %v1135_v44, %v3504_v58  ;;  %v2462_v31 = vadd.s32 4294967294, %v1263_v55  ;;  %v1139_v3 = vsel %vm1125_vm13, %v1136_v38, %v1138_v14 }
  0xc9   : > { %vm3497_vm1 = vcmp.le.f32.partialorder %v4795_v39, 0.7853982  ;;  %v4672_v28 = vand.u32 2147483647, %v3460_v27  ;;  %vm221_vm2 = vcmp.eq.f32.partialorder %v3443_v53, inf  ;;  %v968_v62 = vcvt.s32.f32 %v961_v40 }
  0xca   : > { %v4797_v54 = vsel %vm3497_vm1, 4294967295, %v4796_v54  ;;  %v3512_v60 = vmul.u32.u64.low %v3457_v52, %v1139_v3  ;;  %v3513_v61 = vmul.u32.u64.high %v3457_v52, %v1139_v3, %v3512_v60  ;;  %v1405_v46 = vshrl.u32 %v1404_v8, 23 }
  0xcb   : > { %4798 = vst [vmem:[#allocation19_spill] sm:$0xff] %v4797_v54  ;;  %v966_v0 = vand.u32 2147483647, %v965_v9  ;;  %vm2463_vm4 = vcmp.lt.s32.totalorder %v2462_v31, 0  ;;  %v1147_v26 = vmul.u32 %v3457_v52, %v1131_v45  ;;  %v220_v6 = vmul.f32 %v2729_v11, %v3443_v53  ;;  %v3531_v11 = vld [vmem:[%s2870_s15 + $0x58] sm:$0xff] }
  0xcc   : > { %v1266_v55 = vsel %vm2463_vm4, 0, %v2462_v31  ;;  %v1150_v48 = vadd.s32 1, %v3505_v1  ;;  %v2468_v38 = vadd.s32 4294967169, %v1405_v46  ;;  %v224_v44 = vand.u32 2147483648, %v3443_v53 }
  0xcd   : > { %v1251_v40 = vadd.s32 %v3410_v2, %v3407_v10  ;;  %v1267_v39 = vsub.s32 32, %v1266_v55  ;;  %v1271_v14 = vsub.s32 4294967266, %v1266_v55  ;;  %vm223_vm5 = vcmp.eq.f32.partialorder %v3443_v53, 0.0 }
  0xce   : > { %v1074_v8 = vsel %vm4686_vm6, %v1073_v36, %v3454_v43  ;;  %vm1149_vm8 = vc.u32 %v3513_v61, %v3504_v58  ;;  %v1411_v52 = vadd.s32 1, %v2468_v38  ;;  %v222_v9 = vsel %vm221_vm2, %v3443_v53, %v220_v6 }
  0xcf   : > { %v969_v45 = vmul.f32 %v968_v62, %v966_v0  ;;  %v1272_v10 = vadd.s32 127, %v1271_v14  ;;  %v1151_v2 = vsel %vm1149_vm8, %v1150_v48, %v3505_v1  ;;  %v1408_v31 = vand.u32 8388607, %v4672_v28 }
  0xd0   : > { %v1268_v3 = vshll.u32 %v3475_v13, %v1266_v55  ;;  %v1152_v43 = vadd.s32 %v1151_v2, %v1147_v26  ;;  %vm1412_vm13 = vcmp.gt.s32.totalorder %v1411_v52, 0  ;;  %v3537_v36 = vsel %vm223_vm5, %v224_v44, %v222_v9 }
  0xd1   : > { %4799 = vst [vmem:[#allocation20_spill] sm:$0xff] %v3537_v36  ;;  %v1269_v60 = vshrl.u32 %v1251_v40, %v1267_v39  ;;  %v1273_v46 = vshll.u32 %v1272_v10, 23  ;;  %v1413_v38 = vsel %vm1412_vm13, %v1411_v52, 0  ;;  %318 = vperm.xlu0 %2656, %v3537_v36   ;;  %2730 = vrsqrt.f32 %v3531_v11 }
  0xd2   : > { %2732 = vcosq.f32 %v3449_v29  ;;  %vm4696_vm0 = vcmp.lt.s32.totalorder %v3152_v5, 0  ;;  %v1153_v53 = vadd.s32 536870912, %v1152_v43  ;;  %v1415_v1 = vand.u32 31, %v1413_v38 }
  0xd3   : > { %v3546_v13 = vsel %vm3497_vm1, %v3143_v47, %v1074_v8  ;;  %v970_v62 = vxor.u32 2147483648, %v969_v45  ;;  %v1409_v0 = vor.u32 8388608, %v1408_v31  ;;  %v1414_v26 = vshrl.u32 %v1413_v38, 5 }
  0xd4   : > { %v3548_v6 = vshrl.u32 %v1153_v53, 30  ;;  %v1416_v55 = vsub.s32 32, %v1415_v1  ;;  %v1418_v48 = vshll.u32 %v4790_v49, %v1415_v1  ;;  %v1421_v44 = vshll.u32 %v4791_v12, %v1415_v1 }
  0xd5   : > { %v1270_v40 = vor.u32 %v1269_v60, %v1268_v3  ;;  %v1274_v39 = vor.u32 4788187, %v1273_v46  ;;  %v1424_v14 = vshll.u32 %v4792_v32, %v1415_v1  ;;  %v1427_v52 = vshll.u32 %v4793_v57, %v1415_v1 }
  0xd6   : > { %4800 = vst [vmem:[#allocation21_spill] sm:$0xff] %v3548_v6  ;;  %v1155_v9 = vshll.u32 %v3548_v6, 30  ;;  %v1419_v8 = vshrl.u32 %v4791_v12, %v1416_v55  ;;  %v1422_v10 = vshrl.u32 %v4792_v32, %v1416_v55  ;;  %v1430_v2 = vshll.u32 %v4794_v7, %v1415_v1 }
  0xd7   : > { %v1417_v31 = vshrl.u32 %v4790_v49, %v1416_v55  ;;  %v1425_v38 = vshrl.u32 %v4793_v57, %v1416_v55  ;;  %v1428_v53 = vshrl.u32 %v4794_v7, %v1416_v55  ;;  %v1431_v3 = vshrl.u32 %v4781_v4, %v1416_v55 }
  0xd8   : > { %v3562_v60 = vsub.s32 %v1152_v43, %v1155_v9  ;;  %v1420_v46 = vor.u32 %v1419_v8, %v1418_v48  ;;  %v1423_v28 = vor.u32 %v1422_v10, %v1421_v44  ;;  %vm1433_vm2 = vcmp.lt.s32.totalorder %v1414_v26, 1 }
  0xd9   : > { %v1277_v54 = vcvt.s32.f32 %v1270_v40  ;;  %v1426_v47 = vor.u32 %v1425_v38, %v1424_v14  ;;  %v1429_v6 = vor.u32 %v1428_v53, %v1427_v52  ;;  %v1449_v33 = vshll.u32 %v1409_v0, 8 }
  0xda   : > { %v1158_v42 = vsub.s32 0, %v3562_v60  ;;  %v1432_v1 = vor.u32 %v1431_v3, %v1430_v2  ;;  %vm1435_vm4 = vcmp.lt.s32.totalorder %v1414_v26, 3  ;;  %vm1436_vm5 = vcmp.lt.s32.totalorder %v1414_v26, 4 }
  0xdb   : > { %v4801_v34 = vand.u32 2147483647, %v3152_v5  ;;  %v1275_v43 = vand.u32 2147483647, %v1274_v39  ;;  %vm1434_vm13 = vcmp.lt.s32.totalorder %v1414_v26, 2  ;;  %v1441_v48 = vsel %vm1433_vm2, %v1420_v46, %v1423_v28 }
  0xdc   : > { %v1438_v55 = vsel %vm1436_vm5, %v1426_v47, 2102212464  ;;  %v2457_v44 = vmin.u32 %v1158_v42, %v3562_v60  ;;  %v1437_v0 = vsel %vm1433_vm2, %v1417_v31, %v1420_v46  ;;  %v1442_v14 = vsel %vm1436_vm5, %v1429_v6, 920167782 }
  0xdd   : > { %vm3567_vm8 = vcmp.le.f32.partialorder %v4801_v34, 0.7853982  ;;  %v1439_v40 = vsel %vm1435_vm4, %v1423_v28, %v1438_v55  ;;  %v971_v34 = vsel %vm4696_vm0, %v970_v62, %v969_v45  ;;  %vm4700_vm6 = vcmp.lt.s32.totalorder %v3237_v21, 0 }
  0xde   : > { %v4803_v20 = vsel %vm3567_vm8, 4294967295, %v4802_v20  ;;  %v1443_v39 = vsel %vm1435_vm4, %v1426_v47, %v1442_v14  ;;  %v1445_v52 = vsel %vm1433_vm2, %v1423_v28, %v1426_v47  ;;  %v3583_v9 = vmul.f32 0.62831855, %v3537_v36  ;;  %v2731_v8 = vpop.eup %2730 }
  0xdf   : > { %4804 = vst [vmem:[#allocation22_spill] sm:$0xff] %v4803_v20  ;;  %v1160_v42 = vclz %v2457_v44  ;;  %v1444_v10 = vsel %vm1434_vm13, %v1441_v48, %v1443_v39  ;;  %v1446_v2 = vsel %vm1436_vm5, %v1432_v1, 1326507024  ;;  %vm242_vm12 = vcmp.eq.f32.partialorder %v3531_v11, inf  ;;  %v3588_v31 = vpop.eup %2732 }
  0xe0   : > { %4805 = vst [vmem:[#allocation23_spill] sm:$0xff] %v3583_v9  ;;  %4806 = vst [vmem:[#allocation24_spill] sm:$0xff] %v3588_v31  ;;  %v1440_v45 = vsel %vm1434_vm13, %v1437_v0, %v1439_v40  ;;  %v1447_v62 = vsel %vm1435_vm4, %v1429_v6, %v1446_v2  ;;  %v3592_v38 = vmul.u32.u64.low %v1449_v33, %v1444_v10  ;;  %v3593_v53 = vmul.u32.u64.high %v1449_v33, %v1444_v10, %v3592_v38 }
  0xe1   : > { %v1278_v47 = vmul.f32 %v1277_v54, %v1275_v43  ;;  %v2458_v28 = vadd.s32 4294967294, %v1160_v42  ;;  %v1448_v3 = vsel %vm1434_vm13, %v1445_v52, %v1447_v62  ;;  %v4688_v46 = vand.u32 2147483647, %v3583_v9  ;;  %v3632_v62 = vld [vmem:[%s2870_s15 + $0x50] sm:$0xff] }
  0xe2   : > { %v3597_v55 = vmul.u32.u64.low %v1449_v33, %v1448_v3  ;;  %v3598_v48 = vmul.u32.u64.high %v1449_v33, %v1448_v3, %v3597_v55  ;;  %v1301_v1 = vand.u32 2139095040, %v3583_v9  ;;  %v241_v44 = vmul.f32 %v2731_v8, %v3531_v11 }
  0xe3   : > { %vm2459_vm2 = vcmp.lt.s32.totalorder %v2458_v28, 0  ;;  %v1456_v0 = vmul.u32 %v1449_v33, %v1440_v45  ;;  %vm244_vm4 = vcmp.eq.f32.partialorder %v3531_v11, 0.0  ;;  %v245_v6 = vand.u32 2147483648, %v3531_v11 }
  0xe4   : > { %v1163_v40 = vsel %vm2459_vm2, 0, %v2458_v28  ;;  %v1459_v54 = vadd.s32 1, %v3593_v53  ;;  %v1302_v26 = vshrl.u32 %v1301_v1, 23  ;;  %v243_v43 = vsel %vm242_vm12, %v3531_v11, %v241_v44 }
  0xe5   : > { %v1279_v14 = vxor.u32 2147483648, %v1278_v47  ;;  %v1148_v39 = vadd.s32 %v3504_v58, %v3513_v61  ;;  %v1164_v52 = vsub.s32 32, %v1163_v40  ;;  %v1305_v33 = vand.u32 8388607, %v4688_v46 }
  0xe6   : > { %2734 = vsinq.f32 %v3449_v29  ;;  %vm1458_vm5 = vc.u32 %v3598_v48, %v3592_v38  ;;  %v2464_v8 = vadd.s32 4294967169, %v1302_v26  ;;  %v3614_v42 = vsel %vm244_vm4, %v245_v6, %v243_v43 }
  0xe7   : > { %4807 = vst [vmem:[#allocation25_spill] sm:$0xff] %v3614_v42  ;;  %2736 = vcosq.f32 %v3546_v13  ;;  %v3620_v11 = vsel %vm3567_vm8, %v3152_v5, %v971_v34  ;;  %v1168_v58 = vsub.s32 4294967266, %v1163_v40  ;;  %v1460_v61 = vsel %vm1458_vm5, %v1459_v54, %v3593_v53  ;;  %333 = vperm.xlu1 %2657, %v3614_v42  }
  0xe8   : > { %2738 = vsinq.f32 %v3546_v13  ;;  %v4808_v29 = vand.u32 2147483647, %v3237_v21  ;;  %v4809_v10 = vmov 0  ;;  %v1461_v2 = vadd.s32 %v1460_v61, %v1456_v0 }
  0xe9   : > { %v1308_v45 = vadd.s32 1, %v2464_v8  ;;  %v1280_v34 = vsel %vm4700_vm6, %v1279_v14, %v1278_v47  ;;  %v1165_v28 = vshll.u32 %v3562_v60, %v1163_v40  ;;  %v1166_v53 = vshrl.u32 %v1148_v39, %v1164_v52 }
  0xea   : > { %vm3627_vm12 = vcmp.le.f32.partialorder %v4808_v29, 0.7853982  ;;  %v1306_v3 = vor.u32 8388608, %v1305_v33  ;;  %2740 = vcosq.f32 %v3620_v11  ;;  %v1462_v13 = vadd.s32 536870912, %v1461_v2 }
  0xeb   : > { %v4810_v10 = vsel %vm3627_vm12, 4294967295, %v4809_v10  ;;  %vm1309_vm13 = vcmp.gt.s32.totalorder %v1308_v45, 0  ;;  %v1169_v55 = vadd.s32 127, %v1168_v58  ;;  %2742 = vrsqrt.f32 %v3632_v62 }
  0xec   : > { %4811 = vst [vmem:[#allocation26_spill] sm:$0xff] %v4810_v10  ;;  %v1310_v1 = vsel %vm1309_vm13, %v1308_v45, 0  ;;  %v3642_v44 = vsel %vm3627_vm12, %v3237_v21, %v1280_v34  ;;  %v3644_v0 = vshrl.u32 %v1462_v13, 30  ;;  %v3647_v60 = vmul.f32 0.62831855, %v3614_v42 }
  0xed   : > { %v1312_v47 = vand.u32 31, %v1310_v1  ;;  %v3649_v6 = vor.u32 %v1166_v53, %v1165_v28  ;;  %v3652_v40 = vadd.s32 %v3592_v38, %v3598_v48  ;;  %v1311_v54 = vshrl.u32 %v1310_v1, 5 }
  0xee   : > { %4812 = vst [vmem:[#allocation27_spill] sm:$0xff] %v3644_v0  ;;  %4813 = vst [vmem:[#allocation28_spill] sm:$0xff] %v3647_v60  ;;  %v3654_v26 = vshll.u32 %v1306_v3, 8  ;;  %v1464_v43 = vshll.u32 %v3644_v0, 30  ;;  %v1170_v33 = vshll.u32 %v1169_v55, 23  ;;  %v1610_v45 = vand.u32 2139095040, %v3647_v60 }
  0xef   : > { %v1313_v14 = vsub.s32 32, %v1312_v47  ;;  %v1315_v39 = vshll.u32 %v4790_v49, %v1312_v47  ;;  %v1318_v52 = vshll.u32 %v4791_v12, %v1312_v47  ;;  %v1321_v8 = vshll.u32 %v4792_v32, %v1312_v47 }
  0xf0   : > { %v1324_v58 = vshll.u32 %v4793_v57, %v1312_v47  ;;  %v1327_v61 = vshll.u32 %v4794_v7, %v1312_v47  ;;  %v3662_v29 = vsub.s32 %v1461_v2, %v1464_v43  ;;  %vm1330_vm2 = vcmp.lt.s32.totalorder %v1311_v54, 1 }
  0xf1   : > { %v1316_v38 = vshrl.u32 %v4791_v12, %v1313_v14  ;;  %v1319_v48 = vshrl.u32 %v4792_v32, %v1313_v14  ;;  %v1314_v34 = vshrl.u32 %v4790_v49, %v1313_v14  ;;  %v1322_v28 = vshrl.u32 %v4793_v57, %v1313_v14 }
  0xf2   : > { %v1325_v53 = vshrl.u32 %v4794_v7, %v1313_v14  ;;  %v1328_v3 = vshrl.u32 %v4781_v4, %v1313_v14  ;;  %v1467_v13 = vsub.s32 0, %v3662_v29  ;;  %vm235_vm4 = vcmp.eq.f32.partialorder %v3632_v62, inf }
  0xf3   : > { %v1317_v55 = vor.u32 %v1316_v38, %v1315_v39  ;;  %v1320_v1 = vor.u32 %v1319_v48, %v1318_v52  ;;  %v3673_v2 = vpop.eup %2734  ;;  %v1323_v47 = vor.u32 %v1322_v28, %v1321_v8  ;;  %v1171_v42 = vor.u32 4788187, %v1170_v33 }
  0xf4   : > { %v1326_v43 = vor.u32 %v1325_v53, %v1324_v58  ;;  %v1329_v46 = vor.u32 %v1328_v3, %v1327_v61  ;;  %v3676_v36 = vpop.eup %2736  ;;  %v1174_v20 = vcvt.s32.f32 %v3649_v6  ;;  %v2469_v14 = vmin.u32 %v1467_v13, %v3662_v29 }
  0xf5   : > { %4814 = vst [vmem:[#allocation29_spill] sm:$0xff] %v3676_v36  ;;  %vm1332_vm5 = vcmp.lt.s32.totalorder %v1311_v54, 3  ;;  %v3680_v39 = vpop.eup %2738  ;;  %vm1331_vm13 = vcmp.lt.s32.totalorder %v1311_v54, 2  ;;  %vm1333_vm0 = vcmp.lt.s32.totalorder %v1311_v54, 4  ;;  %v1338_v52 = vsel %vm1330_vm2, %v1317_v55, %v1320_v1 }
  0xf6   : > { %4815 = vst [vmem:[#allocation30_spill] sm:$0xff] %v3680_v39  ;;  %v1611_v38 = vshrl.u32 %v1610_v45, 23  ;;  %v1469_v8 = vclz %v2469_v14  ;;  %v1334_v58 = vsel %vm1330_vm2, %v1314_v34, %v1317_v55  ;;  %v1335_v61 = vsel %vm1333_vm0, %v1323_v47, 2102212464 }
  0xf7   : > { %v1339_v48 = vsel %vm1333_vm0, %v1326_v43, 920167782  ;;  %v3684_v28 = vpop.eup %2740  ;;  %v1336_v33 = vsel %vm1332_vm5, %v1320_v1, %v1335_v61  ;;  %v1342_v53 = vsel %vm1330_vm2, %v1320_v1, %v1323_v47  ;;  %v1343_v3 = vsel %vm1333_vm0, %v1329_v46, 1326507024 }
  0xf8   : > { %4816 = vst [vmem:[#allocation31_spill] sm:$0xff] %v3684_v28  ;;  %v1340_v6 = vsel %vm1332_vm5, %v1323_v47, %v1339_v48  ;;  %v2743_v13 = vpop.eup %2742  ;;  %v1172_v0 = vand.u32 2147483647, %v1171_v42  ;;  %v2470_v36 = vadd.s32 4294967294, %v1469_v8  ;;  %v1344_v45 = vsel %vm1332_vm5, %v1326_v43, %v1343_v3 }
  0xf9   : > { %v1341_v39 = vsel %vm1331_vm13, %v1338_v52, %v1340_v6  ;;  %v1337_v34 = vsel %vm1331_vm13, %v1334_v58, %v1336_v33  ;;  %v1345_v55 = vsel %vm1331_vm13, %v1342_v53, %v1344_v45  ;;  %v2476_v42 = vadd.s32 4294967169, %v1611_v38  ;;  %v3713_v38 = vld [vmem:[%s2870_s15 + $0x68] sm:$0xff] }
  0xfa   : > { %v3694_v14 = vmul.u32.u64.low %v3654_v26, %v1341_v39  ;;  %v3695_v28 = vmul.u32.u64.high %v3654_v26, %v1341_v39, %v3694_v14  ;;  %vm2471_vm6 = vcmp.lt.s32.totalorder %v2470_v36, 0  ;;  %v234_v52 = vmul.f32 %v2743_v13, %v3632_v62 }
  0xfb   : > { %v3699_v46 = vmul.u32.u64.low %v3654_v26, %v1345_v55  ;;  %v3700_v1 = vmul.u32.u64.high %v3654_v26, %v1345_v55, %v3699_v46  ;;  %v1472_v47 = vsel %vm2471_vm6, 0, %v2470_v36  ;;  %vm237_vm0 = vcmp.eq.f32.partialorder %v3632_v62, 0.0 }
  0xfc   : > { %v238_v54 = vand.u32 2147483648, %v3632_v62  ;;  %v1473_v43 = vsub.s32 32, %v1472_v47  ;;  %v1477_v8 = vsub.s32 4294967266, %v1472_v47  ;;  %v1353_v39 = vmul.u32 %v3654_v26, %v1337_v34 }
  0xfd   : > { %v1617_v58 = vadd.s32 1, %v2476_v42  ;;  %v1175_v61 = vmul.f32 %v1174_v20, %v1172_v0  ;;  %v1356_v48 = vadd.s32 1, %v3695_v28  ;;  %v4817_v33 = vand.u32 2147483647, %v3647_v60 }
  0xfe   : > { %v236_v36 = vsel %vm235_vm4, %v3632_v62, %v234_v52  ;;  %v1474_v53 = vshll.u32 %v3662_v29, %v1472_v47  ;;  %v1475_v3 = vshrl.u32 %v3652_v40, %v1473_v43  ;;  %v1478_v13 = vadd.s32 127, %v1477_v8 }
  0xff   : > { %v1614_v6 = vand.u32 8388607, %v4817_v33  ;;  %vm1355_vm6 = vc.u32 %v3700_v1, %v3694_v14  ;;  %2744 = vsinq.f32 %v3620_v11  ;;  %vm1618_vm2 = vcmp.gt.s32.totalorder %v1617_v58, 0 }
 0x100   : > { %v1357_v20 = vsel %vm1355_vm6, %v1356_v48, %v3695_v28  ;;  %v3723_v0 = vsel %vm237_vm0, %v238_v54, %v236_v36  ;;  %v1479_v26 = vshll.u32 %v1478_v13, 23  ;;  %v1619_v34 = vsel %vm1618_vm2, %v1617_v58, 0 }
 0x101   : > { %4818 = vst [vmem:[#allocation32_spill] sm:$0xff] %v3723_v0  ;;  %v1358_v45 = vadd.s32 %v1357_v20, %v1353_v39  ;;  %328 = vperm.xlu0 %2656, %v3723_v0   ;;  %2746 = vrsqrt.f32 %v3713_v38  ;;  %vm4710_vm4 = vcmp.lt.s32.totalorder %v3377_v37, 0  ;;  %v1621_v40 = vand.u32 31, %v1619_v34 }
 0x102   : > { %2748 = vcosq.f32 %v3642_v44  ;;  %v1176_v11 = vxor.u32 2147483648, %v1175_v61  ;;  %v1476_v29 = vor.u32 %v1475_v3, %v1474_v53  ;;  %v1615_v55 = vor.u32 8388608, %v1614_v6 }
 0x103   : > { %v1359_v28 = vadd.s32 536870912, %v1358_v45  ;;  %v1620_v46 = vshrl.u32 %v1619_v34, 5  ;;  %v1622_v62 = vsub.s32 32, %v1621_v40  ;;  %v1624_v42 = vshll.u32 %v4790_v49, %v1621_v40 }
 0x104   : > { %v1627_v47 = vshll.u32 %v4791_v12, %v1621_v40  ;;  %v1480_v52 = vor.u32 4788187, %v1479_v26  ;;  %v1630_v43 = vshll.u32 %v4792_v32, %v1621_v40  ;;  %v1633_v8 = vshll.u32 %v4793_v57, %v1621_v40 }
 0x105   : > { %v3731_v54 = vshrl.u32 %v1359_v28, 30  ;;  %v1625_v39 = vshrl.u32 %v4791_v12, %v1622_v62  ;;  %v1628_v58 = vshrl.u32 %v4792_v32, %v1622_v62  ;;  %v1631_v48 = vshrl.u32 %v4793_v57, %v1622_v62 }
 0x106   : > { %v1636_v33 = vshll.u32 %v4794_v7, %v1621_v40  ;;  %v1634_v36 = vshrl.u32 %v4794_v7, %v1622_v62  ;;  %v1637_v53 = vshrl.u32 %v4781_v4, %v1622_v62  ;;  %v3742_v3 = vshll.u32 %v1615_v55, 8 }
 0x107   : > { %4819 = vst [vmem:[#allocation33_spill] sm:$0xff] %v3731_v54  ;;  %v1361_v6 = vshll.u32 %v3731_v54, 30  ;;  %v1623_v13 = vshrl.u32 %v4790_v49, %v1622_v62  ;;  %v1626_v20 = vor.u32 %v1625_v39, %v1624_v42  ;;  %v1629_v26 = vor.u32 %v1628_v58, %v1627_v47 }
 0x108   : > { %vm1639_vm5 = vcmp.lt.s32.totalorder %v1620_v46, 1  ;;  %v1483_v34 = vcvt.s32.f32 %v1476_v29  ;;  %v1632_v5 = vor.u32 %v1631_v48, %v1630_v43  ;;  %v1635_v10 = vor.u32 %v1634_v36, %v1633_v8 }
 0x109   : > { %v3745_v28 = vsub.s32 %v1358_v45, %v1361_v6  ;;  %v4820_v40 = vand.u32 2147483647, %v3377_v37  ;;  %v4821_v54 = vmov 0  ;;  %v1481_v21 = vand.u32 2147483647, %v1480_v52 }
 0x10a   : > { %v1638_v31 = vor.u32 %v1637_v53, %v1636_v33  ;;  %vm1641_vm0 = vcmp.lt.s32.totalorder %v1620_v46, 3  ;;  %vm1642_vm6 = vcmp.lt.s32.totalorder %v1620_v46, 4  ;;  %vm1640_vm2 = vcmp.lt.s32.totalorder %v1620_v46, 2 }
 0x10b   : > { %vm3749_vm13 = vcmp.le.f32.partialorder %v4820_v40, 0.7853982  ;;  %v1364_v55 = vsub.s32 0, %v3745_v28  ;;  %v1644_v62 = vsel %vm1642_vm6, %v1632_v5, 2102212464  ;;  %v1647_v45 = vsel %vm1639_vm5, %v1626_v20, %v1629_v26 }
 0x10c   : > { %v4822_v54 = vsel %vm3749_vm13, 4294967295, %v4821_v54  ;;  %v1177_v29 = vsel %vm4710_vm4, %v1176_v11, %v1175_v61  ;;  %v1643_v42 = vsel %vm1639_vm5, %v1623_v13, %v1626_v20  ;;  %v1648_v47 = vsel %vm1642_vm6, %v1635_v10, 920167782  ;;  %v3763_v52 = vpop.eup %2744 }
 0x10d   : > { %4823 = vst [vmem:[#allocation34_spill] sm:$0xff] %v4822_v54  ;;  %v3761_v43 = vmul.f32 0.62831855, %v3723_v0  ;;  %4825 = vst [vmem:[#allocation36_spill] sm:$0xff] %v3763_v52  ;;  %vm4718_vm11 = vcmp.lt.s32.totalorder %v3460_v27, 0  ;;  %v2465_v8 = vmin.u32 %v1364_v55, %v3745_v28  ;;  %v1645_v39 = vsel %vm1641_vm0, %v1629_v26, %v1644_v62 }
 0x10e   : > { %v1649_v58 = vsel %vm1641_vm0, %v1632_v5, %v1648_v47  ;;  %v1651_v48 = vsel %vm1639_vm5, %v1629_v26, %v1632_v5  ;;  %v2747_v61 = vpop.eup %2746  ;;  %v1484_v11 = vmul.f32 %v1483_v34, %v1481_v21  ;;  %v1652_v6 = vsel %vm1642_vm6, %v1638_v31, 1326507024 }
 0x10f   : > { %4824 = vst [vmem:[#allocation35_spill] sm:$0xff] %v3761_v43  ;;  %v1650_v33 = vsel %vm1640_vm2, %v1647_v45, %v1649_v58  ;;  %vm256_vm4 = vcmp.eq.f32.partialorder %v3713_v38, inf  ;;  %v3773_v36 = vpop.eup %2748  ;;  %v1366_v53 = vclz %v2465_v8  ;;  %v1653_v13 = vsel %vm1641_vm0, %v1635_v10, %v1652_v6 }
 0x110   : > { %4826 = vst [vmem:[#allocation37_spill] sm:$0xff] %v3773_v36  ;;  %v3777_v20 = vmul.u32.u64.low %v3742_v3, %v1650_v33  ;;  %v3778_v40 = vmul.u32.u64.high %v3742_v3, %v1650_v33, %v3777_v20  ;;  %v1646_v5 = vsel %vm1640_vm2, %v1643_v42, %v1645_v39  ;;  %v1654_v21 = vsel %vm1640_vm2, %v1651_v48, %v1653_v13 }
 0x111   : > { %v1507_v26 = vand.u32 2139095040, %v3761_v43  ;;  %vm258_vm5 = vcmp.eq.f32.partialorder %v3713_v38, 0.0  ;;  %v2466_v31 = vadd.s32 4294967294, %v1366_v53  ;;  %v255_v10 = vmul.f32 %v2747_v61, %v3713_v38 }
 0x112   : > { %v3786_v34 = vmul.u32.u64.low %v3742_v3, %v1654_v21  ;;  %v3787_v55 = vmul.u32.u64.high %v3742_v3, %v1654_v21, %v3786_v34  ;;  %v1485_v62 = vxor.u32 2147483648, %v1484_v11  ;;  %v1354_v45 = vadd.s32 %v3694_v14, %v3700_v1 }
 0x113   : > { %v1508_v47 = vshrl.u32 %v1507_v26, 23  ;;  %v259_v42 = vand.u32 2147483648, %v3713_v38  ;;  %vm2467_vm0 = vcmp.lt.s32.totalorder %v2466_v31, 0  ;;  %v1665_v46 = vadd.s32 1, %v3778_v40 }
 0x114   : > { %v4711_v8 = vand.u32 2147483647, %v3761_v43  ;;  %v257_v39 = vsel %vm256_vm4, %v3713_v38, %v255_v10  ;;  %v1369_v58 = vsel %vm2467_vm0, 0, %v2466_v31  ;;  %v1662_v48 = vmul.u32 %v3742_v3, %v1646_v5  ;;  %v3818_v5 = vld [vmem:[%s2870_s15 + $0x60] sm:$0xff] }
 0x115   : > { %v2472_v61 = vadd.s32 4294967169, %v1508_v47  ;;  %v3801_v14 = vsel %vm258_vm5, %v259_v42, %v257_v39  ;;  %v1180_v1 = vsel %vm3749_vm13, %v3377_v37, %v1177_v29  ;;  %v1370_v33 = vsub.s32 32, %v1369_v58 }
 0x116   : > { %4827 = vst [vmem:[#allocation38_spill] sm:$0xff] %v3801_v14  ;;  %v1371_v6 = vshll.u32 %v3745_v28, %v1369_v58  ;;  %v1374_v53 = vsub.s32 4294967266, %v1369_v58  ;;  %343 = vperm.xlu1 %2657, %v3801_v14   ;;  %2750 = vsinq.f32 %v3642_v44  ;;  %v4828_v13 = vand.u32 2147483647, %v3460_v27 }
 0x117   : > { %v4829_v3 = vmov 0  ;;  %vm1664_vm6 = vc.u32 %v3787_v55, %v3777_v20  ;;  %v1514_v38 = vadd.s32 1, %v2472_v61  ;;  %v1372_v29 = vshrl.u32 %v1354_v45, %v1370_v33 }
 0x118   : > { %vm3811_vm4 = vcmp.le.f32.partialorder %v4828_v13, 0.7853982  ;;  %v1375_v21 = vadd.s32 127, %v1374_v53  ;;  %v1666_v28 = vsel %vm1664_vm6, %v1665_v46, %v3778_v40  ;;  %v1511_v26 = vand.u32 8388607, %v4711_v8 }
 0x119   : > { %v4830_v3 = vsel %vm3811_vm4, 4294967295, %v4829_v3  ;;  %2752 = vcosq.f32 %v1180_v1  ;;  %v1486_v44 = vsel %vm4718_vm11, %v1485_v62, %v1484_v11  ;;  %v1667_v31 = vadd.s32 %v1666_v28, %v1662_v48 }
 0x11a   : > { %4831 = vst [vmem:[#allocation39_spill] sm:$0xff] %v4830_v3  ;;  %vm1515_vm2 = vcmp.gt.s32.totalorder %v1514_v38, 0  ;;  %v1373_v34 = vor.u32 %v1372_v29, %v1371_v6  ;;  %v1376_v10 = vshll.u32 %v1375_v21, 23  ;;  %2754 = vrsqrt.f32 %v3818_v5 }
 0x11b   : > { %v1516_v47 = vsel %vm1515_vm2, %v1514_v38, 0  ;;  %2756 = vsinq.f32 %v1180_v1  ;;  %v1668_v42 = vadd.s32 536870912, %v1667_v31  ;;  %v3829_v40 = vsel %vm3811_vm4, %v3460_v27, %v1486_v44 }
 0x11c   : > { %v1518_v45 = vand.u32 31, %v1516_v47  ;;  %v1377_v46 = vor.u32 4788187, %v1376_v10  ;;  %v1512_v39 = vor.u32 8388608, %v1511_v26  ;;  %v1517_v58 = vshrl.u32 %v1516_v47, 5 }
 0x11d   : > { %v3831_v61 = vshrl.u32 %v1668_v42, 30  ;;  %v1380_v33 = vcvt.s32.f32 %v1373_v34  ;;  %v3838_v53 = vmul.f32 0.62831855, %v3801_v14  ;;  %vm4733_vm0 = vcmp.lt.s32.totalorder %v3583_v9, 0 }
 0x11e   : > { %v1519_v11 = vsub.s32 32, %v1518_v45  ;;  %v1521_v62 = vshll.u32 %v4790_v49, %v1518_v45  ;;  %v1524_v48 = vshll.u32 %v4791_v12, %v1518_v45  ;;  %v1527_v1 = vshll.u32 %v4792_v32, %v1518_v45 }
 0x11f   : > { %4832 = vst [vmem:[#allocation40_spill] sm:$0xff] %v3831_v61  ;;  %v1530_v6 = vshll.u32 %v4793_v57, %v1518_v45  ;;  %v1670_v13 = vshll.u32 %v3831_v61, 30  ;;  %v1533_v21 = vshll.u32 %v4794_v7, %v1518_v45  ;;  %v1378_v28 = vand.u32 2147483647, %v1377_v46 }
 0x120   : > { %v1522_v38 = vshrl.u32 %v4791_v12, %v1519_v11  ;;  %v1525_v29 = vshrl.u32 %v4792_v32, %v1519_v11  ;;  %v1528_v26 = vshrl.u32 %v4793_v57, %v1519_v11  ;;  %v1531_v44 = vshrl.u32 %v4794_v7, %v1519_v11 }
 0x121   : > { %v1534_v34 = vshrl.u32 %v4781_v4, %v1519_v11  ;;  %v3847_v10 = vsub.s32 %v1667_v31, %v1670_v13  ;;  %vm1536_vm5 = vcmp.lt.s32.totalorder %v1517_v58, 1  ;;  %v1520_v8 = vshrl.u32 %v4790_v49, %v1519_v11 }
 0x122   : > { %v1523_v47 = vor.u32 %v1522_v38, %v1521_v62  ;;  %v1526_v42 = vor.u32 %v1525_v29, %v1524_v48  ;;  %v1529_v14 = vor.u32 %v1528_v26, %v1527_v1  ;;  %v1532_v3 = vor.u32 %v1531_v44, %v1530_v6 }
 0x123   : > { %v3850_v27 = vshll.u32 %v1512_v39, 8  ;;  %v1673_v45 = vsub.s32 0, %v3847_v10  ;;  %v1535_v46 = vor.u32 %v1534_v34, %v1533_v21  ;;  %vm1538_vm6 = vcmp.lt.s32.totalorder %v1517_v58, 3  ;;  %v3854_v0 = vpop.eup %2750 }
 0x124   : > { %vm1539_vm2 = vcmp.lt.s32.totalorder %v1517_v58, 4  ;;  %4833 = vst [vmem:[#allocation41_spill] sm:$0xff] %v3854_v0  ;;  %v1381_v31 = vmul.f32 %v1380_v33, %v1378_v28  ;;  %vm1537_vm11 = vcmp.lt.s32.totalorder %v1517_v58, 2  ;;  %v1544_v48 = vsel %vm1536_vm5, %v1523_v47, %v1526_v42 }
 0x125   : > { %v1541_v62 = vsel %vm1539_vm2, %v1529_v14, 2102212464  ;;  %v2477_v11 = vmin.u32 %v1673_v45, %v3847_v10  ;;  %v1545_v39 = vsel %vm1539_vm2, %v1532_v3, 920167782  ;;  %v1816_v1 = vand.u32 2139095040, %v3838_v53 }
 0x126   : > { %vm249_vm9 = vcmp.eq.f32.partialorder %v3818_v5, inf  ;;  %v3862_v6 = vpop.eup %2752  ;;  %v1540_v13 = vsel %vm1536_vm5, %v1520_v8, %v1523_v47  ;;  %v1542_v38 = vsel %vm1538_vm6, %v1526_v42, %v1541_v62  ;;  %v1546_v33 = vsel %vm1538_vm6, %v1529_v14, %v1545_v39 }
 0x127   : > { %4834 = vst [vmem:[#allocation42_spill] sm:$0xff] %v3862_v6  ;;  %v1548_v29 = vsel %vm1536_vm5, %v1526_v42, %v1529_v14  ;;  %v2755_v21 = vpop.eup %2754  ;;  %v4835_v28 = vand.u32 2147483647, %v3583_v9  ;;  %v4836_v26 = vmov 0  ;;  %v1675_v44 = vclz %v2477_v11 }
 0x128   : > { %v1547_v34 = vsel %vm1537_vm11, %v1544_v48, %v1546_v33  ;;  %v1549_v45 = vsel %vm1539_vm2, %v1535_v46, 1326507024  ;;  %v3877_v47 = vpop.eup %2756  ;;  %v1382_v62 = vxor.u32 2147483648, %v1381_v31  ;;  %v1543_v61 = vsel %vm1537_vm11, %v1540_v13, %v1542_v38 }
 0x129   : > { %vm3870_vm7 = vcmp.le.f32.partialorder %v4835_v28, 0.7853982  ;;  %v1550_v39 = vsel %vm1538_vm6, %v1532_v3, %v1549_v45  ;;  %v3881_v14 = vmul.u32.u64.low %v3850_v27, %v1547_v34  ;;  %v3882_v42 = vmul.u32.u64.high %v3850_v27, %v1547_v34, %v3881_v14 }
 0x12a   : > { %v4837_v26 = vsel %vm3870_vm7, 4294967295, %v4836_v26  ;;  %v2478_v28 = vadd.s32 4294967294, %v1675_v44  ;;  %v1551_v11 = vsel %vm1537_vm11, %v1548_v29, %v1550_v39  ;;  %v1817_v48 = vshrl.u32 %v1816_v1, 23  ;;  %v3911_v39 = vld [vmem:[%s2870_s15 + $0x78] sm:$0xff] }
 0x12b   : > { %4838 = vst [vmem:[#allocation43_spill] sm:$0xff] %v4837_v26  ;;  %v3888_v46 = vmul.u32.u64.low %v3850_v27, %v1551_v11  ;;  %v3889_v33 = vmul.u32.u64.high %v3850_v27, %v1551_v11, %v3888_v46  ;;  %v248_v8 = vmul.f32 %v2755_v21, %v3818_v5  ;;  %v252_v52 = vand.u32 2147483648, %v3818_v5 }
 0x12c   : > { %v1663_v3 = vadd.s32 %v3777_v20, %v3787_v55  ;;  %vm2479_vm5 = vcmp.lt.s32.totalorder %v2478_v28, 0  ;;  %v2484_v34 = vadd.s32 4294967169, %v1817_v48  ;;  %vm251_vm6 = vcmp.eq.f32.partialorder %v3818_v5, 0.0 }
 0x12d   : > { %v1678_v13 = vsel %vm2479_vm5, 0, %v2478_v28  ;;  %v1559_v58 = vmul.u32 %v3850_v27, %v1543_v61  ;;  %v1562_v1 = vadd.s32 1, %v3882_v42  ;;  %v250_v38 = vsel %vm249_vm9, %v3818_v5, %v248_v8 }
 0x12e   : > { %v1679_v29 = vsub.s32 32, %v1678_v13  ;;  %v1680_v21 = vshll.u32 %v3847_v10, %v1678_v13  ;;  %v1683_v44 = vsub.s32 4294967266, %v1678_v13  ;;  %v1823_v45 = vadd.s32 1, %v2484_v34 }
 0x12f   : > { %v1383_v20 = vsel %vm4733_vm0, %v1382_v62, %v1381_v31  ;;  %vm1561_vm11 = vc.u32 %v3889_v33, %v3881_v14  ;;  %v4839_v55 = vand.u32 2147483647, %v3838_v53  ;;  %v3908_v61 = vsel %vm251_vm6, %v252_v52, %v250_v38 }
 0x130   : > { %4840 = vst [vmem:[#allocation44_spill] sm:$0xff] %v3908_v61  ;;  %v1681_v28 = vshrl.u32 %v1663_v3, %v1679_v29  ;;  %v1684_v5 = vadd.s32 127, %v1683_v44  ;;  %v1563_v8 = vsel %vm1561_vm11, %v1562_v1, %v3882_v42  ;;  %vm1824_vm9 = vcmp.gt.s32.totalorder %v1823_v45, 0  ;;  %338 = vperm.xlu0 %2656, %v3908_v61  }
 0x131   : > { %v1820_v27 = vand.u32 8388607, %v4839_v55  ;;  %2758 = vcosq.f32 %v3829_v40  ;;  %v1564_v10 = vadd.s32 %v1563_v8, %v1559_v58  ;;  %v1825_v31 = vsel %vm1824_vm9, %v1823_v45, 0 }
 0x132   : > { %v1682_v62 = vor.u32 %v1681_v28, %v1680_v21  ;;  %v1685_v11 = vshll.u32 %v1684_v5, 23  ;;  %v1827_v48 = vand.u32 31, %v1825_v31  ;;  %2760 = vrsqrt.f32 %v3911_v39 }
 0x133   : > { %v3920_v52 = vsel %vm3870_vm7, %v3583_v9, %v1383_v20  ;;  %v1565_v46 = vadd.s32 536870912, %v1564_v10  ;;  %v1821_v3 = vor.u32 8388608, %v1820_v27  ;;  %v3923_v42 = vmul.f32 0.62831855, %v3908_v61 }
 0x134   : > { %v1686_v34 = vor.u32 4788187, %v1685_v11  ;;  %v1826_v13 = vshrl.u32 %v1825_v31, 5  ;;  %v1828_v1 = vsub.s32 32, %v1827_v48  ;;  %v1830_v58 = vshll.u32 %v4790_v49, %v1827_v48 }
 0x135   : > { %v3926_v38 = vshrl.u32 %v1565_v46, 30  ;;  %v1833_v29 = vshll.u32 %v4791_v12, %v1827_v48  ;;  %v1836_v21 = vshll.u32 %v4792_v32, %v1827_v48  ;;  %v1839_v44 = vshll.u32 %v4793_v57, %v1827_v48 }
 0x136   : > { %v1687_v45 = vand.u32 2147483647, %v1686_v34  ;;  %v1689_v20 = vcvt.s32.f32 %v1682_v62  ;;  %v1831_v55 = vshrl.u32 %v4791_v12, %v1828_v1  ;;  %v1834_v27 = vshrl.u32 %v4792_v32, %v1828_v1 }
 0x137   : > { %4841 = vst [vmem:[#allocation45_spill] sm:$0xff] %v3926_v38  ;;  %v1567_v28 = vshll.u32 %v3926_v38, 30  ;;  %v1837_v5 = vshrl.u32 %v4793_v57, %v1828_v1  ;;  %v1840_v8 = vshrl.u32 %v4794_v7, %v1828_v1  ;;  %v1842_v31 = vshll.u32 %v4794_v7, %v1827_v48 }
 0x138   : > { %v1829_v11 = vshrl.u32 %v4790_v49, %v1828_v1  ;;  %v1832_v46 = vor.u32 %v1831_v55, %v1830_v58  ;;  %v1835_v61 = vor.u32 %v1834_v27, %v1833_v29  ;;  %v1843_v62 = vshrl.u32 %v4781_v4, %v1828_v1 }
 0x139   : > { %v3940_v34 = vsub.s32 %v1564_v10, %v1567_v28  ;;  %v1838_v26 = vor.u32 %v1837_v5, %v1836_v21  ;;  %v1841_v9 = vor.u32 %v1840_v8, %v1839_v44  ;;  %vm1845_vm5 = vcmp.lt.s32.totalorder %v1826_v13, 1 }
 0x13a   : > { %v4842_v36 = vand.u32 2147483647, %v3647_v60  ;;  %v4843_v38 = vmov 0  ;;  %v1690_v0 = vmul.f32 %v1689_v20, %v1687_v45  ;;  %v1844_v6 = vor.u32 %v1843_v62, %v1842_v31 }
 0x13b   : > { %vm1847_vm11 = vcmp.lt.s32.totalorder %v1826_v13, 3  ;;  %v1861_v48 = vshll.u32 %v1821_v3, 8  ;;  %v1570_v58 = vsub.s32 0, %v3940_v34  ;;  %vm1846_vm9 = vcmp.lt.s32.totalorder %v1826_v13, 2 }
 0x13c   : > { %vm3944_vm6 = vcmp.le.f32.partialorder %v4842_v36, 0.7853982  ;;  %vm1848_vm0 = vcmp.lt.s32.totalorder %v1826_v13, 4  ;;  %v1853_v10 = vsel %vm1845_vm5, %v1832_v46, %v1835_v61  ;;  %v1849_v1 = vsel %vm1845_vm5, %v1829_v11, %v1832_v46 }
 0x13d   : > { %v4844_v38 = vsel %vm3944_vm6, 4294967295, %v4843_v38  ;;  %v1850_v29 = vsel %vm1848_vm0, %v1838_v26, 2102212464  ;;  %v1854_v21 = vsel %vm1848_vm0, %v1841_v9, 920167782  ;;  %v1713_v44 = vand.u32 2139095040, %v3923_v42 }
 0x13e   : > { %4845 = vst [vmem:[#allocation46_spill] sm:$0xff] %v4844_v38  ;;  %v2473_v36 = vmin.u32 %v1570_v58, %v3940_v34  ;;  %v1851_v55 = vsel %vm1847_vm11, %v1835_v61, %v1850_v29  ;;  %v1855_v45 = vsel %vm1847_vm11, %v1838_v26, %v1854_v21  ;;  %v1857_v3 = vsel %vm1845_vm5, %v1835_v61, %v1838_v26  ;;  %v3956_v20 = vpop.eup %2758 }
 0x13f   : > { %4846 = vst [vmem:[#allocation47_spill] sm:$0xff] %v3956_v20  ;;  %2762 = vsinq.f32 %v3829_v40  ;;  %v1691_v27 = vxor.u32 2147483648, %v1690_v0  ;;  %v1856_v28 = vsel %vm1846_vm9, %v1853_v10, %v1855_v45  ;;  %v1858_v5 = vsel %vm1848_vm0, %v1844_v6, 1326507024  ;;  %v2761_v8 = vpop.eup %2760 }
 0x140   : > { %2764 = vcosq.f32 %v3920_v52  ;;  %v1572_v31 = vclz %v2473_v36  ;;  %v1859_v11 = vsel %vm1847_vm11, %v1841_v9, %v1858_v5  ;;  %vm270_vm2 = vcmp.eq.f32.partialorder %v3911_v39, inf }
 0x141   : > { %v1852_v46 = vsel %vm1846_vm9, %v1849_v1, %v1851_v55  ;;  %v1860_v26 = vsel %vm1846_vm9, %v1857_v3, %v1859_v11  ;;  %v3965_v61 = vmul.u32.u64.low %v1861_v48, %v1856_v28  ;;  %v3966_v62 = vmul.u32.u64.high %v1861_v48, %v1856_v28, %v3965_v61 }
 0x142   : > { %v2474_v40 = vadd.s32 4294967294, %v1572_v31  ;;  %v3968_v58 = vmul.u32.u64.low %v1861_v48, %v1860_v26  ;;  %v3969_v29 = vmul.u32.u64.high %v1861_v48, %v1860_v26, %v3968_v58  ;;  %v1714_v6 = vshrl.u32 %v1713_v44, 23 }
 0x143   : > { %vm4847_vm0 = vcmp.lt.s32.totalorder %v3647_v60, 0  ;;  %v4734_v21 = vand.u32 2147483647, %v3923_v42  ;;  %v269_v9 = vmul.f32 %v2761_v8, %v3911_v39  ;;  %v273_v36 = vand.u32 2147483648, %v3911_v39  ;;  %v3993_v8 = vld [vmem:[%s2870_s15 + $0x70] sm:$0xff] }
 0x144   : > { %v1692_v10 = vsel %vm4847_vm0, %v1691_v27, %v1690_v0  ;;  %v1560_v13 = vadd.s32 %v3881_v14, %v3889_v33  ;;  %vm2475_vm5 = vcmp.lt.s32.totalorder %v2474_v40, 0  ;;  %v2480_v1 = vadd.s32 4294967169, %v1714_v6 }
 0x145   : > { %vm272_vm11 = vcmp.eq.f32.partialorder %v3911_v39, 0.0  ;;  %v1575_v55 = vsel %vm2475_vm5, 0, %v2474_v40  ;;  %v1868_v45 = vmul.u32 %v1861_v48, %v1852_v46  ;;  %v1871_v44 = vadd.s32 1, %v3966_v62 }
 0x146   : > { %v271_v0 = vsel %vm270_vm2, %v3911_v39, %v269_v9  ;;  %v1695_v3 = vsel %vm3944_vm6, %v3647_v60, %v1692_v10  ;;  %v1576_v27 = vsub.s32 32, %v1575_v55  ;;  %v1577_v14 = vshll.u32 %v3940_v34, %v1575_v55 }
 0x147   : > { %v1580_v33 = vsub.s32 4294967266, %v1575_v55  ;;  %vm1870_vm9 = vc.u32 %v3969_v29, %v3965_v61  ;;  %v1717_v28 = vand.u32 8388607, %v4734_v21  ;;  %v1720_v48 = vadd.s32 1, %v2480_v1 }
 0x148   : > { %v3990_v5 = vsel %vm272_vm11, %v273_v36, %v271_v0  ;;  %2766 = vsinq.f32 %v3920_v52  ;;  %v1578_v39 = vshrl.u32 %v1560_v13, %v1576_v27  ;;  %v1872_v11 = vsel %vm1870_vm9, %v1871_v44, %v3966_v62 }
 0x149   : > { %4848 = vst [vmem:[#allocation48_spill] sm:$0xff] %v3990_v5  ;;  %v1581_v31 = vadd.s32 127, %v1580_v33  ;;  %353 = vperm.xlu1 %2657, %v3990_v5   ;;  %2768 = vcosq.f32 %v1695_v3  ;;  %v1873_v34 = vadd.s32 %v1872_v11, %v1868_v45  ;;  %vm1721_vm2 = vcmp.gt.s32.totalorder %v1720_v48, 0 }
 0x14a   : > { %v1579_v46 = vor.u32 %v1578_v39, %v1577_v14  ;;  %v1722_v40 = vsel %vm1721_vm2, %v1720_v48, 0  ;;  %2770 = vrsqrt.f32 %v3993_v8  ;;  %v1718_v6 = vor.u32 8388608, %v1717_v28 }
 0x14b   : > { %v1582_v26 = vshll.u32 %v1581_v31, 23  ;;  %2772 = vsinq.f32 %v1695_v3  ;;  %v1874_v58 = vadd.s32 536870912, %v1873_v34  ;;  %v1724_v10 = vand.u32 31, %v1722_v40 }
 0x14c   : > { %v3999_v9 = vpop.eup %2762  ;;  %v1586_v36 = vcvt.s32.f32 %v1579_v46  ;;  %v4002_v62 = vadd.s32 %v3965_v61, %v3969_v29  ;;  %v1723_v13 = vshrl.u32 %v1722_v40, 5  ;;  %v4014_v61 = vmul.f32 0.62831855, %v3990_v5 }
 0x14d   : > { %4849 = vst [vmem:[#allocation49_spill] sm:$0xff] %v3999_v9  ;;  %v1583_v52 = vor.u32 4788187, %v1582_v26  ;;  %v4004_v1 = vpop.eup %2764  ;;  %v4007_v55 = vshrl.u32 %v1874_v58, 30  ;;  %v1725_v45 = vsub.s32 32, %v1724_v10  ;;  %v1727_v44 = vshll.u32 %v4790_v49, %v1724_v10 }
 0x14e   : > { %4850 = vst [vmem:[#allocation50_spill] sm:$0xff] %v4004_v1  ;;  %v1730_v0 = vshll.u32 %v4791_v12, %v1724_v10  ;;  %v1733_v27 = vshll.u32 %v4792_v32, %v1724_v10  ;;  %v1736_v14 = vshll.u32 %v4793_v57, %v1724_v10  ;;  %v1739_v48 = vshll.u32 %v4794_v7, %v1724_v10 }
 0x14f   : > { %4851 = vst [vmem:[#allocation51_spill] sm:$0xff] %v4007_v55  ;;  %v1584_v3 = vand.u32 2147483647, %v1583_v52  ;;  %v1876_v29 = vshll.u32 %v4007_v55, 30  ;;  %v1728_v33 = vshrl.u32 %v4791_v12, %v1725_v45  ;;  %v1731_v28 = vshrl.u32 %v4792_v32, %v1725_v45 }
 0x150   : > { %v4852_v39 = vand.u32 2147483647, %v3761_v43  ;;  %v4853_v31 = vmov 0  ;;  %v1734_v46 = vshrl.u32 %v4793_v57, %v1725_v45  ;;  %v1737_v26 = vshrl.u32 %v4794_v7, %v1725_v45 }
 0x151   : > { %v1587_v11 = vmul.f32 %v1586_v36, %v1584_v3  ;;  %v1740_v40 = vshrl.u32 %v4781_v4, %v1725_v45  ;;  %v4029_v58 = vsub.s32 %v1873_v34, %v1876_v29  ;;  %v1729_v52 = vor.u32 %v1728_v33, %v1727_v44 }
 0x152   : > { %vm4022_vm5 = vcmp.le.f32.partialorder %v4852_v39, 0.7853982  ;;  %v1732_v21 = vor.u32 %v1731_v28, %v1730_v0  ;;  %vm1742_vm11 = vcmp.lt.s32.totalorder %v1723_v13, 1  ;;  %v1726_v10 = vshrl.u32 %v4790_v49, %v1725_v45 }
 0x153   : > { %v4854_v31 = vsel %vm4022_vm5, 4294967295, %v4853_v31  ;;  %v1735_v39 = vor.u32 %v1734_v46, %v1733_v27  ;;  %v1738_v55 = vor.u32 %v1737_v26, %v1736_v14  ;;  %v1758_v5 = vshll.u32 %v1718_v6, 8 }
 0x154   : > { %4855 = vst [vmem:[#allocation52_spill] sm:$0xff] %v4854_v31  ;;  %v1879_v36 = vsub.s32 0, %v4029_v58  ;;  %v1741_v3 = vor.u32 %v1740_v40, %v1739_v48  ;;  %vm1744_vm2 = vcmp.lt.s32.totalorder %v1723_v13, 3  ;;  %vm1745_vm0 = vcmp.lt.s32.totalorder %v1723_v13, 4 }
 0x155   : > { %v1588_v20 = vxor.u32 2147483648, %v1587_v11  ;;  %vm1743_vm4 = vcmp.lt.s32.totalorder %v1723_v13, 2  ;;  %v1747_v34 = vsel %vm1745_vm0, %v1735_v39, 2102212464  ;;  %v1750_v44 = vsel %vm1742_vm11, %v1729_v52, %v1732_v21  ;;  %v4036_v0 = vpop.eup %2766 }
 0x156   : > { %4856 = vst [vmem:[#allocation53_spill] sm:$0xff] %v4036_v0  ;;  %v2485_v29 = vmin.u32 %v1879_v36, %v4029_v58  ;;  %v1751_v45 = vsel %vm1745_vm0, %v1738_v55, 920167782  ;;  %v2022_v6 = vand.u32 2139095040, %v4014_v61  ;;  %v4042_v14 = vpop.eup %2768  ;;  %v1746_v33 = vsel %vm1742_vm11, %v1726_v10, %v1729_v52 }
 0x157   : > { %4857 = vst [vmem:[#allocation54_spill] sm:$0xff] %v4042_v14  ;;  %v1748_v28 = vsel %vm1744_vm2, %v1732_v21, %v1747_v34  ;;  %v1752_v48 = vsel %vm1744_vm2, %v1735_v39, %v1751_v45  ;;  %v1754_v46 = vsel %vm1742_vm11, %v1732_v21, %v1735_v39  ;;  %v2771_v26 = vpop.eup %2770  ;;  %v1755_v9 = vsel %vm1745_vm0, %v1741_v3, 1326507024 }
 0x158   : > { %v1881_v40 = vclz %v2485_v29  ;;  %v1753_v36 = vsel %vm1743_vm4, %v1750_v44, %v1752_v48  ;;  %v266_v27 = vand.u32 2147483648, %v3993_v8  ;;  %v4051_v1 = vpop.eup %2772  ;;  %vm4859_vm9 = vcmp.lt.s32.totalorder %v3761_v43, 0 }
 0x159   : > { %4858 = vst [vmem:[#allocation55_spill] sm:$0xff] %v4051_v1  ;;  %v1589_v0 = vsel %vm4859_vm9, %v1588_v20, %v1587_v11  ;;  %v1756_v52 = vsel %vm1744_vm2, %v1738_v55, %v1755_v9  ;;  %v4056_v10 = vmul.u32.u64.low %v1758_v5, %v1753_v36  ;;  %v4057_v34 = vmul.u32.u64.high %v1758_v5, %v1753_v36, %v4056_v10 }
 0x15a   : > { %v2486_v21 = vadd.s32 4294967294, %v1881_v40  ;;  %v1749_v39 = vsel %vm1743_vm4, %v1746_v33, %v1748_v28  ;;  %v1757_v44 = vsel %vm1743_vm4, %v1754_v46, %v1756_v52  ;;  %v2023_v29 = vshrl.u32 %v2022_v6, 23 }
 0x15b   : > { %v4062_v3 = vmul.u32.u64.low %v1758_v5, %v1757_v44  ;;  %v4063_v45 = vmul.u32.u64.high %v1758_v5, %v1757_v44, %v4062_v3  ;;  %v4860_v48 = vand.u32 2147483647, %v4014_v61  ;;  %v262_v20 = vmul.f32 %v2771_v26, %v3993_v8 }
 0x15c   : > { %v1592_v9 = vsel %vm4022_vm5, %v3761_v43, %v1589_v0  ;;  %vm2487_vm0 = vcmp.lt.s32.totalorder %v2486_v21, 0  ;;  %v2492_v55 = vadd.s32 4294967169, %v2023_v29  ;;  %vm265_vm11 = vcmp.eq.f32.partialorder %v3993_v8, 0.0 }
 0x15d   : > { %v2026_v38 = vand.u32 8388607, %v4860_v48  ;;  %v1884_v11 = vsel %vm2487_vm0, 0, %v2486_v21  ;;  %v1765_v13 = vmul.u32 %v1758_v5, %v1749_v39  ;;  %v1768_v6 = vadd.s32 1, %v4057_v34 }
 0x15e   : > { %vm4861_vm4 = vcmp.eq.f32.partialorder %v3993_v8, inf  ;;  %v1885_v28 = vsub.s32 32, %v1884_v11  ;;  %v1886_v46 = vshll.u32 %v4029_v58, %v1884_v11  ;;  %v1889_v26 = vsub.s32 4294967266, %v1884_v11 }
 0x15f   : > { %v264_v33 = vsel %vm4861_vm4, %v3993_v8, %v262_v20  ;;  %v2029_v40 = vadd.s32 1, %v2492_v55  ;;  %2774 = vcosq.f32 %v1592_v9  ;;  %vm1767_vm9 = vc.u32 %v4063_v45, %v4056_v10 }
 0x160   : > { %v2027_v0 = vor.u32 8388608, %v2026_v38  ;;  %v4079_v36 = vsel %vm265_vm11, %v266_v27, %v264_v33  ;;  %v1887_v5 = vshrl.u32 %v4002_v62, %v1885_v28  ;;  %v1890_v52 = vadd.s32 127, %v1889_v26 }
 0x161   : > { %4862 = vst [vmem:[#allocation56_spill] sm:$0xff] %v4079_v36  ;;  %v1769_v21 = vsel %vm1767_vm9, %v1768_v6, %v4057_v34  ;;  %vm2030_vm2 = vcmp.gt.s32.totalorder %v2029_v40, 0  ;;  %348 = vperm.xlu0 %2656, %v4079_v36   ;;  %2776 = vsinq.f32 %v1592_v9  ;;  %v4086_v39 = vmul.f32 0.62831855, %v4079_v36 }
 0x162   : > { %v1770_v8 = vadd.s32 %v1769_v21, %v1765_v13  ;;  %v2031_v58 = vsel %vm2030_vm2, %v2029_v40, 0  ;;  %v4863_v38 = vand.u32 2147483647, %v3838_v53  ;;  %v4864_v27 = vmov 0 }
 0x163   : > { %v1888_v62 = vor.u32 %v1887_v5, %v1886_v46  ;;  %v1891_v44 = vshll.u32 %v1890_v52, 23  ;;  %v2033_v34 = vand.u32 31, %v2031_v58  ;;  %v2032_v48 = vshrl.u32 %v2031_v58, 5 }
 0x164   : > { %vm4090_vm11 = vcmp.le.f32.partialorder %v4863_v38, 0.7853982  ;;  %v1771_v3 = vadd.s32 536870912, %v1770_v8  ;;  %v4095_v20 = vshll.u32 %v2027_v0, 8  ;;  %v1919_v9 = vand.u32 2139095040, %v4086_v39 }
 0x165   : > { %v4865_v27 = vsel %vm4090_vm11, 4294967295, %v4864_v27  ;;  %v1892_v55 = vor.u32 4788187, %v1891_v44  ;;  %v1895_v11 = vcvt.s32.f32 %v1888_v62  ;;  %v2034_v13 = vsub.s32 32, %v2033_v34 }
 0x166   : > { %v2036_v6 = vshll.u32 %v4790_v49, %v2033_v34  ;;  %v4099_v33 = vshrl.u32 %v1771_v3, 30  ;;  %v2039_v28 = vshll.u32 %v4791_v12, %v2033_v34  ;;  %v2042_v46 = vshll.u32 %v4792_v32, %v2033_v34 }
 0x167   : > { %v2045_v26 = vshll.u32 %v4793_v57, %v2033_v34  ;;  %v1893_v40 = vand.u32 2147483647, %v1892_v55  ;;  %v2035_v5 = vshrl.u32 %v4790_v49, %v2034_v13  ;;  %v2037_v0 = vshrl.u32 %v4791_v12, %v2034_v13 }
 0x168   : > { %4866 = vst [vmem:[#allocation57_spill] sm:$0xff] %v4099_v33  ;;  %v2040_v52 = vshrl.u32 %v4792_v32, %v2034_v13  ;;  %v1773_v21 = vshll.u32 %v4099_v33, 30  ;;  %v2043_v58 = vshrl.u32 %v4793_v57, %v2034_v13  ;;  %v2046_v38 = vshrl.u32 %v4794_v7, %v2034_v13 }
 0x169   : > { %v2048_v62 = vshll.u32 %v4794_v7, %v2033_v34  ;;  %v1896_v44 = vmul.f32 %v1895_v11, %v1893_v40  ;;  %v2038_v3 = vor.u32 %v2037_v0, %v2036_v6  ;;  %v2049_v36 = vshrl.u32 %v4781_v4, %v2034_v13 }
 0x16a   : > { %v2041_v29 = vor.u32 %v2040_v52, %v2039_v28  ;;  %v4112_v55 = vsub.s32 %v1770_v8, %v1773_v21  ;;  %v2044_v14 = vor.u32 %v2043_v58, %v2042_v46  ;;  %v2047_v60 = vor.u32 %v2046_v38, %v2045_v26 }
 0x16b   : > { %vm2051_vm4 = vcmp.lt.s32.totalorder %v2032_v48, 1  ;;  %v1897_v1 = vxor.u32 2147483648, %v1896_v44  ;;  %v2050_v31 = vor.u32 %v2049_v36, %v2048_v62  ;;  %vm2052_vm9 = vcmp.lt.s32.totalorder %v2032_v48, 2 }
 0x16c   : > { %vm2053_vm2 = vcmp.lt.s32.totalorder %v2032_v48, 3  ;;  %v1776_v33 = vsub.s32 0, %v4112_v55  ;;  %vm2054_vm0 = vcmp.lt.s32.totalorder %v2032_v48, 4  ;;  %v2055_v43 = vsel %vm2051_vm4, %v2035_v5, %v2038_v3  ;;  %v4115_v34 = vpop.eup %2774 }
 0x16d   : > { %v2059_v54 = vsel %vm2051_vm4, %v2038_v3, %v2041_v29  ;;  %vm4867_vm7 = vcmp.lt.s32.totalorder %v3838_v53, 0  ;;  %v2056_v13 = vsel %vm2054_vm0, %v2044_v14, 2102212464  ;;  %v2060_v8 = vsel %vm2054_vm0, %v2047_v60, 920167782 }
 0x16e   : > { %v1898_v11 = vsel %vm4867_vm7, %v1897_v1, %v1896_v44  ;;  %v2063_v6 = vsel %vm2051_vm4, %v2041_v29, %v2044_v14  ;;  %v2481_v36 = vmin.u32 %v1776_v33, %v4112_v55  ;;  %v2057_v46 = vsel %vm2053_vm2, %v2041_v29, %v2056_v13  ;;  %v4125_v40 = vpop.eup %2776 }
 0x16f   : > { %v1901_v28 = vsel %vm4090_vm11, %v3838_v53, %v1898_v11  ;;  %v2061_v26 = vsel %vm2053_vm2, %v2044_v14, %v2060_v8  ;;  %v1766_v5 = vadd.s32 %v4056_v10, %v4063_v45  ;;  %v2064_v0 = vsel %vm2054_vm0, %v2050_v31, 1326507024 }
 0x170   : > { %v2062_v1 = vsel %vm2052_vm9, %v2059_v54, %v2061_v26  ;;  %v1916_v52 = vand.u32 2147483647, %v4086_v39  ;;  %2778 = vcosq.f32 %v1901_v28  ;;  %v1778_v21 = vclz %v2481_v36 }
 0x171   : > { %v2058_v58 = vsel %vm2052_vm9, %v2055_v43, %v2057_v46  ;;  %v2065_v33 = vsel %vm2053_vm2, %v2047_v60, %v2064_v0  ;;  %2780 = vsinq.f32 %v1901_v28  ;;  %v1920_v45 = vshrl.u32 %v1919_v9, 23 }
 0x172   : > { %v2066_v29 = vsel %vm2052_vm9, %v2063_v6, %v2065_v33  ;;  %v4135_v14 = vmul.u32.u64.low %v4095_v20, %v2062_v1  ;;  %v4136_v38 = vmul.u32.u64.high %v4095_v20, %v2062_v1, %v4135_v14  ;;  %v2482_v10 = vadd.s32 4294967294, %v1778_v21 }
 0x173   : > { %v4140_v54 = vmul.u32.u64.low %v4095_v20, %v2066_v29  ;;  %v4141_v31 = vmul.u32.u64.high %v4095_v20, %v2066_v29, %v4140_v54  ;;  %v2074_v62 = vmul.u32 %v4095_v20, %v2058_v58  ;;  %v1923_v60 = vand.u32 8388607, %v1916_v52 }
 0x174   : > { %v4868_v43 = vsub.s32 4, %v3001_v63  ;;  %vm4869_vm0 = vcmp.lt.s32.totalorder %v2880_v19, 0  ;;  %v776_v44 = vxor.u32 2147483648, %v3389_v17  ;;  %vm2483_vm4 = vcmp.lt.s32.totalorder %v2482_v10, 0 }
 0x175   : > { %v2488_v3 = vadd.s32 4294967169, %v1920_v45  ;;  %v779_v9 = vxor.u32 2147483648, %v3239_v22  ;;  %v1781_v13 = vsel %vm2483_vm4, 0, %v2482_v10  ;;  %v2077_v20 = vadd.s32 1, %v4136_v38 }
 0x176   : > { %v767_v48 = vsel %vm4869_vm0, %v4868_v43, %v3001_v63  ;;  %v869_v6 = vsub.s32 4, %v3099_v18  ;;  %v1782_v28 = vsub.s32 32, %v1781_v13  ;;  %v1783_v36 = vshll.u32 %v4112_v55, %v1781_v13 }
 0x177   : > { %v769_v11 = vsel %vm3157_vm10, 0, %v767_v48  ;;  %v1786_v46 = vsub.s32 4294967266, %v1781_v13  ;;  %v1924_v63 = vor.u32 8388608, %v1923_v60  ;;  %v4159_v26 = vadd.s32 %v4135_v14, %v4141_v31 }
 0x178   : > { %v773_v8 = vand.u32 3, %v769_v11  ;;  %vm2076_vm9 = vc.u32 %v4141_v31, %v4135_v14  ;;  %v1926_v50 = vadd.s32 1, %v2488_v3  ;;  %v1784_v1 = vshrl.u32 %v1766_v5, %v1782_v28 }
 0x179   : > { %v1787_v0 = vadd.s32 127, %v1786_v46  ;;  %v2078_v21 = vsel %vm2076_vm9, %v2077_v20, %v4136_v38  ;;  %vm4759_vm0 = vcmp.lt.s32.totalorder %v3923_v42, 0  ;;  %v4870_v33 = vand.u32 2147483647, %v3923_v42 }
 0x17a   : > { %vm774_vm10 = vcmp.lt.s32.totalorder %v773_v8, 2  ;;  %vm775_vm2 = vcmp.eq.s32.totalorder %v773_v8, 0  ;;  %v2079_v58 = vadd.s32 %v2078_v21, %v2074_v62  ;;  %vm1927_vm4 = vcmp.gt.s32.totalorder %v1926_v50, 0 }
 0x17b   : > { %v777_v55 = vsel %vm775_vm2, %v3239_v22, %v776_v44  ;;  %vm778_vm7 = vcmp.eq.s32.totalorder %v773_v8, 2  ;;  %vm4167_vm11 = vcmp.le.f32.partialorder %v4870_v33, 0.7853982  ;;  %v4871_v29 = vmov 0 }
 0x17c   : > { %v4872_v29 = vsel %vm4167_vm11, 4294967295, %v4871_v29  ;;  %v1785_v14 = vor.u32 %v1784_v1, %v1783_v36  ;;  %v1788_v10 = vshll.u32 %v1787_v0, 23  ;;  %v1928_v5 = vsel %vm1927_vm4, %v1926_v50, 0 }
 0x17d   : > { %v780_v54 = vsel %vm778_vm7, %v779_v9, %v3389_v17  ;;  %v2080_v38 = vadd.s32 536870912, %v2079_v58  ;;  %v1930_v31 = vand.u32 31, %v1928_v5  ;;  %v4172_v45 = vshll.u32 %v1924_v63, 8  ;;  %v4177_v44 = vpop.eup %2778 }
 0x17e   : > { %v781_v62 = vsel %vm774_vm10, %v777_v55, %v780_v54  ;;  %v1789_v60 = vor.u32 4788187, %v1788_v10  ;;  %v1792_v22 = vcvt.s32.f32 %v1785_v14  ;;  %v1929_v43 = vshrl.u32 %v1928_v5, 5  ;;  %v4183_v9 = vpop.eup %2780 }
 0x17f   : > { %vm4873_vm9 = vweird.f32 %v2880_v19  ;;  %v4179_v3 = vshrl.u32 %v2080_v38, 30  ;;  %v1931_v11 = vsub.s32 32, %v1930_v31  ;;  %v1933_v13 = vshll.u32 %v4790_v49, %v1930_v31 }
 0x180   : > { %v782_v48 = vsel %vm4873_vm9, nan, %v781_v62  ;;  %v1936_v17 = vshll.u32 %v4791_v12, %v1930_v31  ;;  %v1790_v20 = vand.u32 2147483647, %v1789_v60  ;;  %v1939_v8 = vshll.u32 %v4792_v32, %v1930_v31 }
 0x181   : > { %v1942_v28 = vshll.u32 %v4793_v57, %v1930_v31  ;;  %v1945_v36 = vshll.u32 %v4794_v7, %v1930_v31  ;;  %v2082_v19 = vshll.u32 %v4179_v3, 30  ;;  %v1932_v46 = vshrl.u32 %v4790_v49, %v1931_v11 }
 0x182   : > { %v1934_v63 = vshrl.u32 %v4791_v12, %v1931_v11  ;;  %v1937_v50 = vshrl.u32 %v4792_v32, %v1931_v11  ;;  %v1793_v1 = vmul.f32 %v1792_v22, %v1790_v20  ;;  %v1940_v0 = vshrl.u32 %v4793_v57, %v1931_v11 }
 0x183   : > { %v1943_v21 = vshrl.u32 %v4794_v7, %v1931_v11  ;;  %v1946_v55 = vshrl.u32 %v4781_v4, %v1931_v11  ;;  %v4195_v33 = vsub.s32 %v2079_v58, %v2082_v19  ;;  %vm1948_vm7 = vcmp.lt.s32.totalorder %v1929_v43, 1 }
 0x184   : > { %v1935_v14 = vor.u32 %v1934_v63, %v1933_v13  ;;  %v1938_v10 = vor.u32 %v1937_v50, %v1936_v17  ;;  %v1794_v5 = vxor.u32 2147483648, %v1793_v1  ;;  %v1941_v54 = vor.u32 %v1940_v0, %v1939_v8 }
 0x185   : > { %v1944_v38 = vor.u32 %v1943_v21, %v1942_v28  ;;  %v1947_v49 = vor.u32 %v1946_v55, %v1945_v36  ;;  %v2085_v12 = vsub.s32 0, %v4195_v33  ;;  %vm1949_vm10 = vcmp.lt.s32.totalorder %v1929_v43, 2 }
 0x186   : > { %vm1950_vm2 = vcmp.lt.s32.totalorder %v1929_v43, 3  ;;  %vm1951_vm4 = vcmp.lt.s32.totalorder %v1929_v43, 4  ;;  %v1795_v32 = vsel %vm4759_vm0, %v1794_v5, %v1793_v1  ;;  %v1952_v57 = vsel %vm1948_vm7, %v1932_v46, %v1935_v14 }
 0x187   : > { %v1953_v4 = vsel %vm1951_vm4, %v1941_v54, 2102212464  ;;  %v1956_v7 = vsel %vm1948_vm7, %v1935_v14, %v1938_v10  ;;  %vm444_vm9 = vcmp.lt.f32.partialorder %v2876_v16, 5.0  ;;  %v1798_v58 = vsel %vm4167_vm11, %v3923_v42, %v1795_v32 }
 0x188   : > { %v2493_v31 = vmin.u32 %v2085_v12, %v4195_v33  ;;  %v1954_v62 = vsel %vm1950_vm2, %v1938_v10, %v1953_v4  ;;  %v1957_v60 = vsel %vm1951_vm4, %v1944_v38, 920167782  ;;  %v1960_v13 = vsel %vm1948_vm7, %v1938_v10, %v1941_v54 }
 0x189   : > { %v1955_v22 = vsel %vm1949_vm10, %v1952_v57, %v1954_v62  ;;  %v1958_v11 = vsel %vm1950_vm2, %v1941_v54, %v1957_v60  ;;  %vm4874_vm0 = vcmp.lt.s32.totalorder %v2895_v30, 0  ;;  %2782 = vcosq.f32 %v1798_v58 }
 0x18a   : > { %v870_v17 = vsel %vm4874_vm0, %v869_v6, %v3099_v18  ;;  %v2087_v20 = vclz %v2493_v31  ;;  %v1959_v8 = vsel %vm1949_vm10, %v1956_v7, %v1958_v11  ;;  %v1961_v28 = vsel %vm1951_vm4, %v1947_v49, 1326507024 }
 0x18b   : > { %2784 = vsinq.f32 %v1798_v58  ;;  %v1962_v36 = vsel %vm1950_vm2, %v1944_v38, %v1961_v28  ;;  %v4222_v19 = vmul.u32.u64.low %v4172_v45, %v1959_v8  ;;  %v4223_v46 = vmul.u32.u64.high %v4172_v45, %v1959_v8, %v4222_v19  ;;  %v4879_v28 = vld [vmem:[#allocation2_spill] sm:$0xff] }
 0x18c   : > { %v2494_v63 = vadd.s32 4294967294, %v2087_v20  ;;  %v1963_v50 = vsel %vm1949_vm10, %v1960_v13, %v1962_v36  ;;  %v1971_v1 = vmul.u32 %v4172_v45, %v1955_v22  ;;  %v872_v18 = vsel %vm3300_vm15, 0, %v870_v17 }
 0x18d   : > { %v4230_v6 = vmul.u32.u64.low %v4172_v45, %v1963_v50  ;;  %v4231_v0 = vmul.u32.u64.high %v4172_v45, %v1963_v50, %v4230_v6  ;;  %v876_v21 = vand.u32 3, %v872_v18  ;;  %v879_v55 = vxor.u32 2147483648, %v3488_v35 }
 0x18e   : > { %vm2495_vm7 = vcmp.lt.s32.totalorder %v2494_v63, 0  ;;  %v882_v14 = vxor.u32 2147483648, %v3482_v56  ;;  %v2124_v10 = vadd.f32 1.0, %v782_v48  ;;  %v560_v43 = vsub.s32 4, %v3039_v41 }
 0x18f   : > { %v2090_v5 = vsel %vm2495_vm7, 0, %v2494_v63  ;;  %v1974_v54 = vadd.s32 1, %v4223_v46  ;;  %vm877_vm10 = vcmp.lt.s32.totalorder %v876_v21, 2  ;;  %vm878_vm15 = vcmp.eq.s32.totalorder %v876_v21, 0 }
 0x190   : > { %v2091_v25 = vsub.s32 32, %v2090_v5  ;;  %v2092_v45 = vshll.u32 %v4195_v33, %v2090_v5  ;;  %v2095_v38 = vsub.s32 4294967266, %v2090_v5  ;;  %v880_v49 = vsel %vm878_vm15, %v3482_v56, %v879_v55 }
 0x191   : > { %vm1973_vm2 = vc.u32 %v4231_v0, %v4222_v19  ;;  %vm875_vm4 = vweird.f32 %v2895_v30  ;;  %vm881_vm0 = vcmp.eq.s32.totalorder %v876_v21, 2  ;;  %v2140_v12 = vmul.f32 0.5, %v2124_v10 }
 0x192   : > { %v2093_v48 = vshrl.u32 %v4159_v26, %v2091_v25  ;;  %v2096_v32 = vadd.s32 127, %v2095_v38  ;;  %v1975_v57 = vsel %vm1973_vm2, %v1974_v54, %v4223_v46  ;;  %v883_v4 = vsel %vm881_vm0, %v882_v14, %v3488_v35  ;;  %v4882_v54 = vld [vmem:[#allocation4_spill] sm:$0xff]  ;;  %v4884_v25 = vld [vmem:[#allocation3_spill] sm:$0xff] }
 0x193   : > { %vm4761_vm7 = vcmp.lt.s32.totalorder %v4014_v61, 0  ;;  %v1976_v7 = vadd.s32 %v1975_v57, %v1971_v1  ;;  %v884_v33 = vsel %vm877_vm10, %v880_v49, %v883_v4  ;;  %v2156_v56 = vsel %vm444_vm9, %v2140_v12, 0.0  ;;  %v4880_v1 = vld [vmem:[#allocation10_spill] sm:$0xff]  ;;  %v4886_v12 = vld [vmem:[#allocation24_spill] sm:$0xff]  ;;  %v4887_v4 = vld [vmem:[#allocation21_spill] sm:$0xff] }
 0x194   : > { %vm4875_vm15 = vcmp.lt.s32.totalorder %v2886_v23, 0  ;;  %v4876_v58 = vand.u32 2147483647, %v4014_v61  ;;  %v2094_v31 = vor.u32 %v2093_v48, %v2092_v45  ;;  %v2097_v35 = vshll.u32 %v2096_v32, 23 }
 0x195   : > { %v561_v30 = vsel %vm4875_vm15, %v560_v43, %v3039_v41  ;;  %v885_v62 = vsel %vm875_vm4, nan, %v884_v33  ;;  %v1977_v22 = vadd.s32 536870912, %v1976_v7  ;;  %vm566_vm9 = vweird.f32 %v2886_v23 }
 0x196   : > { %vm4254_vm11 = vcmp.le.f32.partialorder %v4876_v58, 0.7853982  ;;  %v563_v60 = vsel %vm3221_vm14, 0, %v561_v30  ;;  %v2125_v11 = vadd.f32 1.0, %v885_v62  ;;  %v2098_v13 = vor.u32 4788187, %v2097_v35  ;;  %v4263_v8 = vpop.eup %2782 }
 0x197   : > { %v567_v16 = vand.u32 3, %v563_v60  ;;  %v2101_v17 = vcvt.s32.f32 %v2094_v31  ;;  %v570_v41 = vxor.u32 2147483648, %v3478_v51  ;;  %v573_v20 = vxor.u32 2147483648, %v3396_v59 }
 0x198   : > { %vm442_vm0 = vcmp.lt.f32.partialorder %v4879_v28, 5.0  ;;  %v4266_v36 = vshrl.u32 %v1977_v22, 30  ;;  %v2141_v46 = vmul.f32 0.5, %v2125_v11  ;;  %v4268_v15 = vpop.eup %2784  ;;  %v2099_v63 = vand.u32 2147483647, %v2098_v13 }
 0x199   : > { %vm568_vm10 = vcmp.lt.s32.totalorder %v567_v16, 2  ;;  %vm569_vm14 = vcmp.eq.s32.totalorder %v567_v16, 0  ;;  %vm572_vm2 = vcmp.eq.s32.totalorder %v567_v16, 2  ;;  %v663_v18 = vsub.s32 4, %v4880_v1 }
 0x19a   : > { %v571_v50 = vsel %vm569_vm14, %v3396_v59, %v570_v41  ;;  %v4273_v6 = vadd.s32 %v4222_v19, %v4231_v0  ;;  %v1979_v21 = vshll.u32 %v4266_v36, 30  ;;  %vm4881_vm4 = vcmp.lt.f32.partialorder %v2888_v24, 5.0  ;;  %v4911_v0 = vld [vmem:[#allocation5_spill] sm:$0xff] }
 0x19b   : > { %v2157_v55 = vsel %vm4881_vm4, %v2141_v46, 0.0  ;;  %v574_v14 = vsel %vm572_vm2, %v573_v20, %v3478_v51  ;;  %v2102_v10 = vmul.f32 %v2101_v17, %v2099_v63  ;;  %vm4883_vm15 = vcmp.lt.s32.totalorder %v4882_v54, 0  ;;  %v4890_v20 = vld [vmem:[#allocation42_spill] sm:$0xff]  ;;  %v4891_v63 = vld [vmem:[#allocation13_spill] sm:$0xff] }
 0x19c   : > { %v2663_v43 = vpack.i.bf16 %v2157_v55, %v2156_v56  ;;  %v575_v5 = vsel %vm568_vm10, %v571_v50, %v574_v14  ;;  %v664_v59 = vsel %vm4883_vm15, %v663_v18, %v4880_v1  ;;  %vm443_vm14 = vcmp.lt.f32.partialorder %v4884_v25, 5.0  ;;  %v4892_v1 = vld [vmem:[#allocation18_spill] sm:$0xff]  ;;  %v4894_v55 = vld [vmem:[#allocation41_spill] sm:$0xff] }
 0x19d   : > { %v4283_v45 = vsub.s32 %v1976_v7, %v1979_v21  ;;  %v576_v19 = vsel %vm566_vm9, nan, %v575_v5  ;;  %v666_v24 = vsel %vm3434_vm3, 0, %v664_v59  ;;  %v673_v38 = vxor.u32 2147483648, %v3673_v2  ;;  %v4893_v21 = vld [vmem:[#allocation11_spill] sm:$0xff] }
 0x19e   : > { %v2103_v51 = vxor.u32 2147483648, %v2102_v10  ;;  %2664 = vperm.xlu1 %2657, %v2663_v43   ;;  %v670_v49 = vand.u32 3, %v666_v24  ;;  %v676_v48 = vxor.u32 2147483648, %v4886_v12  ;;  %v2122_v32 = vadd.f32 1.0, %v576_v19 }
 0x19f   : > { %v1982_v57 = vsub.s32 0, %v4283_v45  ;;  %vm669_vm10 = vweird.f32 %v4882_v54  ;;  %v1178_v7 = vsub.s32 4, %v4887_v4  ;;  %vm1184_vm2 = vweird.f32 %v3377_v37 }
 0x1a0   : > { %v2104_v23 = vsel %vm4761_vm7, %v2103_v51, %v2102_v10  ;;  %vm671_vm3 = vcmp.lt.s32.totalorder %v670_v49, 2  ;;  %vm672_vm9 = vcmp.eq.s32.totalorder %v670_v49, 0  ;;  %vm675_vm4 = vcmp.eq.s32.totalorder %v670_v49, 2 }
 0x1a1   : > { %v4300_v33 = vsel %vm4254_vm11, %v4014_v61, %v2104_v23  ;;  %v2489_v56 = vmin.u32 %v1982_v57, %v4283_v45  ;;  %v674_v30 = vsel %vm672_vm9, %v4886_v12, %v673_v38  ;;  %v677_v58 = vsel %vm675_vm4, %v676_v48, %v3673_v2  ;;  %v4897_v38 = vld [vmem:[#allocation9_spill] sm:$0xff] }
 0x1a2   : > { %v678_v31 = vsel %vm671_vm3, %v674_v30, %v677_v58  ;;  %v2138_v35 = vmul.f32 0.5, %v2122_v32  ;;  %vm4888_vm15 = vcmp.lt.s32.totalorder %v3377_v37, 0  ;;  %v1188_v60 = vxor.u32 2147483648, %v3877_v47  ;;  %v4898_v57 = vld [vmem:[#allocation37_spill] sm:$0xff]  ;;  %v4900_v58 = vld [vmem:[#allocation8_spill] sm:$0xff] }
 0x1a3   : > { %v1179_v62 = vsel %vm4888_vm15, %v1178_v7, %v4887_v4  ;;  %2786 = vcosq.f32 %v4300_v33  ;;  %v1984_v22 = vclz %v2489_v56  ;;  %v679_v11 = vsel %vm669_vm10, nan, %v678_v31  ;;  %v4899_v7 = vld [vmem:[#allocation14_spill] sm:$0xff] }
 0x1a4   : > { %v1181_v13 = vsel %vm3749_vm13, 0, %v1179_v62  ;;  %v2123_v17 = vadd.f32 1.0, %v679_v11  ;;  %v2154_v2 = vsel %vm442_vm0, %v2138_v35, 0.0  ;;  %v1191_v46 = vxor.u32 2147483648, %v4890_v20 }
 0x1a5   : > { %v1185_v41 = vand.u32 3, %v1181_v13  ;;  %vm448_vm3 = vcmp.lt.f32.partialorder %v4891_v63, 5.0  ;;  %v2490_v50 = vadd.s32 4294967294, %v1984_v22  ;;  %v1281_v18 = vsub.s32 4, %v4892_v1  ;;  %v4905_v13 = vld [vmem:[#allocation36_spill] sm:$0xff] }
 0x1a6   : > { %vm1287_vm9 = vweird.f32 %v4893_v21  ;;  %v1291_v14 = vxor.u32 2147483648, %v4894_v55  ;;  %v2139_v10 = vmul.f32 0.5, %v2123_v17  ;;  %vm4895_vm0 = vcmp.lt.s32.totalorder %v4893_v21, 0 }
 0x1a7   : > { %vm1186_vm10 = vcmp.lt.s32.totalorder %v1185_v41, 2  ;;  %vm1187_vm4 = vcmp.eq.s32.totalorder %v1185_v41, 0  ;;  %vm1190_vm13 = vcmp.eq.s32.totalorder %v1185_v41, 2  ;;  %vm2491_vm15 = vcmp.lt.s32.totalorder %v2490_v50, 0 }
 0x1a8   : > { %v1189_v28 = vsel %vm1187_vm4, %v4890_v20, %v1188_v60  ;;  %v1192_v43 = vsel %vm1190_vm13, %v1191_v46, %v3877_v47  ;;  %v1282_v5 = vsel %vm4895_vm0, %v1281_v18, %v4892_v1  ;;  %v1987_v54 = vsel %vm2491_vm15, 0, %v2490_v50  ;;  %v4906_v50 = vld [vmem:[#allocation6_spill] sm:$0xff] }
 0x1a9   : > { %v2155_v59 = vsel %vm443_vm14, %v2139_v10, 0.0  ;;  %v1193_v19 = vsel %vm1186_vm10, %v1189_v28, %v1192_v43  ;;  %v1284_v24 = vsel %vm3627_vm12, 0, %v1282_v5  ;;  %vm449_vm7 = vcmp.lt.f32.partialorder %v4897_v38, 5.0  ;;  %v4908_v10 = vld [vmem:[#allocation12_spill] sm:$0xff] }
 0x1aa   : > { %v1988_v51 = vsub.s32 32, %v1987_v54  ;;  %v1989_v49 = vshll.u32 %v4283_v45, %v1987_v54  ;;  %v1992_v12 = vsub.s32 4294967266, %v1987_v54  ;;  %v2658_v48 = vpack.i.bf16 %v2155_v59, %v2154_v2  ;;  %v4909_v59 = vld [vmem:[#allocation7_spill] sm:$0xff] }
 0x1ab   : > { %v1194_v47 = vsel %vm1184_vm2, nan, %v1193_v19  ;;  %v1288_v32 = vand.u32 3, %v1284_v24  ;;  %v1294_v4 = vxor.u32 2147483648, %v4898_v57  ;;  %v972_v25 = vsub.s32 4, %v4899_v7 }
 0x1ac   : > { %v1990_v23 = vshrl.u32 %v4273_v6, %v1988_v51  ;;  %v1993_v56 = vadd.s32 127, %v1992_v12  ;;  %2659 = vperm.xlu0 %2656, %v2658_v48   ;;  %v2128_v30 = vadd.f32 1.0, %v1194_v47  ;;  %vm978_vm12 = vweird.f32 %v4900_v58 }
 0x1ad   : > { %vm1918_vm14 = vcmp.lt.s32.totalorder %v4086_v39, 0  ;;  %vm1289_vm10 = vcmp.lt.s32.totalorder %v1288_v32, 2  ;;  %vm1290_vm4 = vcmp.eq.s32.totalorder %v1288_v32, 0  ;;  %vm1293_vm13 = vcmp.eq.s32.totalorder %v1288_v32, 2  ;;  %v4913_v32 = vld [vmem:[#allocation30_spill] sm:$0xff] }
 0x1ae   : > { %vm4901_vm2 = vcmp.lt.s32.totalorder %v4900_v58, 0  ;;  %vm4344_vm15 = vcmp.le.f32.partialorder %v1916_v52, 0.7853982  ;;  %v1991_v6 = vor.u32 %v1990_v23, %v1989_v49  ;;  %v1994_v31 = vshll.u32 %v1993_v56, 23 }
 0x1af   : > { %v973_v37 = vsel %vm4901_vm2, %v972_v25, %v4899_v7  ;;  %v1292_v35 = vsel %vm1290_vm4, %v4898_v57, %v1291_v14  ;;  %v1295_v62 = vsel %vm1293_vm13, %v1294_v4, %v4894_v55  ;;  %v2144_v22 = vmul.f32 0.5, %v2128_v30  ;;  %v4907_v55 = vld [vmem:[#allocation31_spill] sm:$0xff]  ;;  %v4914_v25 = vld [vmem:[#allocation29_spill] sm:$0xff] }
 0x1b0   : > { %v1296_v60 = vsel %vm1289_vm10, %v1292_v35, %v1295_v62  ;;  %v975_v16 = vsel %vm3567_vm8, 0, %v973_v37  ;;  %v982_v17 = vxor.u32 2147483648, %v4905_v13  ;;  %v1995_v2 = vor.u32 4788187, %v1994_v31  ;;  %v4355_v46 = vpop.eup %2786  ;;  %v4915_v30 = vld [vmem:[#allocation45_spill] sm:$0xff] }
 0x1b1   : > { %v1998_v41 = vcvt.s32.f32 %v1991_v6  ;;  %v1297_v52 = vsel %vm1287_vm9, nan, %v1296_v60  ;;  %v979_v20 = vand.u32 3, %v975_v16  ;;  %vm446_vm0 = vcmp.lt.f32.partialorder %v4906_v50, 5.0  ;;  %v4916_v60 = vld [vmem:[#allocation35_spill] sm:$0xff] }
 0x1b2   : > { %v2129_v1 = vadd.f32 1.0, %v1297_v52  ;;  %v2160_v18 = vsel %vm448_vm3, %v2144_v22, 0.0  ;;  %v985_v14 = vxor.u32 2147483648, %v4907_v55  ;;  %v1075_v28 = vsub.s32 4, %v4908_v10 }
 0x1b3   : > { %v1996_v43 = vand.u32 2147483647, %v1995_v2  ;;  %vm980_vm8 = vcmp.lt.s32.totalorder %v979_v20, 2  ;;  %vm981_vm10 = vcmp.eq.s32.totalorder %v979_v20, 0  ;;  %vm984_vm4 = vcmp.eq.s32.totalorder %v979_v20, 2  ;;  %v4919_v20 = vld [vmem:[#allocation40_spill] sm:$0xff] }
 0x1b4   : > { %v2145_v5 = vmul.f32 0.5, %v2129_v1  ;;  %v983_v21 = vsel %vm981_vm10, %v4907_v55, %v982_v17  ;;  %v986_v54 = vsel %vm984_vm4, %v985_v14, %v4905_v13  ;;  %vm4910_vm9 = vcmp.lt.s32.totalorder %v4909_v59, 0  ;;  %v4921_v14 = vld [vmem:[#allocation32_spill] sm:$0xff] }
 0x1b5   : > { %v1076_v19 = vsel %vm4910_vm9, %v1075_v28, %v4908_v10  ;;  %vm447_vm13 = vcmp.lt.f32.partialorder %v4911_v0, 5.0  ;;  %v1999_v63 = vmul.f32 %v1998_v41, %v1996_v43  ;;  %v987_v24 = vsel %vm980_vm8, %v983_v21, %v986_v54  ;;  %v4924_v21 = vld [vmem:[#allocation54_spill] sm:$0xff]  ;;  %v4930_v0 = vld [vmem:[#allocation53_spill] sm:$0xff] }
 0x1b6   : > { %v1078_v49 = vsel %vm3497_vm1, 0, %v1076_v19  ;;  %vm1081_vm3 = vweird.f32 %v4909_v59  ;;  %v2161_v12 = vsel %vm449_vm7, %v2145_v5, 0.0  ;;  %v988_v48 = vsel %vm978_vm12, nan, %v987_v24  ;;  %v4922_v5 = vld [vmem:[#allocation28_spill] sm:$0xff]  ;;  %v4925_v59 = vld [vmem:[#allocation25_spill] sm:$0xff] }
 0x1b7   : > { %v1082_v47 = vand.u32 3, %v1078_v49  ;;  %v1085_v57 = vxor.u32 2147483648, %v4913_v32  ;;  %v2000_v4 = vxor.u32 2147483648, %v1999_v63  ;;  %v2673_v7 = vpack.i.bf16 %v2161_v12, %v2160_v18  ;;  %v4920_v18 = vld [vmem:[#allocation55_spill] sm:$0xff]  ;;  %v4927_v49 = vld [vmem:[#allocation33_spill] sm:$0xff] }
 0x1b8   : > { %v1088_v23 = vxor.u32 2147483648, %v4914_v25  ;;  %v2126_v56 = vadd.f32 1.0, %v988_v48  ;;  %v1590_v37 = vsub.s32 4, %v4915_v30  ;;  %2788 = vsinq.f32 %v4300_v33 }
 0x1b9   : > { %vm1083_vm2 = vcmp.lt.s32.totalorder %v1082_v47, 2  ;;  %vm1084_vm8 = vcmp.eq.s32.totalorder %v1082_v47, 0  ;;  %vm1087_vm10 = vcmp.eq.s32.totalorder %v1082_v47, 2  ;;  %v2001_v38 = vsel %vm1918_vm14, %v2000_v4, %v1999_v63  ;;  %2674 = vperm.xlu1 %2657, %v2673_v7   ;;  %v4931_v7 = vld [vmem:[#allocation43_spill] sm:$0xff] }
 0x1ba   : > { %v1086_v58 = vsel %vm1084_vm8, %v4914_v25, %v1085_v57  ;;  %v1089_v6 = vsel %vm1087_vm10, %v1088_v23, %v4913_v32  ;;  %v2142_v31 = vmul.f32 0.5, %v2126_v56  ;;  %v2004_v35 = vsel %vm4344_vm15, %v4086_v39, %v2001_v38  ;;  %v4928_v32 = vld [vmem:[#allocation23_spill] sm:$0xff] }
 0x1bb   : > { %v1090_v62 = vsel %vm1083_vm2, %v1086_v58, %v1089_v6  ;;  %vm4917_vm1 = vcmp.lt.s32.totalorder %v4916_v60, 0  ;;  %2790 = vcosq.f32 %v2004_v35  ;;  %vm1596_vm7 = vweird.f32 %v4916_v60  ;;  %v4934_v58 = vld [vmem:[#allocation20_spill] sm:$0xff]  ;;  %v4936_v60 = vld [vmem:[#allocation17_spill] sm:$0xff] }
 0x1bc   : > { %v1591_v22 = vsel %vm4917_vm1, %v1590_v37, %v4915_v30  ;;  %v1091_v11 = vsel %vm1081_vm3, nan, %v1090_v62  ;;  %2792 = vsinq.f32 %v2004_v35  ;;  %v1600_v2 = vxor.u32 2147483648, %v4125_v40  ;;  %v4933_v37 = vld [vmem:[#allocation50_spill] sm:$0xff]  ;;  %v4935_v35 = vld [vmem:[#allocation27_spill] sm:$0xff] }
 0x1bd   : > { %v1593_v13 = vsel %vm4022_vm5, 0, %v1591_v22  ;;  %v2127_v33 = vadd.f32 1.0, %v1091_v11  ;;  %v2158_v41 = vsel %vm446_vm0, %v2142_v31, 0.0  ;;  %v1603_v52 = vxor.u32 2147483648, %v4115_v34  ;;  %v4937_v11 = vld [vmem:[#allocation49_spill] sm:$0xff] }
 0x1be   : > { %v1597_v17 = vand.u32 3, %v1593_v13  ;;  %v1693_v1 = vsub.s32 4, %v4919_v20  ;;  %v1703_v55 = vxor.u32 2147483648, %v4920_v18  ;;  %vm452_vm12 = vcmp.lt.f32.partialorder %v4921_v14, 5.0 }
 0x1bf   : > { %v2143_v10 = vmul.f32 0.5, %v2127_v33  ;;  %vm4923_vm3 = vcmp.lt.s32.totalorder %v4922_v5, 0  ;;  %v1706_v54 = vxor.u32 2147483648, %v4924_v21  ;;  %vm453_vm0 = vcmp.lt.f32.partialorder %v4925_v59, 5.0 }
 0x1c0   : > { %vm1598_vm5 = vcmp.lt.s32.totalorder %v1597_v17, 2  ;;  %vm1599_vm4 = vcmp.eq.s32.totalorder %v1597_v17, 0  ;;  %vm1602_vm9 = vcmp.eq.s32.totalorder %v1597_v17, 2  ;;  %v1694_v50 = vsel %vm4923_vm3, %v1693_v1, %v4919_v20  ;;  %v4940_v1 = vld [vmem:[#allocation39_spill] sm:$0xff] }
 0x1c1   : > { %v1601_v28 = vsel %vm1599_vm4, %v4115_v34, %v1600_v2  ;;  %v1604_v43 = vsel %vm1602_vm9, %v1603_v52, %v4125_v40  ;;  %v2159_v19 = vsel %vm447_vm13, %v2143_v10, 0.0  ;;  %v1696_v51 = vsel %vm3944_vm6, 0, %v1694_v50  ;;  %v4939_v52 = vld [vmem:[#allocation15_spill] sm:$0xff] }
 0x1c2   : > { %v1605_v63 = vsel %vm1598_vm5, %v1601_v28, %v1604_v43  ;;  %v1384_v12 = vsub.s32 4, %v4927_v49  ;;  %v2668_v34 = vpack.i.bf16 %v2159_v19, %v2158_v41  ;;  %vm1699_vm2 = vweird.f32 %v4922_v5 }
 0x1c3   : > { %v1606_v40 = vsel %vm1596_vm7, nan, %v1605_v63  ;;  %v1700_v48 = vand.u32 3, %v1696_v51  ;;  %vm4929_vm8 = vcmp.lt.s32.totalorder %v4928_v32, 0  ;;  %vm1390_vm13 = vweird.f32 %v4928_v32  ;;  %v4943_v32 = vld [vmem:[#allocation56_spill] sm:$0xff] }
 0x1c4   : > { %v2132_v47 = vadd.f32 1.0, %v1606_v40  ;;  %v1385_v57 = vsel %vm4929_vm8, %v1384_v12, %v4927_v49  ;;  %v1394_v4 = vxor.u32 2147483648, %v4930_v0  ;;  %2669 = vperm.xlu0 %2656, %v2668_v34   ;;  %vm4932_vm5 = vnez %v4931_v7 }
 0x1c5   : > { %vm1701_vm6 = vcmp.lt.s32.totalorder %v1700_v48, 2  ;;  %vm1702_vm10 = vcmp.eq.s32.totalorder %v1700_v48, 0  ;;  %vm1705_vm1 = vcmp.eq.s32.totalorder %v1700_v48, 2  ;;  %v1387_v25 = vsel %vm4932_vm5, 0, %v1385_v57  ;;  %v4432_v13 = vpop.eup %2788 }
 0x1c6   : > { %v1704_v23 = vsel %vm1702_vm10, %v4924_v21, %v1703_v55  ;;  %v1707_v56 = vsel %vm1705_vm1, %v1706_v54, %v4920_v18  ;;  %v1391_v30 = vand.u32 3, %v1387_v25  ;;  %v1397_v38 = vxor.u32 2147483648, %v4933_v37  ;;  %v4942_v55 = vld [vmem:[#allocation47_spill] sm:$0xff] }
 0x1c7   : > { %vm450_vm7 = vcmp.lt.f32.partialorder %v4934_v58, 5.0  ;;  %v1708_v6 = vsel %vm1701_vm6, %v1704_v23, %v1707_v56  ;;  %v2148_v31 = vmul.f32 0.5, %v2132_v47  ;;  %v1487_v62 = vsub.s32 4, %v4935_v35  ;;  %v4945_v23 = vld [vmem:[#allocation57_spill] sm:$0xff] }
 0x1c8   : > { %vm1493_vm4 = vweird.f32 %v4936_v60  ;;  %v1709_v22 = vsel %vm1699_vm2, nan, %v1708_v6  ;;  %vm1392_vm9 = vcmp.lt.s32.totalorder %v1391_v30, 2  ;;  %vm1393_vm3 = vcmp.eq.s32.totalorder %v1391_v30, 0  ;;  %v2791_v41 = vpop.eup %2790 }
 0x1c9   : > { %v1497_v16 = vxor.u32 2147483648, %v4937_v11  ;;  %v2133_v33 = vadd.f32 1.0, %v1709_v22  ;;  %v1395_v17 = vsel %vm1393_vm3, %v4933_v37, %v1394_v4  ;;  %vm1396_vm8 = vcmp.eq.s32.totalorder %v1391_v30, 2  ;;  %v2793_v43 = vpop.eup %2792  ;;  %v4946_v37 = vld [vmem:[#allocation48_spill] sm:$0xff] }
 0x1ca   : > { %vm4938_vm6 = vcmp.lt.s32.totalorder %v4936_v60, 0  ;;  %vm451_vm10 = vcmp.lt.f32.partialorder %v4939_v52, 5.0  ;;  %v1398_v20 = vsel %vm1396_vm8, %v1397_v38, %v4930_v0  ;;  %vm4941_vm2 = vnez %v4940_v1 }
 0x1cb   : > { %v1488_v2 = vsel %vm4938_vm6, %v1487_v62, %v4935_v35  ;;  %v1500_v10 = vxor.u32 2147483648, %v4942_v55  ;;  %v2002_v28 = vsub.s32 4, %v4266_v36  ;;  %v2149_v5 = vmul.f32 0.5, %v2133_v33 }
 0x1cc   : > { %v1490_v18 = vsel %vm4941_vm2, 0, %v1488_v2  ;;  %v2164_v50 = vsel %vm452_vm12, %v2148_v31, 0.0  ;;  %v1399_v21 = vsel %vm1392_vm9, %v1395_v17, %v1398_v20  ;;  %vm2008_vm1 = vweird.f32 %v4086_v39 }
 0x1cd   : > { %v1494_v54 = vand.u32 3, %v1490_v18  ;;  %v1400_v19 = vsel %vm1390_vm13, nan, %v1399_v21  ;;  %v2003_v63 = vsel %vm1918_vm14, %v2002_v28, %v4266_v36  ;;  %v2012_v24 = vxor.u32 2147483648, %v2793_v43 }
 0x1ce   : > { %v2165_v51 = vsel %vm453_vm0, %v2149_v5, 0.0  ;;  %v2130_v34 = vadd.f32 1.0, %v1400_v19  ;;  %v2005_v48 = vsel %vm4344_vm15, 0, %v2003_v63  ;;  %v2015_v36 = vxor.u32 2147483648, %v2791_v41 }
 0x1cf   : > { %vm1495_vm5 = vcmp.lt.s32.totalorder %v1494_v54, 2  ;;  %vm1496_vm3 = vcmp.eq.s32.totalorder %v1494_v54, 0  ;;  %vm1499_vm8 = vcmp.eq.s32.totalorder %v1494_v54, 2  ;;  %v2683_v14 = vpack.i.bf16 %v2165_v51, %v2164_v50 }
 0x1d0   : > { %v1498_v49 = vsel %vm1496_vm3, %v4942_v55, %v1497_v16  ;;  %v1501_v12 = vsel %vm1499_vm8, %v1500_v10, %v4937_v11  ;;  %v2105_v47 = vsub.s32 4, %v4179_v3  ;;  %vm456_vm14 = vcmp.lt.f32.partialorder %v4943_v32, 5.0 }
 0x1d1   : > { %v1502_v40 = vsel %vm1495_vm5, %v1498_v49, %v1501_v12  ;;  %2684 = vperm.xlu1 %2657, %v2683_v14   ;;  %v2146_v57 = vmul.f32 0.5, %v2130_v34  ;;  %v2009_v0 = vand.u32 3, %v2005_v48  ;;  %v2115_v4 = vxor.u32 2147483648, %v4432_v13  ;;  %v4952_v14 = vld [vmem:[#allocation44_spill] sm:$0xff] }
 0x1d2   : > { %v1503_v59 = vsel %vm1493_vm4, nan, %v1502_v40  ;;  %vm4944_vm12 = vcmp.lt.s32.totalorder %v4014_v61, 0  ;;  %v2118_v45 = vxor.u32 2147483648, %v4355_v46  ;;  %v1796_v56 = vsub.s32 4, %v4945_v23 }
 0x1d3   : > { %v2131_v7 = vadd.f32 1.0, %v1503_v59  ;;  %v2106_v25 = vsel %vm4944_vm12, %v2105_v47, %v4179_v3  ;;  %v2162_v30 = vsel %vm450_vm7, %v2146_v57, 0.0  ;;  %vm2010_vm15 = vcmp.lt.s32.totalorder %v2009_v0, 2  ;;  %v289_v47 = vpop.permute.xlu1 %288  ;;  %v279_v59 = vpop.permute.xlu0 %278 }
 0x1d4   : > { %vm2011_vm0 = vcmp.eq.s32.totalorder %v2009_v0, 0  ;;  %vm2014_vm13 = vcmp.eq.s32.totalorder %v2009_v0, 2  ;;  %vm457_vm4 = vcmp.lt.f32.partialorder %v4946_v37, 5.0  ;;  %v2108_v35 = vsel %vm4254_vm11, 0, %v2106_v25 }
 0x1d5   : > { %v2147_v38 = vmul.f32 0.5, %v2131_v7  ;;  %v2013_v6 = vsel %vm2011_vm0, %v2791_v41, %v2012_v24  ;;  %v2016_v31 = vsel %vm2014_vm13, %v2015_v36, %v2793_v43  ;;  %vm2111_vm9 = vweird.f32 %v4014_v61 }
 0x1d6   : > { %v2017_v62 = vsel %vm2010_vm15, %v2013_v6, %v2016_v31  ;;  %v2112_v3 = vand.u32 3, %v2108_v35  ;;  %vm4947_vm6 = vcmp.lt.s32.totalorder %v3923_v42, 0  ;;  %vm4948_vm7 = vnez %v4872_v29  ;;  %v4949_v29 = vld [vmem:[#allocation51_spill] sm:$0xff] }
 0x1d7   : > { %v1797_v58 = vsel %vm4947_vm6, %v1796_v56, %v4945_v23  ;;  %v2163_v60 = vsel %vm451_vm10, %v2147_v38, 0.0  ;;  %v2018_v22 = vsel %vm2008_vm1, nan, %v2017_v62  ;;  %v1806_v26 = vxor.u32 2147483648, %v4268_v15  ;;  %v294_v32 = vpop.permute.xlu1 %293 }
 0x1d8   : > { %v1799_v11 = vsel %vm4948_vm7, 0, %v1797_v58  ;;  %v2678_v16 = vpack.i.bf16 %v2163_v60, %v2162_v30  ;;  %vm2113_vm11 = vcmp.lt.s32.totalorder %v2112_v3, 2  ;;  %vm2114_vm2 = vcmp.eq.s32.totalorder %v2112_v3, 0 }
 0x1d9   : > { %vm2117_vm5 = vcmp.eq.s32.totalorder %v2112_v3, 2  ;;  %v2116_v33 = vsel %vm2114_vm2, %v4355_v46, %v2115_v4  ;;  %v2136_v2 = vadd.f32 1.0, %v2018_v22  ;;  %v1803_v41 = vand.u32 3, %v1799_v11  ;;  %v284_v4 = vpop.permute.xlu0 %283 }
 0x1da   : > { %v2119_v17 = vsel %vm2117_vm5, %v2118_v45, %v4432_v13  ;;  %2679 = vperm.xlu0 %2656, %v2678_v16   ;;  %vm1802_vm10 = vweird.f32 %v3923_v42  ;;  %v1809_v39 = vxor.u32 2147483648, %v4263_v8  ;;  %v1899_v20 = vsub.s32 4, %v4949_v29 }
 0x1db   : > { %v2120_v52 = vsel %vm2113_vm11, %v2116_v33, %v2119_v17  ;;  %v2152_v18 = vmul.f32 0.5, %v2136_v2  ;;  %vm1804_vm1 = vcmp.lt.s32.totalorder %v1803_v41, 2  ;;  %vm1805_vm3 = vcmp.eq.s32.totalorder %v1803_v41, 0 }
 0x1dc   : > { %v2121_v1 = vsel %vm2111_vm9, nan, %v2120_v52  ;;  %v1807_v46 = vsel %vm1805_vm3, %v4263_v8, %v1806_v26  ;;  %vm1808_vm8 = vcmp.eq.s32.totalorder %v1803_v41, 2  ;;  %vm4950_vm12 = vcmp.lt.s32.totalorder %v3838_v53, 0 }
 0x1dd   : > { %v2137_v55 = vadd.f32 1.0, %v2121_v1  ;;  %v1900_v13 = vsel %vm4950_vm12, %v1899_v20, %v4949_v29  ;;  %v2168_v10 = vsel %vm456_vm14, %v2152_v18, 0.0  ;;  %v1810_v28 = vsel %vm1808_vm8, %v1809_v39, %v4268_v15  ;;  %v299_v56 = vpop.permute.xlu0 %298 }
 0x1de   : > { %vm4951_vm15 = vnez %v4865_v27  ;;  %v1909_v43 = vxor.u32 2147483648, %v4183_v9  ;;  %v1811_v50 = vsel %vm1804_vm1, %v1807_v46, %v1810_v28  ;;  %v1912_v8 = vxor.u32 2147483648, %v4177_v44 }
 0x1df   : > { %v1902_v61 = vsel %vm4951_vm15, 0, %v1900_v13  ;;  %v2153_v5 = vmul.f32 0.5, %v2137_v55  ;;  %v1812_v54 = vsel %vm1802_vm10, nan, %v1811_v50  ;;  %vm1905_vm0 = vweird.f32 %v3838_v53  ;;  %v4953_v53 = vld [vmem:[#allocation38_spill] sm:$0xff] }
 0x1e0   : > { %v1906_v21 = vand.u32 3, %v1902_v61  ;;  %v2134_v24 = vadd.f32 1.0, %v1812_v54  ;;  %vm454_vm6 = vcmp.lt.f32.partialorder %v4952_v14, 5.0  ;;  %vm455_vm7 = vcmp.lt.f32.partialorder %v4953_v53, 5.0 }
 0x1e1   : > { %v2169_v19 = vsel %vm457_vm4, %v2153_v5, 0.0  ;;  %v309_v31 = vpop.permute.xlu0 %308  ;;  %v2170_v26 = vlaneseq }
 0x1e2   : > { %vm1907_vm14 = vcmp.lt.s32.totalorder %v1906_v21, 2  ;;  %vm1908_vm13 = vcmp.eq.s32.totalorder %v1906_v21, 0  ;;  %vm1911_vm9 = vcmp.eq.s32.totalorder %v1906_v21, 2  ;;  %v2693_v27 = vpack.i.bf16 %v2169_v19, %v2168_v10 }
 0x1e3   : > { %v1910_v15 = vsel %vm1908_vm13, %v4177_v44, %v1909_v43  ;;  %v1913_v63 = vsel %vm1911_vm9, %v1912_v8, %v4183_v9  ;;  %v2150_v49 = vmul.f32 0.5, %v2134_v24  ;;  %v304_v44 = vpop.permute.xlu1 %303  ;;  %v4515_v9 = vld [vmem:[%s4637_s1] ss:$0 sm:$0xff]  ;;  %v4531_v2 = vand.u32 127, %v2170_v26 }
 0x1e4   : > { %v1914_v51 = vsel %vm1907_vm14, %v1910_v15, %v1913_v63  ;;  %2694 = vperm.xlu1 %2657, %v2693_v27   ;;  %v364_v0 = vsub.f32 %v289_v47, %v4515_v9  ;;  %v365_v7 = vsub.f32 %v294_v32, %v4515_v9  ;;  %v362_v35 = vsub.f32 %v279_v59, %v4515_v9 }
 0x1e5   : > { %v1915_v42 = vsel %vm1905_vm0, nan, %v1914_v51  ;;  %v2166_v40 = vsel %vm454_vm6, %v2150_v49, 0.0  ;;  %v363_v3 = vsub.f32 %v284_v4, %v4515_v9  ;;  %v4527_v11 = vpop.permute.xlu0 %318  ;;  %v368_v20 = vsub.f32 %v309_v31, %v4515_v9 }
 0x1e6   : > { %v2135_v12 = vadd.f32 1.0, %v1915_v42  ;;  %v380_v25 = vmul.f32 -4.5, %v364_v0  ;;  %v381_v45 = vmul.f32 -4.5, %v365_v7  ;;  %v378_v58 = vmul.f32 -4.5, %v362_v35 }
 0x1e7   : > { %v314_v57 = vpop.permute.xlu1 %313  ;;  %v379_v22 = vmul.f32 -4.5, %v363_v3  ;;  %vm2173_vm4 = vcmp.eq.s32.totalorder %v4531_v2, 16  ;;  %vm2172_vm11 = vcmp.lt.s32.totalorder %v4531_v2, 16  ;;  %v384_v28 = vmul.f32 -4.5, %v368_v20 }
 0x1e8   : > { %v2151_v34 = vmul.f32 0.5, %v2135_v12  ;;  %v396_v30 = vmul.f32 %v380_v25, %v364_v0  ;;  %v397_v37 = vmul.f32 %v381_v45, %v365_v7  ;;  %v394_v16 = vmul.f32 %v378_v58, %v362_v35 }
 0x1e9   : > { %v395_v33 = vmul.f32 %v379_v22, %v363_v3  ;;  %v329_v41 = vpop.permute.xlu0 %328  ;;  %v369_v39 = vsub.f32 %v314_v57, %v4515_v9  ;;  %v400_v19 = vmul.f32 %v384_v28, %v368_v20  ;;  %v367_v27 = vsub.f32 %v304_v44, %v4515_v9 }
 0x1ea   : > { %v2167_v48 = vsel %vm455_vm7, %v2151_v34, 0.0  ;;  %v414_v6 = vmul.f32 1.442695, %v396_v30  ;;  %v416_v62 = vmul.f32 1.442695, %v397_v37  ;;  %v366_v15 = vsub.f32 %v299_v56, %v4515_v9 }
 0x1eb   : > { %v2688_v36 = vpack.i.bf16 %v2167_v48, %v2166_v40  ;;  %v4519_v23 = vpop.permute.xlu1 %323  ;;  %v410_v52 = vmul.f32 1.442695, %v394_v16  ;;  %v412_v29 = vmul.f32 1.442695, %v395_v33  ;;  %v385_v13 = vmul.f32 -4.5, %v369_v39 }
 0x1ec   : > { %2794 = vpow2.f32 %v414_v6  ;;  %v422_v51 = vmul.f32 1.442695, %v400_v19  ;;  %v383_v14 = vmul.f32 -4.5, %v367_v27  ;;  %v382_v42 = vmul.f32 -4.5, %v366_v15 }
 0x1ed   : > { %2689 = vperm.xlu0 %2656, %v2688_v36   ;;  %2796 = vpow2.f32 %v416_v62  ;;  %v4538_v61 = vpop.permute.xlu0 %338  ;;  %v401_v54 = vmul.f32 %v385_v13, %v369_v39  ;;  %v372_v7 = vsub.f32 %v329_v41, %v4515_v9  ;;  %v371_v35 = vsub.f32 %v4519_v23, %v4515_v9 }
 0x1ee   : > { %2798 = vpow2.f32 %v410_v52  ;;  %v399_v48 = vmul.f32 %v383_v14, %v367_v27  ;;  %v398_v32 = vmul.f32 %v382_v42, %v366_v15 }
 0x1ef   : > { %v4521_v38 = vpop.permute.xlu1 %333  ;;  %2800 = vpow2.f32 %v412_v29  ;;  %v424_v24 = vmul.f32 1.442695, %v401_v54  ;;  %v388_v56 = vmul.f32 -4.5, %v372_v7  ;;  %v387_v23 = vmul.f32 -4.5, %v371_v35 }
 0x1f0   : > { %v373_v0 = vsub.f32 %v4521_v38, %v4515_v9  ;;  %v420_v4 = vmul.f32 1.442695, %v399_v48  ;;  %v418_v25 = vmul.f32 1.442695, %v398_v32  ;;  %v370_v38 = vsub.f32 %v4527_v11, %v4515_v9 }
 0x1f1   : > { %v349_v63 = vpop.permute.xlu0 %348  ;;  %2802 = vpow2.f32 %v424_v24  ;;  %v404_v58 = vmul.f32 %v388_v56, %v372_v7  ;;  %v403_v29 = vmul.f32 %v387_v23, %v371_v35  ;;  %v374_v24 = vsub.f32 %v4538_v61, %v4515_v9 }
 0x1f2   : > { %2804 = vpow2.f32 %v422_v51  ;;  %v389_v45 = vmul.f32 -4.5, %v373_v0  ;;  %v386_v52 = vmul.f32 -4.5, %v370_v38 }
 0x1f3   : > { %v4525_v60 = vpop.permute.xlu1 %343  ;;  %2806 = vpow2.f32 %v420_v4  ;;  %v430_v11 = vmul.f32 1.442695, %v404_v58  ;;  %v390_v48 = vmul.f32 -4.5, %v374_v24 }
 0x1f4   : > { %2808 = vpow2.f32 %v418_v25  ;;  %v405_v62 = vmul.f32 %v389_v45, %v373_v0  ;;  %v402_v20 = vmul.f32 %v386_v52, %v370_v38  ;;  %v375_v15 = vsub.f32 %v4525_v60, %v4515_v9 }
 0x1f6   : > { %v432_v39 = vmul.f32 1.442695, %v405_v62 }
 0x1f7   : > { %v4529_v17 = vpop.permute.xlu1 %353 }
 0x1f8   : > { %2810 = vpow2.f32 %v432_v39 }
 0x1f9   : > { %v2795_v46 = vpop.eup %2794  ;;  %2812 = vpow2.f32 %v430_v11 }
 0x1fa   : > { %v2797_v10 = vpop.eup %2796 }
 0x1fb   : > { %v2799_v34 = vpop.eup %2798 }
 0x1fc   : > { %v2801_v40 = vpop.eup %2800 }
 0x1fe   : > { %v2803_v31 = vpop.eup %2802 }
 0x1ff   : > { %v2805_v3 = vpop.eup %2804 }
 0x200   : > { %v2807_v13 = vpop.eup %2806 }
 0x201   : > { %v2809_v28 = vpop.eup %2808 }
 0x219   : > { %v2665_v1 = vpop.permute.xlu1 %2664 }
 0x21a   : > { %v2667_v18 = vunpack.i.h.bf16 %v2665_v1  ;;  %v2666_v55 = vunpack.i.l.bf16 %v2665_v1 }
 0x21c   : > { %v2257_v43 = vsel %vm2173_vm4, %v2667_v18, 0.0  ;;  %v2256_v5 = vsel %vm2173_vm4, %v2666_v55, 0.0  ;;  %v377_v18 = vsub.f32 %v4529_v17, %v4515_v9  ;;  %v426_v17 = vmul.f32 1.442695, %v402_v20 }
 0x21d   : > { %v2273_v50 = vsel %vm2172_vm11, %v2797_v10, %v2257_v43  ;;  %v2272_v21 = vsel %vm2172_vm11, %v2795_v46, %v2256_v5  ;;  %v376_v10 = vsub.f32 %v349_v63, %v4515_v9 }
 0x21e   : > { %v2538_v8 = vpack.c.bf16 %v2273_v50, %v2272_v21  ;;  %v428_v50 = vmul.f32 1.442695, %v403_v29  ;;  %v393_v54 = vmul.f32 -4.5, %v377_v18 }
 0x21f   : > { %v392_v27 = vmul.f32 -4.5, %v376_v10 }
 0x220   : > { %2570 = vst [vmem:[%s4547_s21 + $0x8] sm:$0xff] %v2538_v8   ;;  %2814 = vpow2.f32 %v428_v50  ;;  %v409_v63 = vmul.f32 %v393_v54, %v377_v18 }
 0x221   : > { %2816 = vpow2.f32 %v426_v17  ;;  %v408_v51 = vmul.f32 %v392_v27, %v376_v10 }
 0x227   : > { %v2660_v49 = vpop.permute.xlu0 %2659 }
 0x228   : > { %v2662_v12 = vunpack.i.h.bf16 %v2660_v49  ;;  %v2661_v53 = vunpack.i.l.bf16 %v2660_v49 }
 0x22a   : > { %v2255_v36 = vsel %vm2173_vm4, %v2662_v12, 0.0  ;;  %v2254_v47 = vsel %vm2173_vm4, %v2661_v53, 0.0  ;;  %v2811_v12 = vpop.eup %2810  ;;  %v391_v53 = vmul.f32 -4.5, %v375_v15 }
 0x22b   : > { %v2271_v44 = vsel %vm2172_vm11, %v2801_v40, %v2255_v36  ;;  %v2270_v59 = vsel %vm2172_vm11, %v2799_v34, %v2254_v47  ;;  %v440_v34 = vmul.f32 1.442695, %v409_v63  ;;  %v2813_v40 = vpop.eup %2812  ;;  %v438_v36 = vmul.f32 1.442695, %v408_v51 }
 0x22c   : > { %v2533_v57 = vpack.c.bf16 %v2271_v44, %v2270_v59  ;;  %v407_v44 = vmul.f32 %v391_v53, %v375_v15  ;;  %v406_v59 = vmul.f32 %v390_v48, %v374_v24 }
 0x22d   : > { %2818 = vpow2.f32 %v440_v34  ;;  %v2815_v7 = vpop.eup %2814 }
 0x22e   : > { %2534 = vst [vmem:[%s4547_s21] sm:$0xff] %v2533_v57   ;;  %2820 = vpow2.f32 %v438_v36  ;;  %v436_v25 = vmul.f32 1.442695, %v407_v44  ;;  %v2817_v45 = vpop.eup %2816  ;;  %v434_v56 = vmul.f32 1.442695, %v406_v59 }
 0x230   : > { %2822 = vpow2.f32 %v436_v25 }
 0x231   : > { %2824 = vpow2.f32 %v434_v56 }
 0x234   : > { %v2675_v30 = vpop.permute.xlu1 %2674 }
 0x235   : > { %v2677_v37 = vunpack.i.h.bf16 %v2675_v30  ;;  %v2676_v6 = vunpack.i.l.bf16 %v2675_v30 }
 0x237   : > { %v2261_v22 = vsel %vm2173_vm4, %v2677_v37, 0.0  ;;  %v2260_v26 = vsel %vm2173_vm4, %v2676_v6, 0.0 }
 0x238   : > { %v2277_v16 = vsel %vm2172_vm11, %v2803_v31, %v2261_v22  ;;  %v2276_v33 = vsel %vm2172_vm11, %v2805_v3, %v2260_v26 }
 0x239   : > { %v2548_v41 = vpack.c.bf16 %v2277_v16, %v2276_v33 }
 0x23a   : > { %v2819_v58 = vpop.eup %2818 }
 0x23b   : > { %2572 = vst [vmem:[%s4547_s21 + $0x18] sm:$0xff] %v2548_v41   ;;  %v2821_v22 = vpop.eup %2820 }
 0x23d   : > { %v2823_v29 = vpop.eup %2822 }
 0x23e   : > { %v2825_v20 = vpop.eup %2824 }
 0x23f   : > { %v2670_v1 = vpop.permute.xlu0 %2669 }
 0x240   : > { %v2672_v55 = vunpack.i.h.bf16 %v2670_v1  ;;  %v2671_v46 = vunpack.i.l.bf16 %v2670_v1 }
 0x242   : > { %v2259_v43 = vsel %vm2173_vm4, %v2672_v55, 0.0  ;;  %v2258_v5 = vsel %vm2173_vm4, %v2671_v46, 0.0 }
 0x243   : > { %v2275_v21 = vsel %vm2172_vm11, %v2807_v13, %v2259_v43  ;;  %v2274_v8 = vsel %vm2172_vm11, %v2809_v28, %v2258_v5 }
 0x244   : > { %v2543_v19 = vpack.c.bf16 %v2275_v21, %v2274_v8 }
 0x246   : > { %2571 = vst [vmem:[%s4547_s21 + $0x10] sm:$0xff] %v2543_v19  }
 0x24c   : > { %v2685_v14 = vpop.permute.xlu1 %2684 }
 0x24d   : > { %v2687_v42 = vunpack.i.h.bf16 %v2685_v14  ;;  %v2686_v49 = vunpack.i.l.bf16 %v2685_v14 }
 0x24f   : > { %v2265_v47 = vsel %vm2173_vm4, %v2687_v42, 0.0  ;;  %v2264_v60 = vsel %vm2173_vm4, %v2686_v49, 0.0 }
 0x250   : > { %v2281_v9 = vsel %vm2172_vm11, %v2811_v12, %v2265_v47  ;;  %v2280_v61 = vsel %vm2172_vm11, %v2813_v40, %v2264_v60 }
 0x251   : > { %v2558_v32 = vpack.c.bf16 %v2281_v9, %v2280_v61 }
 0x253   : > { %2574 = vst [vmem:[%s4547_s21 + $0x28] sm:$0xff] %v2558_v32  }
 0x255   : > { %v2680_v57 = vpop.permute.xlu0 %2679 }
 0x256   : > { %v2682_v0 = vunpack.i.h.bf16 %v2680_v57  ;;  %v2681_v4 = vunpack.i.l.bf16 %v2680_v57 }
 0x258   : > { %v2263_v30 = vsel %vm2173_vm4, %v2682_v0, 0.0  ;;  %v2262_v37 = vsel %vm2173_vm4, %v2681_v4, 0.0 }
 0x259   : > { %v2279_v6 = vsel %vm2172_vm11, %v2815_v7, %v2263_v30  ;;  %v2278_v31 = vsel %vm2172_vm11, %v2817_v45, %v2262_v37 }
 0x25a   : > { %v2553_v35 = vpack.c.bf16 %v2279_v6, %v2278_v31 }
 0x25c   : > { %2573 = vst [vmem:[%s4547_s21 + $0x20] sm:$0xff] %v2553_v35  }
 0x25f   : > { %v2695_v38 = vpop.permute.xlu1 %2694 }
 0x260   : > { %v2697_v62 = vunpack.i.h.bf16 %v2695_v38  ;;  %v2696_v3 = vunpack.i.l.bf16 %v2695_v38 }
 0x262   : > { %v2269_v26 = vsel %vm2173_vm4, %v2697_v62, 0.0  ;;  %v2268_v16 = vsel %vm2173_vm4, %v2696_v3, 0.0 }
 0x263   : > { %v2285_v33 = vsel %vm2172_vm11, %v2819_v58, %v2269_v26  ;;  %v2284_v41 = vsel %vm2172_vm11, %v2821_v22, %v2268_v16 }
 0x264   : > { %v2568_v23 = vpack.c.bf16 %v2285_v33, %v2284_v41 }
 0x266   : > { %2576 = vst [vmem:[%s4547_s21 + $0x38] sm:$0xff] %v2568_v23  }
 0x268   : > { %v2690_v52 = vpop.permute.xlu0 %2689 }
 0x269   : > { %v2692_v39 = vunpack.i.h.bf16 %v2690_v52  ;;  %v2691_v11 = vunpack.i.l.bf16 %v2690_v52 }
 0x26b   : > { %v2267_v1 = vsel %vm2173_vm4, %v2692_v39, 0.0  ;;  %v2266_v18 = vsel %vm2173_vm4, %v2691_v11, 0.0 }
 0x26c   : > { %v2283_v55 = vsel %vm2172_vm11, %v2823_v29, %v2267_v1  ;;  %v2282_v46 = vsel %vm2172_vm11, %v2825_v20, %v2266_v18 }
 0x26d   : > { %v2563_v13 = vpack.c.bf16 %v2283_v55, %v2282_v46 }
 0x26f   : > { %2575 = vst [vmem:[%s4547_s21 + $0x30] sm:$0xff] %v2563_v13  }
 0x270 PF: > { %s12_s9 = sadd.s32 1, %s2832_s9  }
 0x271   : > { %p9_p4 = scmp.ge.s32.totalorder %s12_s9, 5  }
 0x273   :  { %11 = sbr.rel (!%p9_p4) target bundleno = 1 (0x1), region = 58 }

// kernel: schnet_forward.3
= control target key start
LH: loop header
LB: loop body
LE: loop exit
PB: predicated region body
PF: predicated region fallthrough
CT: control target
= control target key end

     0   :  { %s5532_s0 = inlined_call_operand.vmem [shape: f32[128,32], index: 0, kind: input, shape index: {}, may-alias: {0,13}]   ;;  %s5533_s1 = inlined_call_operand.vmem [shape: bf16[384,128], index: 1, kind: input, shape index: {}]   ;;  %s5534_s2 = inlined_call_operand.vmem [shape: bf16[384,128], index: 2, kind: input, shape index: {}]   ;;  %s5535_s3 = inlined_call_operand.vmem [shape: bf16[128,384], index: 3, kind: input, shape index: {}]   ;;  %s5536_s4 = inlined_call_operand.vmem [shape: bf16[3,32,32], index: 4, kind: input, shape index: {}]   ;;  %s5537_s5 = inlined_call_operand.vmem [shape: bf16[3,128,32], index: 5, kind: input, shape index: {}]   ;;  %s5538_s6 = inlined_call_operand.vmem [shape: f32[3,1,32], index: 6, kind: input, shape index: {}]   ;;  %s5539_s7 = inlined_call_operand.vmem [shape: bf16[3,32,32], index: 7, kind: input, shape index: {}]   ;;  %s5540_s8 = inlined_call_operand.vmem [shape: f32[3,1,32], index: 8, kind: input, shape index: {}]   ;;  %s5541_s9 = inlined_call_operand.vmem [shape: bf16[3,32,32], index: 9, kind: input, shape index: {}]   ;;  %s5542_s10 = inlined_call_operand.vmem [shape: f32[3,1,32], index: 10, kind: input, shape index: {}]   ;;  %s5543_s11 = inlined_call_operand.vmem [shape: bf16[3,32,32], index: 11, kind: input, shape index: {}]   ;;  %s5544_s12 = inlined_call_operand.vmem [shape: f32[3,1,32], index: 12, kind: input, shape index: {}]   ;;  %s5545_s13 = inlined_call_operand.vmem [shape: f32[128,32], index: 13, kind: output, shape index: {}, may-alias: {0,13}]  }
   0x1   :  { %5562 = sst [smem:[#allocation17_spill]] %s5533_s1 }
   0x2   :  { %5563 = sst [smem:[#allocation18_spill]] %s5534_s2 }
   0x3   :  { %5564 = sst [smem:[#allocation19_spill]] %s5535_s3 }
   0x4   :  { %5565 = sst [smem:[#allocation20_spill]] %s5536_s4 }
   0x5   :  { %5566 = sst [smem:[#allocation21_spill]] %s5537_s5 }
   0x6   :  { %5567 = sst [smem:[#allocation22_spill]] %s5545_s13 }
   0x7   :  { %s4017_s25 = smov 0   ;;  %s4019_s26 = smov 0  }
   0x8   :  { %s4021_s27 = smov 0   ;;  %s4023_s28 = smov 0  }
   0x9   :  { %s4025_s29 = smov 0   ;;  %s4027_s30 = smov 0  }
   0xa   :  { %s4029_s14 = smov 0  }
   0xb LB: > { %5568 = sst [smem:[#allocation5_spill]] %s3923_s26  ;;  %s32_s15 = sadd.s32 1, %s3935_s29  ;;  %s3943_s14 = sphi %s4029_s14, %s23_s14   ;;  %s3939_s30 = sphi %s4027_s30, %s5669_s30   ;;  %s3935_s29 = sphi %s4025_s29, %s5668_s29   ;;  %s3931_s28 = sphi %s4023_s28, %s5667_s28   ;;  %s3927_s27 = sphi %s4021_s27, %s5666_s27   ;;  %s3923_s26 = sphi %s4019_s26, %s5665_s26   ;;  %s3919_s25 = sphi %s4017_s25, %s5664_s25  }
   0xc   : > { %5569 = sst [smem:[#allocation6_spill]] %s3935_s29  ;;  %s35_s16 = sadd.s32 1, %s3939_s30 }
   0xd   : > { %5570 = sst [smem:[#allocation7_spill]] %s3939_s30  ;;  %p33_p0 = scmp.ge.s32.totalorder %s32_s15, 3 }
   0xe   : > { %5571 = sst [smem:[#allocation8_spill]] %s3943_s14  ;;  %s115_s17 = sadd.s32 1, %s3923_s26 }
   0xf   : > { %p122_p1 = scmp.ne.s32.totalorder %s3923_s26, %s3919_s25  ;;  %p123_p2 = scmp.eq.s32.totalorder %s3943_s14, 0 }
  0x10   : > { %s5671_s15 = smov (%p33_p0, %s32_s15), 0  ;;  %s5673_s16 = smov (!%p33_p0, %s35_s16), %s3939_s30 }
  0x11   : > { %5572 = sst [smem:[#allocation9_spill]] %s5671_s15  ;;  %s112_s18 = ssub.s32 %s3935_s29, %s5671_s15 }
  0x12   : > { %p124_p3 = por %p123_p2, %p122_p1  ;;  %p37_p4 = scmp.ge.s32.totalorder %s5673_s16, 3 }
  0x13   : > { %p113_p5 = scmp.eq.s32.totalorder %s112_s18, 0  ;;  %p3145_p6 = scmp.ge.s32.totalorder %s3943_s14, 9 }
  0x14   : > { %s5675_s16 = smov (%p37_p4, %s5673_s16), 0 }
  0x15   : > { %5573 = sst [smem:[#allocation10_spill]] %s5675_s16  ;;  %406 = sbr.rel (%p3145_p6) target bundleno = 46 (0x2e), region = 20 }
  0x16   : > { %s4066_s19 = scalar_select %p113_p5, %s3923_s26, %s115_s17  }
  0x18   : > { %5574 = sst [smem:[#allocation11_spill]] %s4066_s19 }
  0x1a   : > { %427 = sbr.rel (!%p124_p3) target bundleno = 46 (0x2e), region = 32  ;;  %s429_s20 = sand.u32 (%p124_p3), 1, %s3923_s26  }
  0x1b   : > { %s3147_s21 = sshll.u32 (%p124_p3), %s3935_s29, 2  ;;  %s3146_s22 = sshll.u32 (%p124_p3), %s429_s20, 6 }
  0x1c   : > { %s5575_s3 = sld [smem:[#allocation19_spill]] (%p124_p3)  ;;  %s431_s17 = scalar_lea.vmem (%p124_p3), [#allocation4], %s3146_s22 }
  0x22   : > { %s4074_s15 = scalar_lea.vmem %s5575_s3, %s3147_s21 }
  0x23   : > { %v450_v0 = vld [vmem:[%s4074_s15] sm:$0xf]  ;;  %v452_v1 = vld [vmem:[%s4074_s15 + $0xc] sm:$0xf]  ;;  %v454_v2 = vld [vmem:[%s4074_s15 + $0x18] sm:$0xf] }
  0x24   : > { %451 = vst [vmem:[%s431_s17] sm:$0xf] %v450_v0  ;;  %453 = vst [vmem:[%s431_s17 + $0x4] sm:$0xf] %v452_v1  ;;  %v456_v3 = vld [vmem:[%s4074_s15 + $0x24] sm:$0xf] }
  0x25   : > { %v458_v4 = vld [vmem:[%s4074_s15 + $0x30] sm:$0xf]  ;;  %455 = vst [vmem:[%s431_s17 + $0x8] sm:$0xf] %v454_v2  ;;  %457 = vst [vmem:[%s431_s17 + $0xc] sm:$0xf] %v456_v3 }
  0x26   : > { %459 = vst [vmem:[%s431_s17 + $0x10] sm:$0xf] %v458_v4  ;;  %v460_v5 = vld [vmem:[%s4074_s15 + $0x3c] sm:$0xf]  ;;  %v462_v6 = vld [vmem:[%s4074_s15 + $0x48] sm:$0xf] }
  0x27   : > { %v464_v7 = vld [vmem:[%s4074_s15 + $0x54] sm:$0xf]  ;;  %461 = vst [vmem:[%s431_s17 + $0x14] sm:$0xf] %v460_v5  ;;  %463 = vst [vmem:[%s431_s17 + $0x18] sm:$0xf] %v462_v6 }
  0x28   : > { %465 = vst [vmem:[%s431_s17 + $0x1c] sm:$0xf] %v464_v7  ;;  %v466_v8 = vld [vmem:[%s4074_s15 + $0x60] sm:$0xf]  ;;  %v468_v9 = vld [vmem:[%s4074_s15 + $0x6c] sm:$0xf] }
  0x29   : > { %v470_v10 = vld [vmem:[%s4074_s15 + $0x78] sm:$0xf]  ;;  %467 = vst [vmem:[%s431_s17 + $0x20] sm:$0xf] %v466_v8  ;;  %469 = vst [vmem:[%s431_s17 + $0x24] sm:$0xf] %v468_v9 }
  0x2a   : > { %471 = vst [vmem:[%s431_s17 + $0x28] sm:$0xf] %v470_v10  ;;  %v472_v11 = vld [vmem:[%s4074_s15 + $0x84] sm:$0xf]  ;;  %v474_v12 = vld [vmem:[%s4074_s15 + $0x90] sm:$0xf] }
  0x2b   : > { %v476_v13 = vld [vmem:[%s4074_s15 + $0x9c] sm:$0xf]  ;;  %473 = vst [vmem:[%s431_s17 + $0x2c] sm:$0xf] %v472_v11  ;;  %475 = vst [vmem:[%s431_s17 + $0x30] sm:$0xf] %v474_v12 }
  0x2c   : > { %477 = vst [vmem:[%s431_s17 + $0x34] sm:$0xf] %v476_v13  ;;  %v478_v14 = vld [vmem:[%s4074_s15 + $0xa8] sm:$0xf]  ;;  %v480_v15 = vld [vmem:[%s4074_s15 + $0xb4] sm:$0xf] }
  0x2d   : > { %479 = vst [vmem:[%s431_s17 + $0x38] sm:$0xf] %v478_v14  ;;  %481 = vst [vmem:[%s431_s17 + $0x3c] sm:$0xf] %v480_v15 }
  0x2e PF: > { %p3148_p7 = scmp.ge.s32.totalorder %s3943_s14, 1  ;;  %p600_p8 = scmp.lt.s32.totalorder %s3943_s14, 10 }
  0x30   : > { %p601_p9 = pnand %p3148_p7, %p600_p8 }
  0x32   : > { %604 = sbr.rel (%p601_p9) target bundleno = 1668 (0x684), region = 109 }
  0x37   : > { %s607_s18 = sand.u32 1, %s3919_s25   ;;  %s3150_s20 = sshll.u32 %s3927_s27, 4 }
  0x38   : > { %s3149_s21 = sshll.u32 %s607_s18, 6  ;;  %p693_p10 = scmp.lt.s32.totalorder %s3150_s20, 47 }
  0x39   : > { %p704_p11 = scmp.lt.s32.totalorder %s3931_s28, 2  ;;  %p742_p12 = scmp.eq.s32.totalorder %s3931_s28, 0 }
  0x3a   : > { %s5677_s20 = smov (!%p693_p10, %s3150_s20), 47  ;;  %s5576_s1 = sld [smem:[#allocation17_spill]] }
  0x3b   : > { %s4098_s15 = scalar_select %p704_p11, %s3931_s28, 2 }
  0x3c   : > { %s3151_s22 = sshll.u32 %s5677_s20, 2  ;;  %s5578_s2 = sld [smem:[#allocation18_spill]] }
  0x3d   : > { %s3300_s16 = sshll.u32 %s4098_s15, 4  ;;  %s3301_s30 = sshll.u32 %s4098_s15, 6 }
  0x3e   : > { %s5580_s4 = sld [smem:[#allocation20_spill]]  ;;  %s724_s29 = scalar_lea.vmem %s5540_s8, %s4098_s15 }
  0x3f   : > { %s5581_s5 = sld [smem:[#allocation21_spill]]  ;;  %s732_s20 = scalar_lea.vmem %s5542_s10, %s4098_s15 }
  0x40   : > { %s4104_s25 = scalar_lea.vmem %s5576_s1, %s3151_s22  ;;  %s4148_s1 = scalar_lea.vmem %s5543_s11, %s3300_s16 }
  0x41   : > { %5577 = sst [smem:[#allocation12_spill]] %s4104_s25  ;;  %p743_p13 = scmp.eq.s32.totalorder %s3927_s27, 0 }
  0x42   : > { %s4109_s3 = scalar_lea.vmem %s5578_s2, %s3151_s22  ;;  %s4130_s22 = scalar_lea.vmem %s5539_s7, %s3300_s16 }
  0x43   : > { %5579 = sst [smem:[#allocation13_spill]] %s4109_s3  ;;  %s4139_s3 = scalar_lea.vmem %s5541_s9, %s3300_s16 }
  0x44   : > { %s4116_s26 = scalar_lea.vmem %s5580_s4, %s3300_s16  ;;  %p744_p0 = pnand %p743_p13, %p742_p12 }
  0x45   : > { %s4121_s13 = scalar_lea.vmem %s5581_s5, %s3301_s30  ;;  %s740_s5 = scalar_lea.vmem %s5544_s12, %s4098_s15 }
  0x46   : > { %s4157_s2 = scalar_lea.vmem [#allocation4], %s3149_s21  ;;  %747 = sbr.rel (%p744_p0) target bundleno = 123 (0x7b), region = 117 }
  0x47   : > { %s5582_s24 = sld [smem:[#allocation22_spill]] (!%p744_p0) }
  0x4b   : > { %v748_v16 = vld [vmem:[%s5532_s0] sm:$0xff]  ;;  %vm764_vm0 = vcmask 261120   ;;  %v749_v17 = vld [vmem:[%s5532_s0 + $0x8] sm:$0xff]  ;;  %v750_v18 = vld [vmem:[%s5532_s0 + $0x10] sm:$0xff] }
  0x4d   : > { %765 = vst.msk [vmem:[%s5582_s24] sm:$0xff] %vm764_vm0, %v748_v16  ;;  %766 = vst.msk [vmem:[%s5582_s24 + $0x8] sm:$0xff] %vm764_vm0, %v749_v17 }
  0x4e   : > { %767 = vst.msk [vmem:[%s5582_s24 + $0x10] sm:$0xff] %vm764_vm0, %v750_v18 }
  0x55   : > { %v751_v19 = vld [vmem:[%s5532_s0 + $0x18] sm:$0xff]  ;;  %v752_v20 = vld [vmem:[%s5532_s0 + $0x20] sm:$0xff]  ;;  %v753_v21 = vld [vmem:[%s5532_s0 + $0x28] sm:$0xff] }
  0x56   : > { %768 = vst.msk [vmem:[%s5582_s24 + $0x18] sm:$0xff] %vm764_vm0, %v751_v19  ;;  %769 = vst.msk [vmem:[%s5582_s24 + $0x20] sm:$0xff] %vm764_vm0, %v752_v20 }
  0x57   : > { %770 = vst.msk [vmem:[%s5582_s24 + $0x28] sm:$0xff] %vm764_vm0, %v753_v21 }
  0x5e   : > { %v754_v22 = vld [vmem:[%s5532_s0 + $0x30] sm:$0xff]  ;;  %v755_v23 = vld [vmem:[%s5532_s0 + $0x38] sm:$0xff]  ;;  %v756_v24 = vld [vmem:[%s5532_s0 + $0x40] sm:$0xff] }
  0x5f   : > { %771 = vst.msk [vmem:[%s5582_s24 + $0x30] sm:$0xff] %vm764_vm0, %v754_v22  ;;  %772 = vst.msk [vmem:[%s5582_s24 + $0x38] sm:$0xff] %vm764_vm0, %v755_v23 }
  0x60   : > { %773 = vst.msk [vmem:[%s5582_s24 + $0x40] sm:$0xff] %vm764_vm0, %v756_v24 }
  0x67   : > { %v757_v25 = vld [vmem:[%s5532_s0 + $0x48] sm:$0xff]  ;;  %v758_v26 = vld [vmem:[%s5532_s0 + $0x50] sm:$0xff]  ;;  %v759_v27 = vld [vmem:[%s5532_s0 + $0x58] sm:$0xff] }
  0x68   : > { %774 = vst.msk [vmem:[%s5582_s24 + $0x48] sm:$0xff] %vm764_vm0, %v757_v25  ;;  %775 = vst.msk [vmem:[%s5582_s24 + $0x50] sm:$0xff] %vm764_vm0, %v758_v26 }
  0x69   : > { %776 = vst.msk [vmem:[%s5582_s24 + $0x58] sm:$0xff] %vm764_vm0, %v759_v27 }
  0x70   : > { %v760_v28 = vld [vmem:[%s5532_s0 + $0x60] sm:$0xff]  ;;  %v761_v29 = vld [vmem:[%s5532_s0 + $0x68] sm:$0xff]  ;;  %v762_v30 = vld [vmem:[%s5532_s0 + $0x70] sm:$0xff] }
  0x71   : > { %777 = vst.msk [vmem:[%s5582_s24 + $0x60] sm:$0xff] %vm764_vm0, %v760_v28  ;;  %778 = vst.msk [vmem:[%s5582_s24 + $0x68] sm:$0xff] %vm764_vm0, %v761_v29 }
  0x72   : > { %779 = vst.msk [vmem:[%s5582_s24 + $0x70] sm:$0xff] %vm764_vm0, %v762_v30 }
  0x79   : > { %v763_v31 = vld [vmem:[%s5532_s0 + $0x78] sm:$0xff] }
  0x7a   : > { %780 = vst.msk [vmem:[%s5582_s24 + $0x78] sm:$0xff] %vm764_vm0, %v763_v31 }
  0x7b PF: > { %p3164_p1 = scmp.ne.s32.totalorder %s3927_s27, 0 }
  0x7c   : > { %s5583_s4 = sld [smem:[#allocation22_spill]] (!%p3164_p1) }
  0x7d   : > { %783 = sbr.rel (%p3164_p1) target bundleno = 349 (0x15d), region = 121 }
  0x82   : > { %v3663_v32 = vld [vmem:[%s4116_s26 + $0x8] sm:$0xff]   ;;  %vm824_vm1 = vcmask 261120   ;;  %v3664_v33 = vld [vmem:[%s4116_s26] sm:$0xff]   ;;  %v3945_v36 = vmov 0.0   ;;  %v786_v40 = vld [vmem:[%s5583_s4 + $0x10] sm:$0xff]  ;;  %vm1010_vm2 = vcmask 257024  }
  0x83   : > { %3409 = vmatprep.subr.bf16.mxu0 %v3663_v32  ;;  %3585 = vmatprep.subr.bf16.mxu1 %v3663_v32  ;;  %v784_v34 = vld [vmem:[%s5583_s4] sm:$0xff]  ;;  %v785_v35 = vld [vmem:[%s5583_s4 + $0x8] sm:$0xff]  ;;  %1027 = vst.msk [vmem:[#allocation3] sm:$0xff] %vm824_vm1, %v3945_v36  ;;  %1028 = vst.msk [vmem:[#allocation3 + $0x8] sm:$0xff] %vm824_vm1, %v3945_v36 }
  0x84   : > { %1029 = vst.msk [vmem:[#allocation3 + $0x10] sm:$0xff] %vm824_vm1, %v3945_v36  ;;  %1030 = vst.msk [vmem:[#allocation3 + $0x18] sm:$0xff] %vm824_vm1, %v3945_v36  ;;  %v792_v37 = vld [vmem:[%s5583_s4 + $0x40] sm:$0xff]  ;;  %3410 = vmatpush3.bf16.msra.mxu0 %v3663_v32  ;;  %3587 = vmatpush3.bf16.msra.mxu1 %v3663_v32  ;;  %v800_v38 = vpack.c.bf16 %v785_v35, %v784_v34  ;;  %v793_v39 = vld [vmem:[%s5583_s4 + $0x48] sm:$0xff] }
  0x85   : > { %1031 = vst.msk [vmem:[#allocation3 + $0x20] sm:$0xff] %vm824_vm1, %v3945_v36  ;;  %1032 = vst.msk [vmem:[#allocation3 + $0x28] sm:$0xff] %vm824_vm1, %v3945_v36  ;;  %v787_v41 = vld [vmem:[%s5583_s4 + $0x18] sm:$0xff]  ;;  %3411 = vmatprep.subr.bf16.mxu0 %v3664_v33  ;;  %3586 = vmatprep.subr.bf16.mxu1 %v3664_v33  ;;  %v804_v42 = vpack.c.bf16 %v793_v39, %v792_v37  ;;  %v794_v43 = vld [vmem:[%s5583_s4 + $0x50] sm:$0xff] }
  0x86   : > { %1033 = vst.msk [vmem:[#allocation3 + $0x30] sm:$0xff] %vm824_vm1, %v3945_v36  ;;  %1034 = vst.msk [vmem:[#allocation3 + $0x38] sm:$0xff] %vm824_vm1, %v3945_v36  ;;  %v795_v44 = vld [vmem:[%s5583_s4 + $0x58] sm:$0xff]  ;;  %v788_v45 = vld [vmem:[%s5583_s4 + $0x20] sm:$0xff]  ;;  %3413 = vmatprep.mubr.msk.bf16.mxu0 %vm824_vm1, %v800_v38  ;;  %v801_v49 = vpack.c.bf16 %v787_v41, %v786_v40 }
  0x87   : > { %1035 = vst.msk [vmem:[#allocation3 + $0x40] sm:$0xff] %vm824_vm1, %v3945_v36  ;;  %1036 = vst.msk [vmem:[#allocation3 + $0x48] sm:$0xff] %vm824_vm1, %v3945_v36  ;;  %v789_v46 = vld [vmem:[%s5583_s4 + $0x28] sm:$0xff]  ;;  %v796_v47 = vld [vmem:[%s5583_s4 + $0x60] sm:$0xff]  ;;  %3421 = vmatprep.mubr.msk.bf16.mxu1 %vm824_vm1, %v804_v42  ;;  %v805_v50 = vpack.c.bf16 %v795_v44, %v794_v43 }
  0x88   : > { %1037 = vst.msk [vmem:[#allocation3 + $0x50] sm:$0xff] %vm824_vm1, %v3945_v36  ;;  %1038 = vst.msk [vmem:[#allocation3 + $0x58] sm:$0xff] %vm824_vm1, %v3945_v36  ;;  %v797_v48 = vld [vmem:[%s5583_s4 + $0x68] sm:$0xff]  ;;  %3412 = vmatpush3.bf16.msra.mxu0 %v3664_v33  ;;  %3588 = vmatpush3.bf16.msra.mxu1 %v3664_v33  ;;  %v802_v51 = vpack.c.bf16 %v789_v46, %v788_v45  ;;  %v790_v53 = vld [vmem:[%s5583_s4 + $0x30] sm:$0xff] }
  0x89   : > { %1039 = vst.msk [vmem:[#allocation3 + $0x60] sm:$0xff] %vm824_vm1, %v3945_v36  ;;  %1040 = vst.msk [vmem:[#allocation3 + $0x68] sm:$0xff] %vm824_vm1, %v3945_v36  ;;  %v806_v52 = vpack.c.bf16 %v797_v48, %v796_v47  ;;  %v791_v54 = vld [vmem:[%s5583_s4 + $0x38] sm:$0xff]  ;;  %v798_v55 = vld [vmem:[%s5583_s4 + $0x70] sm:$0xff] }
  0x8a   : > { %1041 = vst.msk [vmem:[#allocation3 + $0x70] sm:$0xff] %vm824_vm1, %v3945_v36  ;;  %1042 = vst.msk [vmem:[#allocation3 + $0x78] sm:$0xff] %vm824_vm1, %v3945_v36  ;;  %v799_v56 = vld [vmem:[%s5583_s4 + $0x78] sm:$0xff]  ;;  %v803_v57 = vpack.c.bf16 %v791_v54, %v790_v53 }
  0x8b   : > { %3414 = vmatmul.mubr.msk.bf16.vlgmr.msra.gmra.mxu0 %vm824_vm1, %v801_v49  ;;  %3422 = vmatmul.mubr.msk.bf16.vlgmr.msra.gmra.mxu1 %vm824_vm1, %v805_v50  ;;  %v807_v58 = vpack.c.bf16 %v799_v56, %v798_v55 }
  0x8c   : > { %3417 = vmatprep.mubr.msk.bf16.mxu0 %vm824_vm1, %v802_v51  ;;  %3425 = vmatprep.mubr.msk.bf16.mxu1 %vm824_vm1, %v806_v52 }
  0x93   : > { %3418 = vmatmul.mubr.msk.bf16.gmra.mxu0 %vm824_vm1, %v803_v57  ;;  %3426 = vmatmul.mubr.msk.bf16.gmra.mxu1 %vm824_vm1, %v807_v58 }
 0x14b   : > { %v3415_v59 = vpop.f32.mrf.mxu0  ;;  %v3423_v60 = vpop.f32.mrf.mxu1 }
 0x14c   : > { %v3307_v61 = vpack.c.bf16 %v3415_v59, %v3415_v59  ;;  %v3315_v62 = vpack.c.bf16 %v3423_v60, %v3423_v60 }
 0x14d   : > { %v883_v63 = vpop.f32.mrf.mxu0  ;;  %v915_v0 = vpop.f32.mrf.mxu1 }
 0x14e   : > { %1013 = vst.msk [vmem:[#allocation2 + $0x8] sm:$0xf] %vm1010_vm2, %v3307_v61  ;;  %1021 = vst.msk [vmem:[#allocation2 + $0x28] sm:$0xf] %vm1010_vm2, %v3315_v62  ;;  %v3305_v1 = vpack.c.bf16 %v883_v63, %v883_v63  ;;  %v3313_v2 = vpack.c.bf16 %v915_v0, %v915_v0 }
 0x14f   : > { %v3416_v3 = vpop.f32.mrf.mxu0  ;;  %v3424_v4 = vpop.f32.mrf.mxu1 }
 0x150   : > { %1011 = vst.msk [vmem:[#allocation2] sm:$0xf] %vm1010_vm2, %v3305_v1  ;;  %1019 = vst.msk [vmem:[#allocation2 + $0x20] sm:$0xf] %vm1010_vm2, %v3313_v2  ;;  %v3308_v5 = vpack.c.bf16 %v3416_v3, %v3416_v3  ;;  %v3316_v6 = vpack.c.bf16 %v3424_v4, %v3424_v4 }
 0x151   : > { %v886_v7 = vpop.f32.mrf.mxu0  ;;  %v918_v8 = vpop.f32.mrf.mxu1 }
 0x152   : > { %1014 = vst.msk [vmem:[#allocation2 + $0xc] sm:$0xf] %vm1010_vm2, %v3308_v5  ;;  %1022 = vst.msk [vmem:[#allocation2 + $0x2c] sm:$0xf] %vm1010_vm2, %v3316_v6  ;;  %v3306_v9 = vpack.c.bf16 %v886_v7, %v886_v7  ;;  %v3314_v10 = vpack.c.bf16 %v918_v8, %v918_v8 }
 0x153   : > { %v3419_v11 = vpop.f32.mrf.mxu0  ;;  %v3427_v12 = vpop.f32.mrf.mxu1 }
 0x154   : > { %1012 = vst.msk [vmem:[#allocation2 + $0x4] sm:$0xf] %vm1010_vm2, %v3306_v9  ;;  %1020 = vst.msk [vmem:[#allocation2 + $0x24] sm:$0xf] %vm1010_vm2, %v3314_v10  ;;  %v3311_v13 = vpack.c.bf16 %v3419_v11, %v3419_v11  ;;  %v3319_v14 = vpack.c.bf16 %v3427_v12, %v3427_v12 }
 0x155   : > { %v899_v15 = vpop.f32.mrf.mxu0  ;;  %v931_v16 = vpop.f32.mrf.mxu1 }
 0x156   : > { %1017 = vst.msk [vmem:[#allocation2 + $0x18] sm:$0xf] %vm1010_vm2, %v3311_v13  ;;  %1025 = vst.msk [vmem:[#allocation2 + $0x38] sm:$0xf] %vm1010_vm2, %v3319_v14  ;;  %v3309_v17 = vpack.c.bf16 %v899_v15, %v899_v15  ;;  %v3317_v18 = vpack.c.bf16 %v931_v16, %v931_v16 }
 0x157   : > { %v3420_v19 = vpop.f32.mrf.mxu0  ;;  %v3428_v20 = vpop.f32.mrf.mxu1 }
 0x158   : > { %1015 = vst.msk [vmem:[#allocation2 + $0x10] sm:$0xf] %vm1010_vm2, %v3309_v17  ;;  %1023 = vst.msk [vmem:[#allocation2 + $0x30] sm:$0xf] %vm1010_vm2, %v3317_v18  ;;  %v3312_v21 = vpack.c.bf16 %v3420_v19, %v3420_v19  ;;  %v3320_v22 = vpack.c.bf16 %v3428_v20, %v3428_v20 }
 0x159   : > { %v902_v23 = vpop.f32.mrf.mxu0  ;;  %v934_v24 = vpop.f32.mrf.mxu1 }
 0x15a   : > { %1018 = vst.msk [vmem:[#allocation2 + $0x1c] sm:$0xf] %vm1010_vm2, %v3312_v21  ;;  %1026 = vst.msk [vmem:[#allocation2 + $0x3c] sm:$0xf] %vm1010_vm2, %v3320_v22  ;;  %v3310_v25 = vpack.c.bf16 %v902_v23, %v902_v23  ;;  %v3318_v26 = vpack.c.bf16 %v934_v24, %v934_v24 }
 0x15c   : > { %1016 = vst.msk [vmem:[#allocation2 + $0x14] sm:$0xf] %vm1010_vm2, %v3310_v25  ;;  %1024 = vst.msk [vmem:[#allocation2 + $0x34] sm:$0xf] %vm1010_vm2, %v3318_v26 }
 0x15d PF: > { %s5584_s4 = sld [smem:[#allocation12_spill]]  ;;  %v3707_v27 = vld [vmem:[%s4121_s13 + $0x38] sm:$0xff]   ;;  %v3708_v28 = vld [vmem:[%s4121_s13 + $0x30] sm:$0xff]   ;;  %v3709_v29 = vld [vmem:[%s4121_s13 + $0x28] sm:$0xff]   ;;  %s5585_s23 = scalar_lea.vmem %s5538_s6, %s4098_s15  ;;  %v3946_v1 = vmov 16   ;;  %vm1626_vm2 = vcmask 261120  }
 0x15e   : > { %3429 = vmatprep.subr.bf16.mxu0 %v3707_v27  ;;  %v3710_v30 = vld [vmem:[%s4121_s13 + $0x20] sm:$0xff]   ;;  %v3711_v32 = vld [vmem:[%s4121_s13 + $0x18] sm:$0xff]   ;;  %v3712_v33 = vld [vmem:[%s4121_s13 + $0x10] sm:$0xff]   ;;  %3665 = vset.pattern.permute.xlu0 %v3946_v1  ;;  %p3259_p2 = scmp.ne.s32.totalorder %s3927_s27, 2 }
 0x15f   : > { %3430 = vmatpush3.bf16.msra.mxu0 %v3707_v27  ;;  %v3713_v34 = vld [vmem:[%s4121_s13 + $0x8] sm:$0xff]   ;;  %v3714_v35 = vld [vmem:[%s4121_s13] sm:$0xff]   ;;  %3676 = vset.pattern.permute.xlu1 %v3946_v1  ;;  %s5662_s25 = sld [smem:[#allocation22_spill]] (!%p3259_p2) }
 0x160   : > { %3431 = vmatprep.subr.bf16.mxu0 %v3708_v28  ;;  %v3723_v43 = vld [vmem:[%s4130_s22 + $0x8] sm:$0xff]   ;;  %v3724_v44 = vld [vmem:[%s4130_s22] sm:$0xff]   ;;  %s5632_s22 = sld [smem:[#allocation13_spill]] }
 0x161   : > { %3461 = vmatprep.subr.bf16.mxu1 %v3723_v43  ;;  %v4404_v45 = vld [vmem:[#allocation2 + $0x38] sm:$0xff]   ;;  %v4412_v47 = vld [vmem:[%s5585_s23] ss:$0 sm:$0xff] }
 0x162   : > { %3462 = vmatpush3.bf16.msra.mxu1 %v3723_v43 }
 0x163   : > { %3432 = vmatpush3.bf16.msra.mxu0 %v3708_v28  ;;  %v4367_v31 = vld [vmem:[%s5584_s4] sm:$0xff]   ;;  %v4375_v36 = vld [vmem:[%s5584_s4 + $0x8] sm:$0xff]   ;;  %v4378_v37 = vld [vmem:[%s5584_s4 + $0x10] sm:$0xff]   ;;  %3463 = vmatprep.subr.bf16.mxu1 %v3724_v44 }
 0x164   : > { %3433 = vmatprep.subr.bf16.mxu0 %v3709_v29  ;;  %3445 = vmatprep.mubr.bf16.mxu0 %v4367_v31  ;;  %v4383_v38 = vld [vmem:[%s5584_s4 + $0x18] sm:$0xff]   ;;  %v4386_v39 = vld [vmem:[%s5584_s4 + $0x20] sm:$0xff]   ;;  %v4391_v40 = vld [vmem:[%s5584_s4 + $0x28] sm:$0xff]  }
 0x165   : > { %v4394_v41 = vld [vmem:[%s5584_s4 + $0x30] sm:$0xff]   ;;  %v4399_v42 = vld [vmem:[%s5584_s4 + $0x38] sm:$0xff]  }
 0x166   : > { %3464 = vmatpush3.bf16.msra.mxu1 %v3724_v44 }
 0x167   : > { %3434 = vmatpush3.bf16.msra.mxu0 %v3709_v29  ;;  %3481 = vmatprep.subr.bf16.mxu1 %v4404_v45 }
 0x168   : > { %3435 = vmatprep.subr.bf16.mxu0 %v3710_v30 }
 0x16b   : > { %3436 = vmatpush3.bf16.msra.mxu0 %v3710_v30 }
 0x16c   : > { %3437 = vmatprep.subr.bf16.mxu0 %v3711_v32 }
 0x16f   : > { %3438 = vmatpush3.bf16.msra.mxu0 %v3711_v32 }
 0x170   : > { %3439 = vmatprep.subr.bf16.mxu0 %v3712_v33 }
 0x173   : > { %3440 = vmatpush3.bf16.msra.mxu0 %v3712_v33 }
 0x174   : > { %3441 = vmatprep.subr.bf16.mxu0 %v3713_v34 }
 0x177   : > { %3442 = vmatpush3.bf16.msra.mxu0 %v3713_v34 }
 0x178   : > { %3443 = vmatprep.subr.bf16.mxu0 %v3714_v35 }
 0x17b   : > { %3444 = vmatpush3.bf16.msra.mxu0 %v3714_v35 }
 0x17e   : > { %3446 = vmatmul.mubr.bf16.vlgmr.msra.gmra.mxu0 %v4375_v36 }
 0x17f   : > { %3449 = vmatprep.mubr.bf16.mxu0 %v4378_v37 }
 0x186   : > { %3450 = vmatmul.mubr.bf16.gmra.mxu0 %v4383_v38 }
 0x187   : > { %3453 = vmatprep.mubr.bf16.mxu0 %v4386_v39 }
 0x18e   : > { %3454 = vmatmul.mubr.bf16.gmra.mxu0 %v4391_v40 }
 0x18f   : > { %3457 = vmatprep.mubr.bf16.mxu0 %v4394_v41 }
 0x196   : > { %3458 = vmatmul.mubr.bf16.gmra.mxu0 %v4399_v42 }
 0x23e   : > { %v3447_v46 = vpop.f32.mrf.mxu0 }
 0x23f   : > { %v4415_v49 = vadd.f32 %v3447_v46, %v4412_v47 }
 0x240   : > { %v1228_v48 = vpop.f32.mrf.mxu0 }
 0x241   : > { %v1341_v52 = vand.u32 2147483647, %v4415_v49  ;;  %v4438_v11 = vadd.f32 %v4412_v47, %v1228_v48  ;;  %vm1309_vm4 = vcmp.ne.f32.partialorder %v4415_v49, %v4415_v49 }
 0x242   : > { %v3448_v50 = vpop.f32.mrf.mxu0 }
 0x243   : > { %v4419_v54 = vadd.f32 %v3448_v50, %v4412_v47  ;;  %v1357_v56 = vsub.f32 0.0, %v1341_v52  ;;  %v1339_v18 = vand.u32 2147483647, %v4438_v11  ;;  %vm1307_vm13 = vcmp.ne.f32.partialorder %v4438_v11, %v4438_v11 }
 0x244   : > { %v1231_v51 = vpop.f32.mrf.mxu0 }
 0x245   : > { %v1342_v58 = vand.u32 2147483647, %v4419_v54  ;;  %v1375_v60 = vmul.f32 1.442695, %v1357_v56  ;;  %v1355_v25 = vsub.f32 0.0, %v1339_v18  ;;  %v4455_v27 = vadd.f32 %v4412_v47, %v1231_v51 }
 0x246   : > { %v3451_v53 = vpop.f32.mrf.mxu0  ;;  %vm1310_vm6 = vcmp.ne.f32.partialorder %v4419_v54, %v4419_v54 }
 0x247   : > { %v4423_v61 = vadd.f32 %v3451_v53, %v4412_v47  ;;  %v1358_v63 = vsub.f32 0.0, %v1342_v58  ;;  %3757 = vpow2.f32 %v1375_v60  ;;  %v1371_v35 = vmul.f32 1.442695, %v1355_v25 }
 0x248   : > { %v1244_v55 = vpop.f32.mrf.mxu0  ;;  %v1340_v46 = vand.u32 2147483647, %v4455_v27  ;;  %vm1308_vm0 = vcmp.ne.f32.partialorder %v4455_v27, %v4455_v27 }
 0x249   : > { %v4429_v2 = vadd.f32 %v4412_v47, %v1244_v55  ;;  %v1345_v3 = vand.u32 2147483647, %v4423_v61  ;;  %v1377_v5 = vmul.f32 1.442695, %v1358_v63 }
 0x24a   : > { %v3452_v57 = vpop.f32.mrf.mxu0 }
 0x24b   : > { %v1343_v7 = vand.u32 2147483647, %v4429_v2  ;;  %v4435_v8 = vadd.f32 %v3452_v57, %v4412_v47  ;;  %v1361_v9 = vsub.f32 0.0, %v1345_v3  ;;  %3759 = vpow2.f32 %v1377_v5 }
 0x24c   : > { %v1247_v59 = vpop.f32.mrf.mxu0  ;;  %v1356_v57 = vsub.f32 0.0, %v1340_v46  ;;  %vm1311_vm11 = vcmp.ne.f32.partialorder %v4429_v2, %v4429_v2 }
 0x24d   : > { %v4426_v0 = vadd.f32 %v4412_v47, %v1247_v59  ;;  %v1359_v13 = vsub.f32 0.0, %v1343_v7  ;;  %v1346_v14 = vand.u32 2147483647, %v4435_v8  ;;  %v1383_v15 = vmul.f32 1.442695, %v1361_v9 }
 0x24e   : > { %v3455_v62 = vpop.f32.mrf.mxu0  ;;  %v1373_v7 = vmul.f32 1.442695, %v1356_v57 }
 0x24f   : > { %v1344_v6 = vand.u32 2147483647, %v4426_v0  ;;  %v4442_v16 = vadd.f32 %v3455_v62, %v4412_v47  ;;  %v1379_v20 = vmul.f32 1.442695, %v1359_v13  ;;  %v1362_v21 = vsub.f32 0.0, %v1346_v14 }
 0x250   : > { %v1260_v4 = vpop.f32.mrf.mxu0  ;;  %3761 = vpow2.f32 %v1383_v15  ;;  %vm1312_vm10 = vcmp.ne.f32.partialorder %v4426_v0, %v4426_v0 }
 0x251   : > { %v1360_v12 = vsub.f32 0.0, %v1344_v6  ;;  %v1349_v23 = vand.u32 2147483647, %v4442_v16  ;;  %v4452_v26 = vadd.f32 %v4412_v47, %v1260_v4  ;;  %v1385_v29 = vmul.f32 1.442695, %v1362_v21 }
 0x252   : > { %v3456_v10 = vpop.f32.mrf.mxu0  ;;  %v1293_v6 = vmax.f32 %v4415_v49, 0.0 }
 0x253   : > { %v1381_v19 = vmul.f32 1.442695, %v1360_v12  ;;  %v4458_v30 = vadd.f32 %v3456_v10, %v4412_v47  ;;  %v1365_v34 = vsub.f32 0.0, %v1349_v23  ;;  %v1347_v43 = vand.u32 2147483647, %v4452_v26 }
 0x254   : > { %v1263_v17 = vpop.f32.mrf.mxu0  ;;  %v4449_v24 = vpop.eup %3757  ;;  %v1294_v10 = vmax.f32 %v4419_v54, 0.0 }
 0x255   : > { %v4446_v22 = vadd.f32 %v4412_v47, %v1263_v17  ;;  %3763 = vpow2.f32 %v1381_v19  ;;  %v1421_v33 = vadd.f32 1.0, %v4449_v24  ;;  %v1350_v50 = vand.u32 2147483647, %v4458_v30 }
 0x256   : > { %v3459_v28 = vpop.f32.mrf.mxu0  ;;  %3765 = vpow2.f32 %v1379_v20  ;;  %v1391_v52 = vmul.f32 1.442695, %v1365_v34  ;;  %v1363_v55 = vsub.f32 0.0, %v1347_v43  ;;  %v1424_v14 = vmul.f32 -0.5, %v4449_v24 }
 0x257   : > { %v1348_v32 = vand.u32 2147483647, %v4446_v22  ;;  %3767 = vpow2.f32 %v1385_v29  ;;  %v1366_v58 = vsub.f32 0.0, %v1350_v50  ;;  %v4472_v60 = vadd.f32 %v3459_v28, %v4412_v47 }
 0x258   : > { %v4463_v44 = vpop.eup %3759  ;;  %v1276_v48 = vpop.f32.mrf.mxu0  ;;  %3769 = vlog2.f32 %v1421_v33  ;;  %v1387_v63 = vmul.f32 1.442695, %v1363_v55  ;;  %v1427_v25 = vand.u32 2147483647, %v4449_v24  ;;  %v1296_v33 = vmax.f32 %v4426_v0, 0.0 }
 0x259   : > { %v1364_v51 = vsub.f32 0.0, %v1348_v32  ;;  %3771 = vpow2.f32 %v1371_v35  ;;  %v1430_v53 = vadd.f32 1.0, %v4463_v44  ;;  %v4469_v56 = vadd.f32 %v4412_v47, %v1276_v48  ;;  %5586 = vst [vmem:[#allocation14_spill] sm:$0xff] %v4472_v60 }
 0x25a   : > { %3773 = vpow2.f32 %v1391_v52  ;;  %v1393_v12 = vmul.f32 1.442695, %v1366_v58  ;;  %v1353_v18 = vand.u32 2147483647, %v4472_v60  ;;  %v3460_v19 = vpop.f32.mrf.mxu0  ;;  %v1425_v43 = vadd.f32 1.0, %v1424_v14 }
 0x25b   : > { %v1389_v59 = vmul.f32 1.442695, %v1364_v51  ;;  %3775 = vlog2.f32 %v1430_v53  ;;  %v1351_v1 = vand.u32 2147483647, %v4469_v56  ;;  %v4498_v34 = vadd.f32 %v3460_v19, %v4412_v47 }
 0x25c   : > { %v1369_v48 = vsub.f32 0.0, %v1353_v18  ;;  %vm4507_vm3 = vcmp.lt.f32.partialorder %v1427_v25, 0.0004427343  ;;  %v1433_v58 = vmul.f32 -0.5, %v4463_v44  ;;  %v1070_v28 = vunpack.c.h.bf16 %v4391_v40 }
 0x25d   : > { %v4474_v62 = vpop.eup %3761  ;;  %3777 = vpow2.f32 %v1389_v59  ;;  %v1367_v23 = vsub.f32 0.0, %v1351_v1  ;;  %5587 = vst [vmem:[#allocation15_spill] sm:$0xff] %v4498_v34  ;;  %v1436_v59 = vand.u32 2147483647, %v4463_v44 }
 0x25e   : > { %v1457_v17 = vadd.f32 1.0, %v4474_v62  ;;  %3779 = vpow2.f32 %v1387_v63  ;;  %v1460_v63 = vmul.f32 -0.5, %v4474_v62  ;;  %v1399_v19 = vmul.f32 1.442695, %v1369_v48 }
 0x25f   : > { %3781 = vpow2.f32 %v1373_v7  ;;  %v1395_v53 = vmul.f32 1.442695, %v1367_v23  ;;  %v1434_v51 = vadd.f32 1.0, %v1433_v58  ;;  %vm4525_vm5 = vcmp.lt.f32.partialorder %v1436_v59, 0.0004427343 }
 0x260   : > { %3783 = vpow2.f32 %v1393_v12  ;;  %v1354_v12 = vand.u32 2147483647, %v4498_v34  ;;  %v5605_v34 = vmax.f32 %v4429_v2, 0.0 }
 0x261   : > { %3785 = vlog2.f32 %v1457_v17  ;;  %v1426_v17 = vmul.f32 %v4449_v24, %v1425_v43  ;;  %v1461_v24 = vadd.f32 1.0, %v1460_v63  ;;  %v1463_v43 = vand.u32 2147483647, %v4474_v62 }
 0x262   : > { %v4477_v3 = vpop.eup %3763  ;;  %v1370_v52 = vsub.f32 0.0, %v1354_v12 }
 0x263   : > { %v4484_v13 = vpop.eup %3765  ;;  %v1448_v21 = vadd.f32 1.0, %v4477_v3  ;;  %v1451_v29 = vmul.f32 -0.5, %v4477_v3  ;;  %v1454_v63 = vand.u32 2147483647, %v4477_v3  ;;  %vm4558_vm7 = vcmp.lt.f32.partialorder %v1463_v43, 0.0004427343 }
 0x264   : > { %v1439_v32 = vadd.f32 1.0, %v4484_v13  ;;  %v4500_v35 = vpop.eup %3767  ;;  %v1442_v1 = vmul.f32 -0.5, %v4484_v13  ;;  %v1401_v59 = vmul.f32 1.442695, %v1370_v52 }
 0x265   : > { %v3770_v50 = vpop.eup %3769  ;;  %3787 = vlog2.f32 %v1448_v21  ;;  %v1466_v7 = vadd.f32 1.0, %v4500_v35  ;;  %v1469_v18 = vmul.f32 -0.5, %v4500_v35  ;;  %v1279_v21 = vpop.f32.mrf.mxu0  ;;  %v1452_v52 = vadd.f32 1.0, %v1451_v29 }
 0x266   : > { %v4505_v55 = vpop.eup %3771  ;;  %3789 = vlog2.f32 %v1439_v32  ;;  %v1423_v14 = vmul.f32 0.6931472, %v3770_v50  ;;  %v1443_v48 = vadd.f32 1.0, %v1442_v1  ;;  %vm4571_vm8 = vcmp.lt.f32.partialorder %v1454_v63, 0.0004427343 }
 0x267   : > { %v4519_v23 = vpop.eup %3773  ;;  %3791 = vpow2.f32 %v1395_v53  ;;  %v1403_v32 = vadd.f32 1.0, %v4505_v55  ;;  %v4532_v53 = vadd.f32 %v4412_v47, %v1279_v21  ;;  %v1470_v58 = vadd.f32 1.0, %v1469_v18 }
 0x268   : > { %v3776_v46 = vpop.eup %3775  ;;  %3793 = vlog2.f32 %v1466_v7  ;;  %v1429_v25 = vsel %vm4507_vm3, %v1426_v17, %v1423_v14  ;;  %v1496_v5 = vmul.f32 -0.5, %v4519_v23  ;;  %v1435_v7 = vmul.f32 %v4463_v44, %v1434_v51 }
 0x269   : > { %5592 = vst [vmem:[#allocation16_spill] sm:$0xff] %v4532_v53  ;;  %3795 = vpow2.f32 %v1399_v19  ;;  %v1432_v20 = vmul.f32 0.6931472, %v3776_v46  ;;  %v4544_v47 = vmul.f32 %v4474_v62, %v1461_v24  ;;  %v1445_v21 = vand.u32 2147483647, %v4484_v13 }
 0x26a   : > { %v4534_v12 = vpop.eup %3777  ;;  %3797 = vlog2.f32 %v1403_v32  ;;  %v1493_v57 = vadd.f32 1.0, %v4519_v23  ;;  %v1549_v46 = vadd.f32 %v1429_v25, %v1293_v6  ;;  %v1352_v44 = vand.u32 2147483647, %v4532_v53 }
 0x26b   : > { %v4540_v1 = vpop.eup %3779  ;;  %v1484_v17 = vadd.f32 1.0, %v4534_v12  ;;  %v4563_v18 = vmul.f32 %v4484_v13, %v1443_v48  ;;  %v4566_v19 = vmul.f32 %v4500_v35, %v1470_v58  ;;  %v1472_v6 = vand.u32 2147483647, %v4500_v35 }
 0x26c   : > { %v4548_v14 = vpop.eup %3781  ;;  %3799 = vpow2.f32 %v1401_v59  ;;  %v1438_v25 = vsel %vm4525_vm5, %v1435_v7, %v1432_v20  ;;  %v1497_v24 = vadd.f32 1.0, %v1496_v5  ;;  %v1475_v43 = vadd.f32 1.0, %v4540_v1 }
 0x26d   : > { %v4556_v51 = vpop.eup %3783  ;;  %vm4576_vm9 = vcmp.lt.f32.partialorder %v1445_v21, 0.0004427343  ;;  %3801 = vlog2.f32 %v1493_v57  ;;  %v1478_v58 = vmul.f32 -0.5, %v4540_v1  ;;  %v1368_v59 = vsub.f32 0.0, %v1352_v44 }
 0x26e   : > { %v3786_v29 = vpop.eup %3785  ;;  %v1565_v20 = vsel %vm1309_vm4, %v4415_v49, %v1549_v46  ;;  %v1453_v5 = vmul.f32 %v4477_v3, %v1452_v52  ;;  %3803 = vlog2.f32 %v1484_v17  ;;  %v1412_v50 = vadd.f32 1.0, %v4548_v14 }
 0x26f   : > { %v1550_v7 = vadd.f32 %v1438_v25, %v1294_v10  ;;  %v1502_v21 = vadd.f32 1.0, %v4556_v51  ;;  %v1505_v57 = vmul.f32 -0.5, %v4556_v51  ;;  %v1397_v15 = vmul.f32 1.442695, %v1368_v59 }
 0x270   : > { %v4592_v44 = vmul.f32 0.6931472, %v3786_v29  ;;  %v4595_v9 = vmul.f32 %v4519_v23, %v1497_v24  ;;  %3805 = vlog2.f32 %v1475_v43  ;;  %v4599_v3 = vadd.f32 -0.6931472, %v1565_v20 }
 0x271   : > { %v1479_v46 = vadd.f32 1.0, %v1478_v58  ;;  %v1481_v52 = vand.u32 2147483647, %v4540_v1  ;;  %3807 = vpow2.f32 %v1397_v15  ;;  %v1406_v29 = vmul.f32 -0.5, %v4505_v55 }
 0x272   : > { %v3788_v4 = vpop.eup %3787  ;;  %3809 = vlog2.f32 %v1412_v50  ;;  %v4610_v25 = vsel %vm1310_vm6, %v4419_v54, %v1550_v7  ;;  %v4612_v24 = vadd.f32 1.0, %v1505_v57  ;;  %v1487_v43 = vmul.f32 -0.5, %v4534_v12 }
 0x273   : > { %v3790_v63 = vpop.eup %3789  ;;  %v1450_v48 = vmul.f32 0.6931472, %v3788_v4  ;;  %3811 = vlog2.f32 %v1502_v21  ;;  %v1073_v54 = vunpack.c.l.bf16 %v4399_v42  ;;  %v1490_v7 = vand.u32 2147483647, %v4534_v12 }
 0x274   : > { %v4597_v49 = vpop.eup %3791  ;;  %v4602_v10 = vmul.f32 0.6931472, %v3790_v63  ;;  %v4626_v63 = vmul.f32 %v4540_v1, %v1479_v46  ;;  %v1074_v21 = vunpack.c.h.bf16 %v4399_v42  ;;  %v1069_v57 = vunpack.c.l.bf16 %v4391_v40 }
 0x275   : > { %v3794_v4 = vpop.eup %3793  ;;  %v1456_v59 = vsel %vm4571_vm8, %v1453_v5, %v1450_v48  ;;  %v1511_v20 = vadd.f32 1.0, %v4597_v49  ;;  %v1407_v5 = vadd.f32 1.0, %v1406_v29  ;;  %v1409_v58 = vand.u32 2147483647, %v4505_v55 }
 0x276   : > { %v4615_v15 = vpop.eup %3795  ;;  %v1447_v32 = vsel %vm4576_vm9, %v4563_v18, %v4602_v10  ;;  %v4635_v48 = vmul.f32 0.6931472, %v3794_v4  ;;  %v1552_v1 = vadd.f32 %v1456_v59, %v1296_v33  ;;  %v1488_v46 = vadd.f32 1.0, %v1487_v43 }
 0x277   : > { %v3798_v50 = vpop.eup %3797  ;;  %v3666_v17 = vpack.i.bf16 %v1074_v21, %v1073_v54  ;;  %v1529_v13 = vadd.f32 1.0, %v4615_v15  ;;  %3813 = vlog2.f32 %v1511_v20  ;;  %v1415_v10 = vmul.f32 -0.5, %v4548_v14 }
 0x278   : > { %v1405_v18 = vmul.f32 0.6931472, %v3798_v50  ;;  %v3677_v33 = vpack.i.bf16 %v1070_v28, %v1069_v57  ;;  %v1071_v29 = vunpack.c.l.bf16 %v4394_v41  ;;  %v1072_v40 = vunpack.c.h.bf16 %v4394_v41 }
 0x279   : > { %v4641_v42 = vpop.eup %3799  ;;  %3667 = vperm.xlu0 %3665, %v3666_v17   ;;  %v1067_v4 = vunpack.c.l.bf16 %v4386_v39  ;;  %vm4656_vm12 = vcmp.lt.f32.partialorder %v1472_v6, 0.0004427343  ;;  %v1408_v17 = vmul.f32 %v4505_v55, %v1407_v5  ;;  %vm4663_vm14 = vcmp.lt.f32.partialorder %v1409_v58, 0.0004427343 }
 0x27a   : > { %v4652_v43 = vpop.eup %3801  ;;  %v1068_v41 = vunpack.c.h.bf16 %v4386_v39  ;;  %v1065_v20 = vunpack.c.l.bf16 %v4383_v38  ;;  %vm4669_vm15 = vcmp.lt.f32.partialorder %v1481_v52, 0.0004427343  ;;  %v1538_v6 = vadd.f32 1.0, %v4641_v42  ;;  %3678 = vperm.xlu1 %3676, %v3677_v33  }
 0x27b   : > { %v3804_v54 = vpop.eup %3803  ;;  %v3671_v50 = vpack.i.bf16 %v1072_v40, %v1071_v29  ;;  %v1066_v21 = vunpack.c.h.bf16 %v4383_v38  ;;  %v1063_v55 = vunpack.c.l.bf16 %v4378_v37  ;;  %v1411_v39 = vsel %vm4663_vm14, %v1408_v17, %v1405_v18 }
 0x27c   : > { %v1416_v58 = vadd.f32 1.0, %v1415_v10  ;;  %v3682_v57 = vpack.i.bf16 %v1068_v41, %v1067_v4  ;;  %v1064_v52 = vunpack.c.h.bf16 %v4378_v37  ;;  %v1418_v60 = vand.u32 2147483647, %v4548_v14 }
 0x27d   : > { %v3806_v5 = vpop.eup %3805  ;;  %3672 = vperm.xlu0 %3665, %v3671_v50   ;;  %v3687_v33 = vpack.i.bf16 %v1066_v21, %v1065_v20  ;;  %v1061_v29 = vunpack.c.l.bf16 %v4375_v36  ;;  %v1062_v38 = vunpack.c.h.bf16 %v4375_v36  ;;  %v1551_v53 = vadd.f32 %v1447_v32, %v5605_v34 }
 0x27e   : > { %v4684_v40 = vpop.eup %3807  ;;  %v1486_v28 = vmul.f32 0.6931472, %v3804_v54  ;;  %v1489_v18 = vmul.f32 %v4534_v12, %v1488_v46  ;;  %vm4689_vm1 = vcmp.lt.f32.partialorder %v1490_v7, 0.0004427343  ;;  %3815 = vlog2.f32 %v1538_v6  ;;  %3683 = vperm.xlu1 %3676, %v3682_v57  }
 0x27f   : > { %v3810_v37 = vpop.eup %3809  ;;  %v1520_v4 = vadd.f32 1.0, %v4684_v40  ;;  %v5608_v17 = vmax.f32 %v4438_v11, 0.0  ;;  %v3692_v36 = vpack.i.bf16 %v1064_v52, %v1063_v55  ;;  %vm1313_vm3 = vcmp.ne.f32.partialorder %v4423_v61, %v4423_v61 }
 0x280   : > { %v3812_v20 = vpop.eup %3811  ;;  %v1477_v34 = vmul.f32 0.6931472, %v3806_v5  ;;  %vm1316_vm4 = vcmp.ne.f32.partialorder %v4446_v22, %v4446_v22  ;;  %3817 = vlog2.f32 %v1529_v13  ;;  %v1414_v12 = vmul.f32 0.6931472, %v3810_v37 }
 0x281   : > { %v1547_v41 = vadd.f32 %v1411_v39, %v5608_v17  ;;  %v1417_v7 = vmul.f32 %v4548_v14, %v1416_v58  ;;  %vm1314_vm5 = vcmp.ne.f32.partialorder %v4435_v8, %v4435_v8  ;;  %v1568_v32 = vsel %vm1312_vm10, %v4426_v0, %v1552_v1  ;;  %3688 = vperm.xlu0 %3665, %v3687_v33  }
 0x282   : > { %v5609_v46 = vand.u32 2147483647, %v4519_v23  ;;  %3819 = vlog2.f32 %v1520_v4  ;;  %vm1419_vm8 = vcmp.lt.f32.partialorder %v1418_v60, 0.0004427343  ;;  %v3697_v13 = vpack.i.bf16 %v1062_v38, %v1061_v29  ;;  %3693 = vperm.xlu1 %3676, %v3692_v36  }
 0x283   : > { %v1567_v14 = vsel %vm1311_vm11, %v4429_v2, %v1551_v53  ;;  %vm1315_vm9 = vcmp.ne.f32.partialorder %v4452_v26, %v4452_v26  ;;  %v5612_v0 = vand.u32 2147483647, %v4556_v51  ;;  %v1492_v1 = vsel %vm4689_vm1, %v1489_v18, %v1486_v28 }
 0x284   : > { %vm4709_vm6 = vcmp.lt.f32.partialorder %v5609_v46, 0.0004427343  ;;  %v1514_v60 = vmul.f32 -0.5, %v4597_v49  ;;  %v1420_v6 = vsel %vm1419_vm8, %v1417_v7, %v1414_v12  ;;  %v1474_v2 = vsel %vm4656_vm12, %v4566_v19, %v4635_v48  ;;  %v3814_v5 = vpop.eup %3813 }
 0x285   : > { %vm4721_vm10 = vcmp.lt.f32.partialorder %v5612_v0, 0.0004427343  ;;  %v5615_v53 = vmax.f32 %v4455_v27, 0.0  ;;  %v1563_v21 = vsel %vm1307_vm13, %v4438_v11, %v1547_v41  ;;  %v5616_v55 = vunpack.c.l.bf16 %v4367_v31  ;;  %3698 = vperm.xlu0 %3665, %v3697_v13  }
 0x286   : > { %v5617_v39 = vunpack.c.h.bf16 %v4367_v31  ;;  %v3211_v57 = vadd.f32 -0.6931472, %v4610_v25  ;;  %v5618_v52 = vmax.f32 %v4423_v61, 0.0  ;;  %v5619_v19 = vsel %vm4558_vm7, %v4544_v47, %v4592_v44 }
 0x287   : > { %v1548_v50 = vadd.f32 %v1420_v6, %v5615_v53  ;;  %v3213_v59 = vadd.f32 -0.6931472, %v1568_v32  ;;  %v1483_v11 = vsel %vm4669_vm15, %v4626_v63, %v1477_v34  ;;  %v3212_v33 = vadd.f32 -0.6931472, %v1567_v14 }
 0x288   : > { %v3702_v58 = vpack.i.bf16 %v5617_v39, %v5616_v55  ;;  %v1553_v48 = vadd.f32 %v5619_v19, %v5618_v52  ;;  %v1495_v31 = vmul.f32 0.6931472, %v4652_v43  ;;  %v5620_v29 = vmax.f32 %v4446_v22, 0.0 }
 0x289   : > { %v1564_v62 = vsel %vm1308_vm0, %v4455_v27, %v1548_v50  ;;  %v5621_v47 = vmax.f32 %v4435_v8, 0.0  ;;  %v1515_v38 = vadd.f32 1.0, %v1514_v60  ;;  %v3208_v28 = vadd.f32 -0.6931472, %v1563_v21 }
 0x28a   : > { %v1556_v25 = vadd.f32 %v1492_v1, %v5620_v29  ;;  %v3209_v35 = vadd.f32 -0.6931472, %v1564_v62  ;;  %v5622_v63 = vmax.f32 %v4452_v26, 0.0  ;;  %v1504_v10 = vmul.f32 0.6931472, %v3812_v20  ;;  %3703 = vperm.xlu1 %3676, %v3702_v58   ;;  %v3728_v62 = vld [vmem:[#allocation2 + $0x20] sm:$0xff]  }
 0x28b   : > { %v1554_v44 = vadd.f32 %v1474_v2, %v5621_v47  ;;  %v1517_v43 = vand.u32 2147483647, %v4597_v49  ;;  %v1523_v37 = vmul.f32 -0.5, %v4684_v40  ;;  %v1507_v4 = vmul.f32 %v4556_v51, %v4612_v24  ;;  %v3726_v24 = vld [vmem:[#allocation2 + $0x30] sm:$0xff]   ;;  %v3727_v2 = vld [vmem:[#allocation2 + $0x28] sm:$0xff]  }
 0x28c   : > { %v1555_v18 = vadd.f32 %v1483_v11, %v5622_v63  ;;  %v1513_v27 = vmul.f32 0.6931472, %v3814_v5  ;;  %v1595_v17 = vpack.c.bf16 %v3209_v35, %v3208_v28  ;;  %v1597_v41 = vpack.c.bf16 %v3213_v59, %v3212_v33  ;;  %v5627_v59 = vld [vmem:[#allocation16_spill] sm:$0xff]  ;;  %v5630_v35 = vld [vmem:[#allocation15_spill] sm:$0xff] }
 0x28d   : > { %v1569_v36 = vsel %vm1313_vm3, %v4423_v61, %v1553_v48  ;;  %vm1318_vm7 = vcmp.ne.f32.partialorder %v4458_v30, %v4458_v30  ;;  %v1572_v20 = vsel %vm1316_vm4, %v4446_v22, %v1556_v25  ;;  %v1541_v34 = vmul.f32 -0.5, %v4641_v42 }
 0x28e   : > { %v1596_v51 = vpack.c.bf16 %v3211_v57, %v4599_v3  ;;  %v1570_v12 = vsel %vm1314_vm5, %v4435_v8, %v1554_v44  ;;  %v1501_v61 = vsel %vm4709_vm6, %v4595_v9, %v1495_v31  ;;  %v1532_v7 = vmul.f32 -0.5, %v4615_v15  ;;  %3465 = vmatprep.mubr.msk.bf16.mxu1 %vm1626_vm2, %v1595_v17  ;;  %v3734_v3 = vld [vmem:[%s5632_s22 + $0x8] sm:$0xff]  }
 0x28f   : > { %v1516_v32 = vmul.f32 %v4597_v49, %v1515_v38  ;;  %vm1317_vm11 = vcmp.ne.f32.partialorder %v4442_v16, %v4442_v16  ;;  %v1571_v22 = vsel %vm1315_vm9, %v4452_v26, %v1555_v18  ;;  %v1510_v8 = vsel %vm4721_vm10, %v1507_v4, %v1504_v10  ;;  %v3816_v49 = vpop.eup %3815 }
 0x290   : > { %vm4798_vm12 = vcmp.lt.f32.partialorder %v1517_v43, 0.0004427343  ;;  %v1524_v9 = vadd.f32 1.0, %v1523_v37  ;;  %3466 = vmatmul.mubr.msk.bf16.vlgmr.msra.gmra.mxu1 %vm1626_vm2, %v1596_v51  ;;  %v3217_v46 = vadd.f32 -0.6931472, %v1572_v20  ;;  %v1303_v54 = vmax.f32 %v4469_v56, 0.0  ;;  %v3818_v26 = vpop.eup %3817 }
 0x291   : > { %v1519_v13 = vsel %vm4798_vm12, %v1516_v32, %v1513_v27  ;;  %v1526_v14 = vand.u32 2147483647, %v4684_v40  ;;  %3482 = vmatpush3.bf16.msra.mxu1 %v4404_v45  ;;  %3469 = vmatprep.mubr.msk.bf16.mxu1 %vm1626_vm2, %v1597_v41  ;;  %v3214_v0 = vadd.f32 -0.6931472, %v1569_v36  ;;  %v3215_v23 = vadd.f32 -0.6931472, %v1570_v12  ;;  %v3820_v53 = vpop.eup %3819 }
 0x292   : > { %v5625_v1 = vmax.f32 %v4442_v16, 0.0  ;;  %v1542_v6 = vadd.f32 1.0, %v1541_v34  ;;  %3483 = vmatprep.subr.bf16.mxu1 %v3726_v24  ;;  %v3216_v50 = vadd.f32 -0.6931472, %v1571_v22  ;;  %v5626_v21 = vmax.f32 %v4458_v30, 0.0  ;;  %v3729_v43 = vld [vmem:[#allocation2 + $0x18] sm:$0xff]  }
 0x293   : > { %v1533_v39 = vadd.f32 1.0, %v1532_v7  ;;  %v1544_v58 = vand.u32 2147483647, %v4641_v42  ;;  %v1559_v45 = vadd.f32 %v1519_v13, %v1303_v54  ;;  %v1540_v57 = vmul.f32 0.6931472, %v3816_v49  ;;  %v5631_v37 = vld [vmem:[#allocation14_spill] sm:$0xff] }
 0x294   : > { %v1557_v60 = vadd.f32 %v1501_v61, %v5625_v1  ;;  %v1558_v55 = vadd.f32 %v1510_v8, %v5626_v21  ;;  %v1522_v52 = vmul.f32 0.6931472, %v3820_v53  ;;  %v1525_v19 = vmul.f32 %v4684_v40, %v1524_v9  ;;  %v3730_v34 = vld [vmem:[#allocation2 + $0x10] sm:$0xff]   ;;  %v3731_v61 = vld [vmem:[#allocation2 + $0x8] sm:$0xff]   ;;  %v3733_v32 = vld [vmem:[%s5632_s22] sm:$0xff]  }
 0x295   : > { %v1535_v48 = vand.u32 2147483647, %v4615_v15  ;;  %v1304_v11 = vmax.f32 %v5627_v59, 0.0  ;;  %vm1527_vm13 = vcmp.lt.f32.partialorder %v1526_v14, 0.0004427343  ;;  %3484 = vmatpush3.bf16.msra.mxu1 %v3726_v24  ;;  %v1599_v5 = vpack.c.bf16 %v3217_v46, %v3216_v50  ;;  %v3732_v8 = vld [vmem:[#allocation2] sm:$0xff]  }
 0x296   : > { %v1531_v33 = vmul.f32 0.6931472, %v3818_v26  ;;  %v1543_v31 = vmul.f32 %v4641_v42, %v1542_v6  ;;  %v1528_v29 = vsel %vm1527_vm13, %v1525_v19, %v1522_v52  ;;  %v1598_v25 = vpack.c.bf16 %v3215_v23, %v3214_v0  ;;  %3485 = vmatprep.subr.bf16.mxu1 %v3727_v2  ;;  %v3735_v9 = vld [vmem:[%s5632_s22 + $0x10] sm:$0xff]   ;;  %v3736_v49 = vld [vmem:[%s5632_s22 + $0x18] sm:$0xff]   ;;  %v3737_v46 = vld [vmem:[%s5632_s22 + $0x20] sm:$0xff]  }
 0x297   : > { %v1574_v47 = vsel %vm1318_vm7, %v4458_v30, %v1558_v55  ;;  %vm1319_vm14 = vcmp.ne.f32.partialorder %v4469_v56, %v4469_v56  ;;  %vm4824_vm15 = vcmp.lt.f32.partialorder %v1544_v58, 0.0004427343  ;;  %v1560_v44 = vadd.f32 %v1528_v29, %v1304_v11  ;;  %v3738_v54 = vld [vmem:[%s5632_s22 + $0x28] sm:$0xff]   ;;  %v3739_v13 = vld [vmem:[%s5632_s22 + $0x30] sm:$0xff]   ;;  %v3740_v14 = vld [vmem:[%s5632_s22 + $0x38] sm:$0xff]  }
 0x298   : > { %v1534_v38 = vmul.f32 %v4615_v15, %v1533_v39  ;;  %v1575_v42 = vsel %vm1319_vm14, %v4469_v56, %v1559_v45  ;;  %v1546_v28 = vsel %vm4824_vm15, %v1543_v31, %v1540_v57  ;;  %vm1320_vm0 = vcmp.ne.f32.partialorder %v5627_v59, %v5627_v59  ;;  %3470 = vmatmul.mubr.msk.bf16.gmra.mxu1 %vm1626_vm2, %v1598_v25  ;;  %v3741_v26 = vld [vmem:[%s4157_s2] sm:$0xff]   ;;  %v3745_v0 = vld [vmem:[%s4157_s2 + $0x30] sm:$0xff]  }
 0x299   : > { %v1573_v30 = vsel %vm1317_vm11, %v4442_v16, %v1557_v60  ;;  %vm1536_vm1 = vcmp.lt.f32.partialorder %v1535_v48, 0.0004427343  ;;  %v1306_v63 = vmax.f32 %v5630_v35, 0.0  ;;  %v1576_v15 = vsel %vm1320_vm0, %v5627_v59, %v1560_v44  ;;  %3486 = vmatpush3.bf16.msra.mxu1 %v3727_v2  ;;  %3473 = vmatprep.mubr.msk.bf16.mxu1 %vm1626_vm2, %v1599_v5  ;;  %v4889_v29 = vld [vmem:[%s724_s29] ss:$0 sm:$0xff] }
 0x29a   : > { %v3219_v56 = vadd.f32 -0.6931472, %v1574_v47  ;;  %v1537_v18 = vsel %vm1536_vm1, %v1534_v38, %v1531_v33  ;;  %v3221_v10 = vadd.f32 -0.6931472, %v1576_v15  ;;  %3487 = vmatprep.subr.bf16.mxu1 %v3728_v62  ;;  %v1305_v4 = vmax.f32 %v5631_v37, 0.0  ;;  %3529 = vmatprep.mubr.bf16.mxu0 %v3741_v26 }
 0x29b   : > { %v3220_v27 = vadd.f32 -0.6931472, %v1575_v42  ;;  %v1562_v17 = vadd.f32 %v1546_v28, %v1306_v63  ;;  %v3218_v41 = vadd.f32 -0.6931472, %v1573_v30  ;;  %vm1322_vm3 = vcmp.ne.f32.partialorder %v5630_v35, %v5630_v35 }
 0x29c   : > { %v1561_v36 = vadd.f32 %v1537_v18, %v1305_v4  ;;  %vm1321_vm4 = vcmp.ne.f32.partialorder %v5631_v37, %v5631_v37 }
 0x29d   : > { %3488 = vmatpush3.bf16.msra.mxu1 %v3728_v62  ;;  %v1601_v16 = vpack.c.bf16 %v3221_v10, %v3220_v27  ;;  %v1600_v20 = vpack.c.bf16 %v3219_v56, %v3218_v41  ;;  %v1578_v51 = vsel %vm1322_vm3, %v5630_v35, %v1562_v17 }
 0x29e   : > { %3489 = vmatprep.subr.bf16.mxu1 %v3729_v43  ;;  %v1577_v24 = vsel %vm1321_vm4, %v5631_v37, %v1561_v36  ;;  %v3223_v12 = vadd.f32 -0.6931472, %v1578_v51 }
 0x29f   : > { %v3222_v7 = vadd.f32 -0.6931472, %v1577_v24 }
 0x2a0   : > { %3474 = vmatmul.mubr.msk.bf16.gmra.mxu1 %vm1626_vm2, %v1600_v20 }
 0x2a1   : > { %3490 = vmatpush3.bf16.msra.mxu1 %v3729_v43  ;;  %3477 = vmatprep.mubr.msk.bf16.mxu1 %vm1626_vm2, %v1601_v16  ;;  %v1602_v22 = vpack.c.bf16 %v3223_v12, %v3222_v7 }
 0x2a2   : > { %3491 = vmatprep.subr.bf16.mxu1 %v3730_v34 }
 0x2a5   : > { %3492 = vmatpush3.bf16.msra.mxu1 %v3730_v34 }
 0x2a6   : > { %3493 = vmatprep.subr.bf16.mxu1 %v3731_v61 }
 0x2a8   : > { %3478 = vmatmul.mubr.msk.bf16.gmra.mxu1 %vm1626_vm2, %v1602_v22 }
 0x2a9   : > { %3494 = vmatpush3.bf16.msra.mxu1 %v3731_v61  ;;  %3497 = vmatprep.mubr.bf16.mxu1 %v3733_v32 }
 0x2aa   : > { %3495 = vmatprep.subr.bf16.mxu1 %v3732_v8 }
 0x2ad   : > { %3496 = vmatpush3.bf16.msra.mxu1 %v3732_v8 }
 0x2b0   : > { %3498 = vmatmul.mubr.bf16.vlgmr.msra.gmra.mxu1 %v3734_v3 }
 0x2b1   : > { %3501 = vmatprep.mubr.bf16.mxu1 %v3735_v9 }
 0x2b8   : > { %3502 = vmatmul.mubr.bf16.gmra.mxu1 %v3736_v49 }
 0x2b9   : > { %3505 = vmatprep.mubr.bf16.mxu1 %v3737_v46 }
 0x2c0   : > { %3506 = vmatmul.mubr.bf16.gmra.mxu1 %v3738_v54 }
 0x2c1   : > { %3509 = vmatprep.mubr.bf16.mxu1 %v3739_v13 }
 0x2c8   : > { %3510 = vmatmul.mubr.bf16.gmra.mxu1 %v3740_v14 }
 0x2c9   : > { %3541 = vmatprep.mubr.bf16.mxu1 %v3745_v0 }
 0x2f4   : > { %v4864_v53 = vpop.permute.xlu0 %3667 }
 0x2f5   : > { %v4868_v21 = vpop.permute.xlu1 %3678  ;;  %v3670_v3 = vunpack.i.h.bf16 %v4864_v53  ;;  %v3669_v9 = vunpack.i.l.bf16 %v4864_v53 }
 0x2f8   : > { %v4874_v58 = vpop.permute.xlu0 %3672 }
 0x2f9   : > { %v4876_v57 = vpop.permute.xlu1 %3683  ;;  %v3675_v13 = vunpack.i.h.bf16 %v4874_v58  ;;  %v3674_v14 = vunpack.i.l.bf16 %v4874_v58 }
 0x2fc   : > { %v4880_v48 = vpop.permute.xlu0 %3688 }
 0x2fd   : > { %v4882_v11 = vpop.permute.xlu1 %3693 }
 0x300   : > { %v3699_v31 = vpop.permute.xlu0 %3698 }
 0x301   : > { %v3701_v40 = vunpack.i.h.bf16 %v3699_v31  ;;  %v3700_v44 = vunpack.i.l.bf16 %v3699_v31 }
 0x305   : > { %v3704_v62 = vpop.permute.xlu1 %3703 }
 0x306   : > { %v3706_v35 = vunpack.i.h.bf16 %v3704_v62  ;;  %v3705_v63 = vunpack.i.l.bf16 %v3704_v62 }
 0x350   : > { %v3467_v23 = vpop.f32.mrf.mxu1 }
 0x351   : > { %v1694_v38 = vadd.f32 %v3467_v23, %v4889_v29 }
 0x352   : > { %v1685_v1 = vpop.f32.mrf.mxu1 }
 0x353   : > { %v1686_v30 = vadd.f32 %v4889_v29, %v1685_v1  ;;  %v1830_v18 = vmul.f32 %v3700_v44, %v1694_v38  ;;  %v3681_v1 = vunpack.i.h.bf16 %v4868_v21 }
 0x354   : > { %v3468_v60 = vpop.f32.mrf.mxu1 }
 0x355   : > { %v1697_v42 = vadd.f32 %v3468_v60, %v4889_v29  ;;  %v1828_v4 = vmul.f32 %v3705_v63, %v1686_v30 }
 0x356   : > { %v1688_v6 = vpop.f32.mrf.mxu1 }
 0x357   : > { %v1689_v15 = vadd.f32 %v4889_v29, %v1688_v6  ;;  %v1831_v10 = vmul.f32 %v3701_v40, %v1697_v42 }
 0x358   : > { %v4862_v2 = vpop.f32.mrf.mxu1 }
 0x359   : > { %v1829_v17 = vmul.f32 %v3706_v35, %v1689_v15 }
 0x35a   : > { %v4866_v50 = vpop.f32.mrf.mxu1 }
 0x35c   : > { %v4870_v55 = vpop.f32.mrf.mxu1 }
 0x35e   : > { %v4872_v39 = vpop.f32.mrf.mxu1 }
 0x360   : > { %v3475_v45 = vpop.f32.mrf.mxu1 }
 0x361   : > { %v1726_v31 = vadd.f32 %v3475_v45, %v4889_v29 }
 0x362   : > { %v4878_v52 = vpop.f32.mrf.mxu1 }
 0x363   : > { %v1718_v35 = vadd.f32 %v4889_v29, %v4878_v52  ;;  %v3690_v52 = vunpack.i.l.bf16 %v4880_v48 }
 0x364   : > { %v3476_v19 = vpop.f32.mrf.mxu1 }
 0x365   : > { %v1729_v60 = vadd.f32 %v3476_v19, %v4889_v29 }
 0x366   : > { %v1720_v59 = vpop.f32.mrf.mxu1 }
 0x367   : > { %v1839_v42 = vmul.f32 %v3681_v1, %v1729_v60  ;;  %v2108_v60 = vld [vmem:[#allocation3 + $0x78] sm:$0xff] }
 0x368   : > { %v3479_v5 = vpop.f32.mrf.mxu1 }
 0x369   : > { %v1742_v49 = vadd.f32 %v3479_v5, %v4889_v29  ;;  %v3680_v5 = vunpack.i.l.bf16 %v4868_v21  ;;  %v3685_v21 = vunpack.i.l.bf16 %v4876_v57 }
 0x36a   : > { %v1733_v33 = vpop.f32.mrf.mxu1 }
 0x36b   : > { %v1734_v26 = vadd.f32 %v4889_v29, %v1733_v33  ;;  %v1842_v6 = vmul.f32 %v3669_v9, %v1742_v49  ;;  %v3686_v33 = vunpack.i.h.bf16 %v4876_v57  ;;  %v1838_v45 = vmul.f32 %v3680_v5, %v1726_v31  ;;  %v3748_v9 = vld [vmem:[%s4157_s2 + $0x28] sm:$0xff]   ;;  %v2107_v49 = vld [vmem:[#allocation3 + $0x70] sm:$0xff] }
 0x36c   : > { %v3480_v25 = vpop.f32.mrf.mxu1  ;;  %v1710_v57 = vadd.f32 %v4862_v2, %v4889_v29  ;;  %v2094_v31 = vld [vmem:[#allocation3 + $0x8] sm:$0xff] }
 0x36d   : > { %v1745_v46 = vadd.f32 %v3480_v25, %v4889_v29  ;;  %v1840_v40 = vmul.f32 %v3674_v14, %v1734_v26  ;;  %v2105_v14 = vld [vmem:[#allocation3 + $0x60] sm:$0xff] }
 0x36e   : > { %v1736_v47 = vpop.f32.mrf.mxu1  ;;  %v1834_v2 = vmul.f32 %v3690_v52, %v1710_v57  ;;  %v2101_v57 = vld [vmem:[#allocation3 + $0x40] sm:$0xff] }
 0x36f   : > { %v1737_v0 = vadd.f32 %v4889_v29, %v1736_v47  ;;  %v1843_v53 = vmul.f32 %v3670_v3, %v1745_v46  ;;  %v1721_v47 = vadd.f32 %v4889_v29, %v1720_v59  ;;  %v1713_v59 = vadd.f32 %v4870_v55, %v4889_v29 }
 0x370   : > { %v3499_v28 = vpop.f32.mrf.mxu1 }
 0x371   : > { %v2071_v37 = vmul.f32 %v3499_v28, %v1830_v18  ;;  %v1841_v58 = vmul.f32 %v3675_v13, %v1737_v0 }
 0x372   : > { %v2006_v56 = vpop.f32.mrf.mxu1 }
 0x373   : > { %v2069_v36 = vmul.f32 %v2006_v56, %v1828_v4  ;;  %v3691_v56 = vunpack.i.h.bf16 %v4880_v48  ;;  %v1702_v48 = vadd.f32 %v4889_v29, %v4866_v50 }
 0x374   : > { %v3500_v43 = vpop.f32.mrf.mxu1 }
 0x375   : > { %v2072_v27 = vmul.f32 %v3500_v43, %v1831_v10  ;;  %v1837_v10 = vmul.f32 %v3686_v33, %v1721_v47  ;;  %v1836_v43 = vmul.f32 %v3685_v21, %v1718_v35  ;;  %v1835_v55 = vmul.f32 %v3691_v56, %v1713_v59  ;;  %v2099_v33 = vld [vmem:[#allocation3 + $0x30] sm:$0xff]  ;;  %v2100_v21 = vld [vmem:[#allocation3 + $0x38] sm:$0xff] }
 0x376   : > { %v2009_v41 = vpop.f32.mrf.mxu1 }
 0x377   : > { %v4895_v16 = vpack.c.bf16 %v2072_v27, %v2071_v37  ;;  %v2070_v20 = vmul.f32 %v2009_v41, %v1829_v17  ;;  %v3696_v27 = vunpack.i.h.bf16 %v4882_v11  ;;  %v1705_v17 = vadd.f32 %v4889_v29, %v4872_v39  ;;  %v3742_v29 = vld [vmem:[%s4157_s2 + $0x8] sm:$0xff]  }
 0x378   : > { %v4897_v34 = vpop.f32.mrf.mxu1 }
 0x379   : > { %v4899_v51 = vpack.c.bf16 %v2070_v20, %v2069_v36  ;;  %v3695_v36 = vunpack.i.l.bf16 %v4882_v11 }
 0x37a   : > { %v4901_v24 = vpop.f32.mrf.mxu1 }
 0x37b   : > { %v1832_v39 = vmul.f32 %v3695_v36, %v1702_v48 }
 0x37c   : > { %v4903_v12 = vpop.f32.mrf.mxu1 }
 0x37d   : > { %v2076_v20 = vmul.f32 %v4903_v12, %v1835_v55  ;;  %v2073_v11 = vmul.f32 %v4901_v24, %v1832_v39  ;;  %v3743_v24 = vld [vmem:[%s4157_s2 + $0x10] sm:$0xff]   ;;  %v3744_v12 = vld [vmem:[%s4157_s2 + $0x18] sm:$0xff]   ;;  %v2102_v55 = vld [vmem:[#allocation3 + $0x48] sm:$0xff] }
 0x37e   : > { %v4905_v61 = vpop.f32.mrf.mxu1 }
 0x380   : > { %v3507_v7 = vpop.f32.mrf.mxu1 }
 0x381   : > { %v2079_v18 = vmul.f32 %v3507_v7, %v1838_v45 }
 0x382   : > { %v2038_v32 = vpop.f32.mrf.mxu1 }
 0x383   : > { %v2077_v41 = vmul.f32 %v2038_v32, %v1836_v43 }
 0x384   : > { %v3508_v22 = vpop.f32.mrf.mxu1 }
 0x385   : > { %v2080_v63 = vmul.f32 %v3508_v22, %v1839_v42  ;;  %v2075_v22 = vmul.f32 %v4897_v34, %v1834_v2  ;;  %v3746_v34 = vld [vmem:[%s4157_s2 + $0x38] sm:$0xff]  }
 0x386   : > { %v2041_v8 = vpop.f32.mrf.mxu1 }
 0x387   : > { %v2090_v37 = vpack.c.bf16 %v2080_v63, %v2079_v18  ;;  %v2078_v4 = vmul.f32 %v2041_v8, %v1837_v10  ;;  %v1833_v8 = vmul.f32 %v3696_v27, %v1705_v17  ;;  %v2088_v32 = vpack.c.bf16 %v2076_v20, %v2075_v22  ;;  %v2103_v18 = vld [vmem:[#allocation3 + $0x50] sm:$0xff] }
 0x388   : > { %v3511_v54 = vpop.f32.mrf.mxu1 }
 0x389   : > { %v2083_v62 = vmul.f32 %v3511_v54, %v1842_v6  ;;  %v2089_v7 = vpack.c.bf16 %v2078_v4, %v2077_v41  ;;  %v2074_v3 = vmul.f32 %v4905_v61, %v1833_v8  ;;  %v3747_v61 = vld [vmem:[%s4157_s2 + $0x20] sm:$0xff]   ;;  %v2104_v4 = vld [vmem:[#allocation3 + $0x58] sm:$0xff] }
 0x38a   : > { %v2054_v23 = vpop.f32.mrf.mxu1  ;;  %v2093_v54 = vld [vmem:[#allocation3] sm:$0xff] }
 0x38b   : > { %v2081_v28 = vmul.f32 %v2054_v23, %v1840_v40  ;;  %v2087_v50 = vpack.c.bf16 %v2074_v3, %v2073_v11 }
 0x38c   : > { %v3512_v25 = vpop.f32.mrf.mxu1 }
 0x38d   : > { %v2084_v44 = vmul.f32 %v3512_v25, %v1843_v53 }
 0x38e   : > { %v2057_v38 = vpop.f32.mrf.mxu1 }
 0x38f   : > { %v2092_v30 = vpack.c.bf16 %v2084_v44, %v2083_v62  ;;  %v2082_v19 = vmul.f32 %v2057_v38, %v1841_v58  ;;  %v2106_v62 = vld [vmem:[#allocation3 + $0x68] sm:$0xff] }
 0x391   : > { %v2091_v15 = vpack.c.bf16 %v2082_v19, %v2081_v28  ;;  %3513 = vmatprep.subr.bf16.mxu0 %v2092_v30  ;;  %3589 = vmatprep.subr.bf16.mxu1 %v2092_v30 }
 0x392   : > { %3514 = vmatpush3.bf16.msra.mxu0 %v2092_v30  ;;  %3597 = vmatpush3.bf16.msra.mxu1 %v2092_v30  ;;  %v2097_v30 = vld [vmem:[#allocation3 + $0x20] sm:$0xff] }
 0x393   : > { %3515 = vmatprep.subr.bf16.mxu0 %v2091_v15  ;;  %3590 = vmatprep.subr.bf16.mxu1 %v2091_v15 }
 0x396   : > { %3516 = vmatpush3.bf16.msra.mxu0 %v2091_v15  ;;  %3598 = vmatpush3.bf16.msra.mxu1 %v2091_v15  ;;  %v2098_v15 = vld [vmem:[#allocation3 + $0x28] sm:$0xff] }
 0x397   : > { %3517 = vmatprep.subr.bf16.mxu0 %v2090_v37  ;;  %3591 = vmatprep.subr.bf16.mxu1 %v2090_v37 }
 0x39a   : > { %3518 = vmatpush3.bf16.msra.mxu0 %v2090_v37  ;;  %3599 = vmatpush3.bf16.msra.mxu1 %v2090_v37 }
 0x39b   : > { %3519 = vmatprep.subr.bf16.mxu0 %v2089_v7  ;;  %3592 = vmatprep.subr.bf16.mxu1 %v2089_v7 }
 0x39e   : > { %3520 = vmatpush3.bf16.msra.mxu0 %v2089_v7  ;;  %3600 = vmatpush3.bf16.msra.mxu1 %v2089_v7 }
 0x39f   : > { %3521 = vmatprep.subr.bf16.mxu0 %v2088_v32  ;;  %3593 = vmatprep.subr.bf16.mxu1 %v2088_v32 }
 0x3a2   : > { %3522 = vmatpush3.bf16.msra.mxu0 %v2088_v32  ;;  %3601 = vmatpush3.bf16.msra.mxu1 %v2088_v32 }
 0x3a3   : > { %3523 = vmatprep.subr.bf16.mxu0 %v2087_v50  ;;  %3594 = vmatprep.subr.bf16.mxu1 %v2087_v50 }
 0x3a6   : > { %3524 = vmatpush3.bf16.msra.mxu0 %v2087_v50  ;;  %3602 = vmatpush3.bf16.msra.mxu1 %v2087_v50 }
 0x3a7   : > { %3525 = vmatprep.subr.bf16.mxu0 %v4895_v16  ;;  %3595 = vmatprep.subr.bf16.mxu1 %v4895_v16 }
 0x3aa   : > { %3526 = vmatpush3.bf16.msra.mxu0 %v4895_v16  ;;  %3603 = vmatpush3.bf16.msra.mxu1 %v4895_v16  ;;  %v2095_v16 = vld [vmem:[#allocation3 + $0x10] sm:$0xff] }
 0x3ab   : > { %3527 = vmatprep.subr.bf16.mxu0 %v4899_v51  ;;  %3596 = vmatprep.subr.bf16.mxu1 %v4899_v51 }
 0x3ae   : > { %3528 = vmatpush3.bf16.msra.mxu0 %v4899_v51  ;;  %3604 = vmatpush3.bf16.msra.mxu1 %v4899_v51  ;;  %v2096_v51 = vld [vmem:[#allocation3 + $0x18] sm:$0xff] }
 0x3b1   : > { %3530 = vmatmul.mubr.bf16.vlgmr.msra.gmra.mxu0 %v3742_v29  ;;  %3542 = vmatmul.mubr.bf16.vlgmr.msra.gmra.mxu1 %v3746_v34 }
 0x3b2   : > { %3533 = vmatprep.mubr.bf16.mxu0 %v3743_v24 }
 0x3b9   : > { %3534 = vmatmul.mubr.bf16.gmra.mxu0 %v3744_v12 }
 0x3ba   : > { %3537 = vmatprep.mubr.bf16.mxu0 %v3747_v61 }
 0x3c1   : > { %3538 = vmatmul.mubr.bf16.gmra.mxu0 %v3748_v9 }
 0x471   : > { %v3531_v46 = vpop.f32.mrf.mxu0  ;;  %v3543_v13 = vpop.f32.mrf.mxu1 }
 0x472   : > { %v2272_v26 = vadd.f32 %v3531_v46, %v2095_v16  ;;  %v2284_v0 = vadd.f32 %v3543_v13, %v2107_v49 }
 0x473   : > { %v2207_v23 = vpop.f32.mrf.mxu0  ;;  %v2255_v1 = vpop.f32.mrf.mxu1 }
 0x474   : > { %2288 = vst.msk [vmem:[#allocation3 + $0x10] sm:$0xff] %vm1626_vm2, %v2272_v26  ;;  %v2270_v6 = vadd.f32 %v2207_v23, %v2093_v54  ;;  %2300 = vst.msk [vmem:[#allocation3 + $0x70] sm:$0xff] %vm1626_vm2, %v2284_v0  ;;  %v2282_v53 = vadd.f32 %v2255_v1, %v2105_v14 }
 0x475   : > { %v3532_v5 = vpop.f32.mrf.mxu0  ;;  %v3544_v25 = vpop.f32.mrf.mxu1 }
 0x476   : > { %2286 = vst.msk [vmem:[#allocation3] sm:$0xff] %vm1626_vm2, %v2270_v6  ;;  %v2273_v40 = vadd.f32 %v3532_v5, %v2096_v51  ;;  %2298 = vst.msk [vmem:[#allocation3 + $0x60] sm:$0xff] %vm1626_vm2, %v2282_v53  ;;  %v2285_v44 = vadd.f32 %v3544_v25, %v2108_v60 }
 0x477   : > { %v2210_v58 = vpop.f32.mrf.mxu0  ;;  %v2258_v47 = vpop.f32.mrf.mxu1 }
 0x478   : > { %2289 = vst.msk [vmem:[#allocation3 + $0x18] sm:$0xff] %vm1626_vm2, %v2273_v40  ;;  %v2271_v38 = vadd.f32 %v2210_v58, %v2094_v31  ;;  %2301 = vst.msk [vmem:[#allocation3 + $0x78] sm:$0xff] %vm1626_vm2, %v2285_v44  ;;  %v2283_v42 = vadd.f32 %v2258_v47, %v2106_v62 }
 0x479   : > { %v3535_v28 = vpop.f32.mrf.mxu0 }
 0x47a   : > { %2287 = vst.msk [vmem:[#allocation3 + $0x8] sm:$0xff] %vm1626_vm2, %v2271_v38  ;;  %v2276_v19 = vadd.f32 %v3535_v28, %v2099_v33  ;;  %2299 = vst.msk [vmem:[#allocation3 + $0x68] sm:$0xff] %vm1626_vm2, %v2283_v42 }
 0x47b   : > { %v2223_v35 = vpop.f32.mrf.mxu0 }
 0x47c   : > { %2292 = vst.msk [vmem:[#allocation3 + $0x30] sm:$0xff] %vm1626_vm2, %v2276_v19  ;;  %v2274_v45 = vadd.f32 %v2223_v35, %v2097_v30 }
 0x47d   : > { %v3536_v63 = vpop.f32.mrf.mxu0 }
 0x47e   : > { %2290 = vst.msk [vmem:[#allocation3 + $0x20] sm:$0xff] %vm1626_vm2, %v2274_v45  ;;  %v2277_v56 = vadd.f32 %v3536_v63, %v2100_v21 }
 0x47f   : > { %v2226_v59 = vpop.f32.mrf.mxu0 }
 0x480   : > { %2293 = vst.msk [vmem:[#allocation3 + $0x38] sm:$0xff] %vm1626_vm2, %v2277_v56  ;;  %v2275_v10 = vadd.f32 %v2226_v59, %v2098_v15 }
 0x481   : > { %v3539_v52 = vpop.f32.mrf.mxu0 }
 0x482   : > { %2291 = vst.msk [vmem:[#allocation3 + $0x28] sm:$0xff] %vm1626_vm2, %v2275_v10  ;;  %v2280_v43 = vadd.f32 %v3539_v52, %v2103_v18 }
 0x483   : > { %v2239_v37 = vpop.f32.mrf.mxu0 }
 0x484   : > { %2296 = vst.msk [vmem:[#allocation3 + $0x50] sm:$0xff] %vm1626_vm2, %v2280_v43  ;;  %v2278_v27 = vadd.f32 %v2239_v37, %v2101_v57 }
 0x485   : > { %v3540_v17 = vpop.f32.mrf.mxu0 }
 0x486   : > { %2294 = vst.msk [vmem:[#allocation3 + $0x40] sm:$0xff] %vm1626_vm2, %v2278_v27  ;;  %v2281_v41 = vadd.f32 %v3540_v17, %v2104_v4  ;;  %2305 = sbr.rel (%p3259_p2) target bundleno = 1668 (0x684), region = 125 }
 0x487   : > { %v2242_v36 = vpop.f32.mrf.mxu0 }
 0x488   : > { %2297 = vst.msk [vmem:[#allocation3 + $0x58] sm:$0xff] %vm1626_vm2, %v2281_v41  ;;  %v2279_v48 = vadd.f32 %v2242_v36, %v2102_v55 }
 0x48a   : > { %2295 = vst.msk [vmem:[#allocation3 + $0x48] sm:$0xff] %vm1626_vm2, %v2279_v48 }
 0x48b   : > { %v3821_v2 = vld [vmem:[%s4139_s3 + $0x8] sm:$0xff]   ;;  %v3822_v20 = vld [vmem:[%s4139_s3] sm:$0xff]   ;;  %v2308_v39 = vld [vmem:[#allocation3 + $0x10] sm:$0xff] }
 0x48c   : > { %3545 = vmatprep.subr.bf16.mxu0 %v3821_v2  ;;  %v2306_v7 = vld [vmem:[#allocation3] sm:$0xff]  ;;  %v2307_v22 = vld [vmem:[#allocation3 + $0x8] sm:$0xff]  ;;  %v2309_v32 = vld [vmem:[#allocation3 + $0x18] sm:$0xff] }
 0x48d   : > { %3546 = vmatpush3.bf16.msra.mxu0 %v3821_v2  ;;  %v2322_v8 = vpack.c.bf16 %v2307_v22, %v2306_v7  ;;  %v2310_v3 = vld [vmem:[#allocation3 + $0x20] sm:$0xff]  ;;  %v2311_v11 = vld [vmem:[#allocation3 + $0x28] sm:$0xff]  ;;  %v2323_v50 = vpack.c.bf16 %v2309_v32, %v2308_v39  ;;  %v2312_v34 = vld [vmem:[#allocation3 + $0x30] sm:$0xff] }
 0x48e   : > { %3547 = vmatprep.subr.bf16.mxu0 %v3822_v20  ;;  %v2324_v29 = vpack.c.bf16 %v2311_v11, %v2310_v3  ;;  %v2313_v24 = vld [vmem:[#allocation3 + $0x38] sm:$0xff]  ;;  %v2314_v12 = vld [vmem:[#allocation3 + $0x40] sm:$0xff]  ;;  %v2316_v49 = vld [vmem:[#allocation3 + $0x50] sm:$0xff] }
 0x48f   : > { %3549 = vmatprep.mubr.msk.bf16.mxu0 %vm1626_vm2, %v2322_v8  ;;  %v2325_v9 = vpack.c.bf16 %v2313_v24, %v2312_v34  ;;  %v2317_v46 = vld [vmem:[#allocation3 + $0x58] sm:$0xff]  ;;  %v2318_v54 = vld [vmem:[#allocation3 + $0x60] sm:$0xff]  ;;  %v2319_v13 = vld [vmem:[#allocation3 + $0x68] sm:$0xff] }
 0x490   : > { %v2327_v14 = vpack.c.bf16 %v2317_v46, %v2316_v49  ;;  %v2328_v26 = vpack.c.bf16 %v2319_v13, %v2318_v54  ;;  %v2320_v0 = vld [vmem:[#allocation3 + $0x70] sm:$0xff]  ;;  %v2321_v23 = vld [vmem:[#allocation3 + $0x78] sm:$0xff]  ;;  %v3823_v1 = vld [vmem:[%s4148_s1 + $0x8] sm:$0xff]  }
 0x491   : > { %3548 = vmatpush3.bf16.msra.mxu0 %v3822_v20  ;;  %v2315_v61 = vld [vmem:[#allocation3 + $0x48] sm:$0xff]  ;;  %v2329_v51 = vpack.c.bf16 %v2321_v23, %v2320_v0  ;;  %3565 = vmatprep.subr.bf16.mxu1 %v3823_v1  ;;  %v3824_v60 = vld [vmem:[%s4148_s1] sm:$0xff]  }
 0x492   : > { %v2326_v16 = vpack.c.bf16 %v2315_v61, %v2314_v12  ;;  %3566 = vmatpush3.bf16.msra.mxu1 %v3823_v1  ;;  %v4988_v53 = vld [vmem:[%s732_s20] ss:$0 sm:$0xff] }
 0x493   : > { %3567 = vmatprep.subr.bf16.mxu1 %v3824_v60 }
 0x494   : > { %3550 = vmatmul.mubr.msk.bf16.vlgmr.msra.gmra.mxu0 %vm1626_vm2, %v2323_v50 }
 0x495   : > { %3553 = vmatprep.mubr.msk.bf16.mxu0 %vm1626_vm2, %v2324_v29 }
 0x496   : > { %3568 = vmatpush3.bf16.msra.mxu1 %v3824_v60 }
 0x49c   : > { %3554 = vmatmul.mubr.msk.bf16.gmra.mxu0 %vm1626_vm2, %v2325_v9 }
 0x49d   : > { %3557 = vmatprep.mubr.msk.bf16.mxu0 %vm1626_vm2, %v2326_v16 }
 0x4a4   : > { %3558 = vmatmul.mubr.msk.bf16.gmra.mxu0 %vm1626_vm2, %v2327_v14 }
 0x4a5   : > { %3561 = vmatprep.mubr.msk.bf16.mxu0 %vm1626_vm2, %v2328_v26 }
 0x4ac   : > { %3562 = vmatmul.mubr.msk.bf16.gmra.mxu0 %vm1626_vm2, %v2329_v51 }
 0x554   : > { %v3551_v6 = vpop.f32.mrf.mxu0 }
 0x555   : > { %v4991_v31 = vadd.f32 %v3551_v6, %v4988_v53 }
 0x556   : > { %v2411_v5 = vpop.f32.mrf.mxu0 }
 0x557   : > { %v2524_v40 = vand.u32 2147483647, %v4991_v31  ;;  %v5014_v57 = vadd.f32 %v4988_v53, %v2411_v5  ;;  %vm2492_vm14 = vcmp.ne.f32.partialorder %v4991_v31, %v4991_v31 }
 0x558   : > { %v3552_v25 = vpop.f32.mrf.mxu0 }
 0x559   : > { %v4995_v44 = vadd.f32 %v3552_v25, %v4988_v53  ;;  %v2540_v38 = vsub.f32 0.0, %v2524_v40  ;;  %v2522_v48 = vand.u32 2147483647, %v5014_v57  ;;  %vm2490_vm13 = vcmp.ne.f32.partialorder %v5014_v57, %v5014_v57 }
 0x55a   : > { %v2414_v62 = vpop.f32.mrf.mxu0 }
 0x55b   : > { %v2525_v42 = vand.u32 2147483647, %v4995_v44  ;;  %v2558_v45 = vmul.f32 1.442695, %v2540_v38  ;;  %v5022_v2 = vadd.f32 %v4988_v53, %v2414_v62  ;;  %v2538_v11 = vsub.f32 0.0, %v2522_v48 }
 0x55c   : > { %v3555_v58 = vpop.f32.mrf.mxu0  ;;  %vm2493_vm12 = vcmp.ne.f32.partialorder %v4995_v44, %v4995_v44 }
 0x55d   : > { %v4998_v33 = vadd.f32 %v3555_v58, %v4988_v53  ;;  %v2541_v63 = vsub.f32 0.0, %v2525_v42  ;;  %3825 = vpow2.f32 %v2558_v45  ;;  %v2523_v50 = vand.u32 2147483647, %v5022_v2 }
 0x55e   : > { %v2427_v47 = vpop.f32.mrf.mxu0  ;;  %v2554_v49 = vmul.f32 1.442695, %v2538_v11  ;;  %vm2491_vm1 = vcmp.ne.f32.partialorder %v5022_v2, %v5022_v2 }
 0x55f   : > { %v5002_v30 = vadd.f32 %v4988_v53, %v2427_v47  ;;  %v2528_v19 = vand.u32 2147483647, %v4998_v33  ;;  %v2560_v37 = vmul.f32 1.442695, %v2541_v63  ;;  %v2539_v46 = vsub.f32 0.0, %v2523_v50 }
 0x560   : > { %v3556_v28 = vpop.f32.mrf.mxu0  ;;  %v2476_v63 = vmax.f32 %v4991_v31, 0.0 }
 0x561   : > { %v5009_v15 = vadd.f32 %v3556_v28, %v4988_v53  ;;  %v2526_v59 = vand.u32 2147483647, %v5002_v30  ;;  %v2544_v10 = vsub.f32 0.0, %v2528_v19  ;;  %3827 = vpow2.f32 %v2560_v37 }
 0x562   : > { %v2430_v35 = vpop.f32.mrf.mxu0  ;;  %v2556_v51 = vmul.f32 1.442695, %v2539_v46  ;;  %v2478_v48 = vmax.f32 %v5002_v30, 0.0  ;;  %vm2494_vm15 = vcmp.ne.f32.partialorder %v5002_v30, %v5002_v30 }
 0x563   : > { %v5006_v21 = vadd.f32 %v4988_v53, %v2430_v35  ;;  %v2529_v4 = vand.u32 2147483647, %v5009_v15  ;;  %v2542_v17 = vsub.f32 0.0, %v2526_v59  ;;  %v2566_v55 = vmul.f32 1.442695, %v2544_v10 }
 0x564   : > { %v3559_v56 = vpop.f32.mrf.mxu0  ;;  %v2477_v10 = vmax.f32 %v4995_v44, 0.0 }
 0x565   : > { %v2527_v18 = vand.u32 2147483647, %v5006_v21  ;;  %v2545_v7 = vsub.f32 0.0, %v2529_v4  ;;  %v2562_v22 = vmul.f32 1.442695, %v2542_v17  ;;  %v5025_v8 = vadd.f32 %v3559_v56, %v4988_v53 }
 0x566   : > { %v2443_v52 = vpop.f32.mrf.mxu0  ;;  %3829 = vpow2.f32 %v2566_v55  ;;  %v2474_v56 = vmax.f32 %v5014_v57, 0.0  ;;  %v2475_v55 = vmax.f32 %v5022_v2, 0.0  ;;  %vm2495_vm11 = vcmp.ne.f32.partialorder %v5006_v21, %v5006_v21 }
 0x567   : > { %v2543_v43 = vsub.f32 0.0, %v2527_v18  ;;  %v5018_v41 = vadd.f32 %v4988_v53, %v2443_v52  ;;  %v2568_v34 = vmul.f32 1.442695, %v2545_v7  ;;  %v2532_v12 = vand.u32 2147483647, %v5025_v8 }
 0x568   : > { %v3560_v27 = vpop.f32.mrf.mxu0  ;;  %v2481_v7 = vmax.f32 %v5009_v15, 0.0 }
 0x569   : > { %v2564_v20 = vmul.f32 1.442695, %v2543_v43  ;;  %v2530_v3 = vand.u32 2147483647, %v5018_v41  ;;  %v5033_v29 = vadd.f32 %v3560_v27, %v4988_v53  ;;  %v2548_v0 = vsub.f32 0.0, %v2532_v12 }
 0x56a   : > { %v2446_v36 = vpop.f32.mrf.mxu0  ;;  %v5041_v26 = vpop.eup %3825 }
 0x56b   : > { %v5028_v39 = vadd.f32 %v4988_v53, %v2446_v36  ;;  %3831 = vpow2.f32 %v2564_v20  ;;  %v2546_v9 = vsub.f32 0.0, %v2530_v3  ;;  %v2533_v54 = vand.u32 2147483647, %v5033_v29 }
 0x56c   : > { %v3563_v32 = vpop.f32.mrf.mxu0  ;;  %3833 = vpow2.f32 %v2562_v22  ;;  %v2604_v60 = vadd.f32 1.0, %v5041_v26  ;;  %v2574_v25 = vmul.f32 1.442695, %v2548_v0  ;;  %v2607_v18 = vmul.f32 -0.5, %v5041_v26 }
 0x56d   : > { %v2531_v24 = vand.u32 2147483647, %v5028_v39  ;;  %3835 = vpow2.f32 %v2568_v34  ;;  %v2570_v23 = vmul.f32 1.442695, %v2546_v9  ;;  %v2549_v1 = vsub.f32 0.0, %v2533_v54 }
 0x56e   : > { %v2459_v61 = vpop.f32.mrf.mxu0  ;;  %v5045_v5 = vpop.eup %3827  ;;  %v5048_v62 = vadd.f32 %v3563_v32, %v4988_v53  ;;  %v2480_v36 = vmax.f32 %v4998_v33, 0.0  ;;  %v2479_v22 = vmax.f32 %v5006_v21, 0.0  ;;  %v2608_v11 = vadd.f32 1.0, %v2607_v18 }
 0x56f   : > { %v2547_v16 = vsub.f32 0.0, %v2531_v24  ;;  %v5039_v14 = vadd.f32 %v4988_v53, %v2459_v61  ;;  %v2576_v58 = vmul.f32 1.442695, %v2549_v1  ;;  %v2613_v38 = vadd.f32 1.0, %v5045_v5 }
 0x570   : > { %v2536_v28 = vand.u32 2147483647, %v5048_v62  ;;  %v3564_v45 = vpop.f32.mrf.mxu0  ;;  %v2616_v37 = vmul.f32 -0.5, %v5045_v5  ;;  %v2610_v50 = vand.u32 2147483647, %v5041_v26 }
 0x571   : > { %v2572_v13 = vmul.f32 1.442695, %v2547_v16  ;;  %v2534_v6 = vand.u32 2147483647, %v5039_v14  ;;  %v5069_v17 = vadd.f32 %v3564_v45, %v4988_v53  ;;  %v2619_v16 = vand.u32 2147483647, %v5045_v5 }
 0x572   : > { %v2552_v27 = vsub.f32 0.0, %v2536_v28  ;;  %v2462_v24 = vpop.f32.mrf.mxu0  ;;  %v2617_v12 = vadd.f32 1.0, %v2616_v37  ;;  %vm5097_vm5 = vcmp.lt.f32.partialorder %v2610_v50, 0.0004427343 }
 0x573   : > { %3837 = vpow2.f32 %v2572_v13  ;;  %v5050_v40 = vpop.eup %3829  ;;  %v2550_v42 = vsub.f32 0.0, %v2534_v6  ;;  %v2537_v9 = vand.u32 2147483647, %v5069_v17  ;;  %vm5112_vm6 = vcmp.lt.f32.partialorder %v2619_v16, 0.0004427343 }
 0x574   : > { %3839 = vpow2.f32 %v2554_v49  ;;  %v2640_v35 = vadd.f32 1.0, %v5050_v40  ;;  %v2582_v61 = vmul.f32 1.442695, %v2552_v27  ;;  %v2643_v0 = vmul.f32 -0.5, %v5050_v40 }
 0x575   : > { %3841 = vpow2.f32 %v2570_v23  ;;  %v2578_v52 = vmul.f32 1.442695, %v2550_v42  ;;  %v2553_v23 = vsub.f32 0.0, %v2537_v9  ;;  %v2609_v42 = vmul.f32 %v5041_v26, %v2608_v11 }
 0x576   : > { %3843 = vpow2.f32 %v2556_v51  ;;  %v5092_v51 = vadd.f32 %v4988_v53, %v2462_v24  ;;  %v5105_v28 = vmul.f32 %v5045_v5, %v2617_v12  ;;  %v2483_v53 = vmax.f32 %v5028_v39, 0.0 }
 0x577   : > { %3845 = vlog2.f32 %v2604_v60  ;;  %v2646_v45 = vand.u32 2147483647, %v5050_v40  ;;  %v2584_v18 = vmul.f32 1.442695, %v2553_v23  ;;  %v2644_v37 = vadd.f32 1.0, %v2643_v0 }
 0x578   : > { %v5052_v47 = vpop.eup %3831  ;;  %3847 = vpow2.f32 %v2574_v25  ;;  %v2535_v5 = vand.u32 2147483647, %v5092_v51 }
 0x579   : > { %v5056_v19 = vpop.eup %3833  ;;  %v2631_v59 = vadd.f32 1.0, %v5052_v47  ;;  %3849 = vpow2.f32 %v2576_v58  ;;  %v2634_v24 = vmul.f32 -0.5, %v5052_v47  ;;  %v2637_v16 = vand.u32 2147483647, %v5052_v47 }
 0x57a   : > { %3851 = vlog2.f32 %v2613_v38  ;;  %v5064_v43 = vpop.eup %3835  ;;  %v2622_v4 = vadd.f32 1.0, %v5056_v19  ;;  %v2625_v25 = vmul.f32 -0.5, %v5056_v19  ;;  %v2628_v26 = vand.u32 2147483647, %v5056_v19 }
 0x57b   : > { %3853 = vlog2.f32 %v2640_v35  ;;  %v2649_v34 = vadd.f32 1.0, %v5064_v43  ;;  %v2652_v58 = vmul.f32 -0.5, %v5064_v43  ;;  %vm5129_vm8 = vcmp.lt.f32.partialorder %v2646_v45, 0.0004427343 }
 0x57c   : > { %3855 = vlog2.f32 %v2631_v59  ;;  %v2626_v11 = vadd.f32 1.0, %v2625_v25  ;;  %vm5140_vm9 = vcmp.lt.f32.partialorder %v2628_v26, 0.0004427343  ;;  %v2635_v46 = vadd.f32 1.0, %v2634_v24 }
 0x57d   : > { %3857 = vpow2.f32 %v2578_v52  ;;  %v2653_v50 = vadd.f32 1.0, %v2652_v58  ;;  %v2655_v58 = vand.u32 2147483647, %v5064_v43  ;;  %vm5150_vm10 = vcmp.lt.f32.partialorder %v2637_v16, 0.0004427343 }
 0x57e   : > { %3859 = vlog2.f32 %v2622_v4  ;;  %v5138_v0 = vmul.f32 %v5056_v19, %v2626_v11  ;;  %v2636_v52 = vmul.f32 %v5052_v47, %v2635_v46 }
 0x57f   : > { %3861 = vlog2.f32 %v2649_v34  ;;  %vm5169_vm7 = vcmp.lt.f32.partialorder %v2655_v58, 0.0004427343 }
 0x580   : > { %v5074_v20 = vpop.eup %3837  ;;  %3863 = vpow2.f32 %v2582_v61  ;;  %v2551_v61 = vsub.f32 0.0, %v2535_v5 }
 0x581   : > { %v5079_v3 = vpop.eup %3839  ;;  %v2667_v54 = vadd.f32 1.0, %v5074_v20  ;;  %v2673_v49 = vand.u32 2147483647, %v5074_v20 }
 0x582   : > { %v5088_v13 = vpop.eup %3841  ;;  %v2586_v1 = vadd.f32 1.0, %v5079_v3 }
 0x583   : > { %v5095_v60 = vpop.eup %3843  ;;  %v2658_v59 = vadd.f32 1.0, %v5088_v13  ;;  %3865 = vlog2.f32 %v2667_v54 }
 0x584   : > { %v3846_v38 = vpop.eup %3845  ;;  %3867 = vlog2.f32 %v2586_v1  ;;  %v2595_v9 = vadd.f32 1.0, %v5095_v60  ;;  %v5127_v1 = vmul.f32 %v5050_v40, %v2644_v37  ;;  %v5147_v37 = vmul.f32 %v5064_v43, %v2653_v50 }
 0x585   : > { %v5108_v35 = vpop.eup %3847  ;;  %v2606_v27 = vmul.f32 0.6931472, %v3846_v38  ;;  %3869 = vpow2.f32 %v2584_v18  ;;  %v2580_v18 = vmul.f32 1.442695, %v2551_v61  ;;  %v2589_v61 = vmul.f32 -0.5, %v5079_v3 }
 0x586   : > { %v5118_v4 = vpop.eup %3849  ;;  %v2676_v12 = vadd.f32 1.0, %v5108_v35  ;;  %v2679_v54 = vmul.f32 -0.5, %v5108_v35  ;;  %3871 = vlog2.f32 %v2658_v59  ;;  %v2661_v43 = vmul.f32 -0.5, %v5088_v13 }
 0x587   : > { %v3852_v34 = vpop.eup %3851  ;;  %v2685_v38 = vadd.f32 1.0, %v5118_v4  ;;  %v2612_v32 = vsel %vm5097_vm5, %v2609_v42, %v2606_v27  ;;  %3873 = vlog2.f32 %v2595_v9  ;;  %v2688_v11 = vmul.f32 -0.5, %v5118_v4 }
 0x588   : > { %v3854_v23 = vpop.eup %3853  ;;  %v2615_v59 = vmul.f32 0.6931472, %v3852_v34  ;;  %3875 = vlog2.f32 %v2676_v12  ;;  %v2680_v19 = vadd.f32 1.0, %v2679_v54  ;;  %v5157_v27 = vadd.f32 %v2612_v32, %v2476_v63 }
 0x589   : > { %v3856_v5 = vpop.eup %3855  ;;  %3877 = vpow2.f32 %v2580_v18  ;;  %v2642_v34 = vmul.f32 0.6931472, %v3854_v23  ;;  %v2664_v54 = vand.u32 2147483647, %v5088_v13  ;;  %v2670_v63 = vmul.f32 -0.5, %v5074_v20 }
 0x58a   : > { %v5144_v45 = vpop.eup %3857  ;;  %3879 = vlog2.f32 %v2685_v38  ;;  %v2621_v50 = vsel %vm5112_vm6, %v5105_v28, %v2615_v59  ;;  %v2633_v24 = vmul.f32 0.6931472, %v3856_v5  ;;  %v2590_v32 = vadd.f32 1.0, %v2589_v61 }
 0x58b   : > { %v3860_v6 = vpop.eup %3859  ;;  %v2694_v12 = vadd.f32 1.0, %v5144_v45  ;;  %v5175_v28 = vmul.f32 %v5108_v35, %v2680_v19  ;;  %v2592_v23 = vand.u32 2147483647, %v5079_v3  ;;  %v2598_v5 = vmul.f32 -0.5, %v5095_v60 }
 0x58c   : > { %v3862_v9 = vpop.eup %3861  ;;  %v2624_v16 = vmul.f32 0.6931472, %v3860_v6  ;;  %v2733_v61 = vadd.f32 %v2621_v50, %v2477_v10  ;;  %v2662_v58 = vadd.f32 1.0, %v2661_v43  ;;  %v2689_v6 = vadd.f32 1.0, %v2688_v11 }
 0x58d   : > { %v5167_v18 = vpop.eup %3863  ;;  %v2691_v26 = vand.u32 2147483647, %v5118_v4  ;;  %v2648_v46 = vsel %vm5129_vm8, %v5127_v1, %v2642_v34  ;;  %v2639_v19 = vsel %vm5150_vm10, %v2636_v52, %v2633_v24  ;;  %3881 = vlog2.f32 %v2694_v12 }
 0x58e   : > { %v2630_v1 = vsel %vm5140_vm9, %v5138_v0, %v2624_v16  ;;  %vm5203_vm0 = vcmp.lt.f32.partialorder %v2664_v54, 0.0004427343  ;;  %v2671_v42 = vadd.f32 1.0, %v2670_v63  ;;  %v2591_v11 = vmul.f32 %v5079_v3, %v2590_v32 }
 0x58f   : > { %v2712_v50 = vadd.f32 1.0, %v5167_v18  ;;  %vm2593_vm3 = vcmp.lt.f32.partialorder %v2592_v23, 0.0004427343  ;;  %v2599_v24 = vadd.f32 1.0, %v2598_v5  ;;  %v2651_v40 = vmul.f32 0.6931472, %v3862_v9 }
 0x590   : > { %v3866_v59 = vpop.eup %3865  ;;  %v2735_v0 = vadd.f32 %v2639_v19, %v2479_v22  ;;  %v2601_v54 = vand.u32 2147483647, %v5095_v60  ;;  %v5217_v3 = vadd.f32 %v2648_v46, %v2480_v36  ;;  %v2663_v63 = vmul.f32 %v5088_v13, %v2662_v58 }
 0x591   : > { %v3868_v47 = vpop.eup %3867  ;;  %v5221_v32 = vmul.f32 %v5118_v4, %v2689_v6  ;;  %v2669_v52 = vmul.f32 0.6931472, %v3866_v59  ;;  %v2734_v9 = vadd.f32 %v2630_v1, %v2478_v48  ;;  %v2672_v5 = vmul.f32 %v5074_v20, %v2671_v42 }
 0x592   : > { %v5198_v10 = vpop.eup %3869  ;;  %v2588_v43 = vmul.f32 0.6931472, %v3868_v47  ;;  %v2600_v13 = vmul.f32 %v5095_v60, %v2599_v24  ;;  %v2657_v4 = vsel %vm5169_vm7, %v5147_v37, %v2651_v40  ;;  %vm5234_vm4 = vcmp.lt.f32.partialorder %v2691_v26, 0.0004427343 }
 0x593   : > { %v2721_v34 = vadd.f32 1.0, %v5198_v10  ;;  %v3872_v12 = vpop.eup %3871  ;;  %vm5238_vm5 = vcmp.lt.f32.partialorder %v2673_v49, 0.0004427343  ;;  %vm2602_vm6 = vcmp.lt.f32.partialorder %v2601_v54, 0.0004427343  ;;  %vm2497_vm8 = vcmp.ne.f32.partialorder %v5009_v15, %v5009_v15 }
 0x594   : > { %v2594_v16 = vsel %vm2593_vm3, %v2591_v11, %v2588_v43  ;;  %v3874_v23 = vpop.eup %3873  ;;  %v2660_v19 = vmul.f32 0.6931472, %v3872_v12  ;;  %v2675_v37 = vsel %vm5238_vm5, %v2672_v5, %v2669_v52  ;;  %v2749_v49 = vsel %vm2493_vm12, %v4995_v44, %v2733_v61 }
 0x595   : > { %3883 = vlog2.f32 %v2721_v34  ;;  %v2730_v22 = vadd.f32 %v2594_v16, %v2474_v56  ;;  %v3876_v47 = vpop.eup %3875  ;;  %v2597_v36 = vmul.f32 0.6931472, %v3874_v23  ;;  %v2751_v56 = vsel %vm2495_vm11, %v5006_v21, %v2735_v0 }
 0x596   : > { %3885 = vlog2.f32 %v2712_v50  ;;  %v5229_v58 = vpop.eup %3877  ;;  %vm2498_vm9 = vcmp.ne.f32.partialorder %v5018_v41, %v5018_v41  ;;  %v2748_v6 = vsel %vm2492_vm14, %v4991_v31, %v5157_v27  ;;  %v2750_v44 = vsel %vm2494_vm15, %v5002_v30, %v2734_v9 }
 0x597   : > { %v3880_v60 = vpop.eup %3879  ;;  %v2703_v26 = vadd.f32 1.0, %v5229_v58  ;;  %v2603_v38 = vsel %vm2602_vm6, %v2600_v13, %v2597_v36  ;;  %v2746_v59 = vsel %vm2490_vm13, %v5014_v57, %v2730_v22  ;;  %vm2496_vm10 = vcmp.ne.f32.partialorder %v4998_v33, %v4998_v33 }
 0x598   : > { %v2731_v21 = vadd.f32 %v2603_v38, %v2475_v55  ;;  %v2666_v55 = vsel %vm5203_vm0, %v2663_v63, %v2660_v19  ;;  %v2697_v61 = vmul.f32 -0.5, %v5144_v45  ;;  %v3276_v57 = vadd.f32 -0.6931472, %v2751_v56  ;;  %v2936_v56 = vld [vmem:[%s5662_s25 + $0x30] sm:$0xff] }
 0x599   : > { %3887 = vlog2.f32 %v2703_v26  ;;  %v2687_v46 = vmul.f32 0.6931472, %v3880_v60  ;;  %v2739_v1 = vadd.f32 %v2675_v37, %v2483_v53  ;;  %v3274_v30 = vadd.f32 -0.6931472, %v2749_v49 }
 0x59a   : > { %v2747_v31 = vsel %vm2491_vm1, %v5022_v2, %v2731_v21  ;;  %v2737_v27 = vadd.f32 %v2657_v4, %v2481_v7  ;;  %v3271_v42 = vadd.f32 -0.6931472, %v2746_v59  ;;  %v3275_v43 = vadd.f32 -0.6931472, %v2750_v44  ;;  %v3882_v11 = vpop.eup %3881 }
 0x59b   : > { %v3272_v25 = vadd.f32 -0.6931472, %v2747_v31  ;;  %v2678_v50 = vmul.f32 0.6931472, %v3876_v47  ;;  %v5651_v34 = vmax.f32 %v5018_v41, 0.0  ;;  %v2715_v12 = vmul.f32 -0.5, %v5167_v18 }
 0x59c   : > { %v3273_v53 = vadd.f32 -0.6931472, %v2748_v6  ;;  %v2698_v40 = vadd.f32 1.0, %v2697_v61  ;;  %v2780_v16 = vpack.c.bf16 %v3276_v57, %v3275_v43  ;;  %vm2499_vm7 = vcmp.ne.f32.partialorder %v5028_v39, %v5028_v39 }
 0x59d   : > { %v2738_v24 = vadd.f32 %v2666_v55, %v5651_v34  ;;  %v2778_v0 = vpack.c.bf16 %v3272_v25, %v3271_v42  ;;  %v2700_v2 = vand.u32 2147483647, %v5144_v45  ;;  %v2724_v7 = vmul.f32 -0.5, %v5198_v10 }
 0x59e   : > { %v2779_v54 = vpack.c.bf16 %v3274_v30, %v3273_v53  ;;  %v2755_v63 = vsel %vm2499_vm7, %v5028_v39, %v2739_v1  ;;  %v2693_v52 = vsel %vm5234_vm4, %v5221_v32, %v2687_v46  ;;  %v2696_v23 = vmul.f32 0.6931472, %v3882_v11  ;;  %v2938_v30 = vld [vmem:[%s5662_s25 + $0x40] sm:$0xff] }
 0x59f   : > { %v2706_v9 = vmul.f32 -0.5, %v5229_v58  ;;  %3569 = vmatprep.mubr.msk.bf16.mxu1 %vm1626_vm2, %v2778_v0  ;;  %v2753_v5 = vsel %vm2497_vm8, %v5009_v15, %v2737_v27  ;;  %v5652_v22 = vand.u32 2147483647, %v5108_v35  ;;  %v2716_v39 = vadd.f32 1.0, %v2715_v12 }
 0x5a0   : > { %v2489_v19 = vmax.f32 %v5069_v17, 0.0  ;;  %3570 = vmatmul.mubr.msk.bf16.vlgmr.msra.gmra.mxu1 %vm1626_vm2, %v2779_v54  ;;  %v2754_v32 = vsel %vm2498_vm9, %v5018_v41, %v2738_v24  ;;  %v2699_v35 = vmul.f32 %v5144_v45, %v2698_v40  ;;  %v2752_v13 = vsel %vm2496_vm10, %v4998_v33, %v5217_v3 }
 0x5a1   : > { %vm5304_vm11 = vcmp.lt.f32.partialorder %v5652_v22, 0.0004427343  ;;  %3573 = vmatprep.mubr.msk.bf16.mxu1 %vm1626_vm2, %v2780_v16  ;;  %v3280_v4 = vadd.f32 -0.6931472, %v2755_v63  ;;  %v5655_v20 = vmax.f32 %v5033_v29, 0.0  ;;  %v2707_v26 = vadd.f32 1.0, %v2706_v9 }
 0x5a2   : > { %v3884_v36 = vpop.eup %3883  ;;  %v2684_v15 = vsel %vm5304_vm11, %v5175_v28, %v2678_v50  ;;  %vm5326_vm12 = vcmp.lt.f32.partialorder %v2700_v2, 0.0004427343  ;;  %v2725_v28 = vadd.f32 1.0, %v2724_v7  ;;  %v3278_v60 = vadd.f32 -0.6931472, %v2753_v5  ;;  %v2932_v5 = vld [vmem:[%s5662_s25 + $0x10] sm:$0xff] }
 0x5a3   : > { %v3886_v48 = vpop.eup %3885  ;;  %v2741_v41 = vadd.f32 %v2693_v52, %v5655_v20  ;;  %v2702_v45 = vsel %vm5326_vm12, %v2699_v35, %v2696_v23  ;;  %v2727_v37 = vand.u32 2147483647, %v5198_v10  ;;  %v3279_v38 = vadd.f32 -0.6931472, %v2754_v32  ;;  %v5381_v9 = vld [vmem:[%s740_s5] ss:$0 sm:$0xff] }
 0x5a4   : > { %v2723_v49 = vmul.f32 0.6931472, %v3884_v36  ;;  %v2709_v33 = vand.u32 2147483647, %v5229_v58  ;;  %v3277_v3 = vadd.f32 -0.6931472, %v2752_v13  ;;  %vm2500_vm13 = vcmp.ne.f32.partialorder %v5025_v8, %v5025_v8 }
 0x5a5   : > { %v5658_v21 = vmax.f32 %v5025_v8, 0.0  ;;  %v2714_v6 = vmul.f32 0.6931472, %v3886_v48  ;;  %v2718_v44 = vand.u32 2147483647, %v5167_v18  ;;  %v2782_v55 = vpack.c.bf16 %v3280_v4, %v3279_v38  ;;  %v2933_v36 = vld [vmem:[%s5662_s25 + $0x18] sm:$0xff] }
 0x5a6   : > { %v3888_v61 = vpop.eup %3887  ;;  %v5659_v57 = vmax.f32 %v5039_v14, 0.0  ;;  %v2726_v1 = vmul.f32 %v5198_v10, %v2725_v28  ;;  %v2781_v31 = vpack.c.bf16 %v3278_v60, %v3277_v3  ;;  %vm2501_vm14 = vcmp.ne.f32.partialorder %v5033_v29, %v5033_v29  ;;  %v2931_v4 = vld [vmem:[%s5662_s25 + $0x8] sm:$0xff] }
 0x5a7   : > { %v2740_v59 = vadd.f32 %v2684_v15, %v5658_v21  ;;  %vm5344_vm15 = vcmp.lt.f32.partialorder %v2727_v37, 0.0004427343  ;;  %v2705_v27 = vmul.f32 0.6931472, %v3888_v61  ;;  %v2708_v42 = vmul.f32 %v5229_v58, %v2707_v26  ;;  %v2934_v37 = vld [vmem:[%s5662_s25 + $0x20] sm:$0xff] }
 0x5a8   : > { %v2742_v46 = vadd.f32 %v2702_v45, %v5659_v57  ;;  %v2757_v25 = vsel %vm2501_vm14, %v5033_v29, %v2741_v41  ;;  %v2717_v43 = vmul.f32 %v5167_v18, %v2716_v39  ;;  %v2729_v11 = vsel %vm5344_vm15, %v2726_v1, %v2723_v49  ;;  %3574 = vmatmul.mubr.msk.bf16.gmra.mxu1 %vm1626_vm2, %v2781_v31  ;;  %v2940_v57 = vld [vmem:[%s5662_s25 + $0x50] sm:$0xff] }
 0x5a9   : > { %v2487_v10 = vmax.f32 %v5092_v51, 0.0  ;;  %vm2710_vm0 = vcmp.lt.f32.partialorder %v2709_v33, 0.0004427343  ;;  %vm2719_vm1 = vcmp.lt.f32.partialorder %v2718_v44, 0.0004427343  ;;  %3577 = vmatprep.mubr.msk.bf16.mxu1 %vm1626_vm2, %v2782_v55  ;;  %v2756_v58 = vsel %vm2500_vm13, %v5025_v8, %v2740_v59  ;;  %v2937_v33 = vld [vmem:[%s5662_s25 + $0x38] sm:$0xff] }
 0x5aa   : > { %v2711_v50 = vsel %vm2710_vm0, %v2708_v42, %v2705_v27  ;;  %vm2502_vm3 = vcmp.ne.f32.partialorder %v5039_v14, %v5039_v14  ;;  %v2720_v29 = vsel %vm2719_vm1, %v2717_v43, %v2714_v6  ;;  %v3282_v34 = vadd.f32 -0.6931472, %v2757_v25  ;;  %v2935_v6 = vld [vmem:[%s5662_s25 + $0x28] sm:$0xff]  ;;  %v2941_v43 = vld [vmem:[%s5662_s25 + $0x58] sm:$0xff] }
 0x5ab   : > { %v2743_v18 = vadd.f32 %v2711_v50, %v2487_v10  ;;  %v2758_v24 = vsel %vm2502_vm3, %v5039_v14, %v2742_v46  ;;  %v2488_v12 = vmax.f32 %v5048_v62, 0.0  ;;  %v2745_v53 = vadd.f32 %v2729_v11, %v2489_v19 }
 0x5ac   : > { %vm2503_vm4 = vcmp.ne.f32.partialorder %v5092_v51, %v5092_v51  ;;  %v3281_v40 = vadd.f32 -0.6931472, %v2756_v58  ;;  %v3283_v8 = vadd.f32 -0.6931472, %v2758_v24  ;;  %vm2505_vm5 = vcmp.ne.f32.partialorder %v5069_v17, %v5069_v17  ;;  %v2939_v58 = vld [vmem:[%s5662_s25 + $0x48] sm:$0xff]  ;;  %v2944_v24 = vld [vmem:[%s5662_s25 + $0x70] sm:$0xff] }
 0x5ad   : > { %v2759_v0 = vsel %vm2503_vm4, %v5092_v51, %v2743_v18  ;;  %v2744_v16 = vadd.f32 %v2720_v29, %v2488_v12  ;;  %v2761_v14 = vsel %vm2505_vm5, %v5069_v17, %v2745_v53  ;;  %vm2504_vm6 = vcmp.ne.f32.partialorder %v5048_v62, %v5048_v62 }
 0x5ae   : > { %v3284_v2 = vadd.f32 -0.6931472, %v2759_v0  ;;  %v2783_v7 = vpack.c.bf16 %v3282_v34, %v3281_v40  ;;  %v3286_v63 = vadd.f32 -0.6931472, %v2761_v14  ;;  %v2942_v0 = vld [vmem:[%s5662_s25 + $0x60] sm:$0xff] }
 0x5af   : > { %v2760_v51 = vsel %vm2504_vm6, %v5048_v62, %v2744_v16  ;;  %v2930_v62 = vld [vmem:[%s5662_s25] sm:$0xff] }
 0x5b0   : > { %v2784_v54 = vpack.c.bf16 %v3284_v2, %v3283_v8  ;;  %3578 = vmatmul.mubr.msk.bf16.gmra.mxu1 %vm1626_vm2, %v2783_v7  ;;  %v3285_v52 = vadd.f32 -0.6931472, %v2760_v51  ;;  %v2945_v7 = vld [vmem:[%s5662_s25 + $0x78] sm:$0xff] }
 0x5b2   : > { %3581 = vmatprep.mubr.msk.bf16.mxu1 %vm1626_vm2, %v2784_v54  ;;  %v2785_v23 = vpack.c.bf16 %v3286_v63, %v3285_v52  ;;  %v2943_v63 = vld [vmem:[%s5662_s25 + $0x68] sm:$0xff] }
 0x5b8   : > { %3582 = vmatmul.mubr.msk.bf16.gmra.mxu1 %vm1626_vm2, %v2785_v23 }
 0x660   : > { %v3571_v17 = vpop.f32.mrf.mxu1 }
 0x661   : > { %v2876_v22 = vadd.f32 %v3571_v17, %v5381_v9 }
 0x662   : > { %v2867_v47 = vpop.f32.mrf.mxu1 }
 0x663   : > { %v2948_v39 = vadd.f32 %v2932_v5, %v2876_v22  ;;  %v2868_v19 = vadd.f32 %v5381_v9, %v2867_v47 }
 0x664   : > { %v3572_v32 = vpop.f32.mrf.mxu1 }
 0x665   : > { %2964 = vst.msk [vmem:[%s5662_s25 + $0x10] sm:$0xff] %vm1626_vm2, %v2948_v39  ;;  %v2946_v15 = vadd.f32 %v2930_v62, %v2868_v19  ;;  %v2879_v35 = vadd.f32 %v3572_v32, %v5381_v9 }
 0x666   : > { %v2870_v13 = vpop.f32.mrf.mxu1 }
 0x667   : > { %2962 = vst.msk [vmem:[%s5662_s25] sm:$0xff] %vm1626_vm2, %v2946_v15  ;;  %v2949_v48 = vadd.f32 %v2933_v36, %v2879_v35  ;;  %v2871_v20 = vadd.f32 %v5381_v9, %v2870_v13 }
 0x668   : > { %v3575_v41 = vpop.f32.mrf.mxu1 }
 0x669   : > { %2965 = vst.msk [vmem:[%s5662_s25 + $0x18] sm:$0xff] %vm1626_vm2, %v2949_v48  ;;  %v2947_v28 = vadd.f32 %v2931_v4, %v2871_v20  ;;  %v2892_v60 = vadd.f32 %v3575_v41, %v5381_v9 }
 0x66a   : > { %v2883_v45 = vpop.f32.mrf.mxu1 }
 0x66b   : > { %2963 = vst.msk [vmem:[%s5662_s25 + $0x8] sm:$0xff] %vm1626_vm2, %v2947_v28  ;;  %v2952_v26 = vadd.f32 %v2936_v56, %v2892_v60  ;;  %v2884_v38 = vadd.f32 %v5381_v9, %v2883_v45 }
 0x66c   : > { %v3576_v49 = vpop.f32.mrf.mxu1 }
 0x66d   : > { %2968 = vst.msk [vmem:[%s5662_s25 + $0x30] sm:$0xff] %vm1626_vm2, %v2952_v26  ;;  %v2950_v3 = vadd.f32 %v2934_v37, %v2884_v38  ;;  %v2895_v21 = vadd.f32 %v3576_v49, %v5381_v9 }
 0x66e   : > { %v2886_v59 = vpop.f32.mrf.mxu1 }
 0x66f   : > { %2966 = vst.msk [vmem:[%s5662_s25 + $0x20] sm:$0xff] %vm1626_vm2, %v2950_v3  ;;  %v2953_v44 = vadd.f32 %v2937_v33, %v2895_v21  ;;  %v2887_v55 = vadd.f32 %v5381_v9, %v2886_v59 }
 0x670   : > { %v3579_v61 = vpop.f32.mrf.mxu1 }
 0x671   : > { %2969 = vst.msk [vmem:[%s5662_s25 + $0x38] sm:$0xff] %vm1626_vm2, %v2953_v44  ;;  %v2951_v46 = vadd.f32 %v2935_v6, %v2887_v55  ;;  %v2908_v1 = vadd.f32 %v3579_v61, %v5381_v9 }
 0x672   : > { %v2899_v31 = vpop.f32.mrf.mxu1 }
 0x673   : > { %2967 = vst.msk [vmem:[%s5662_s25 + $0x28] sm:$0xff] %vm1626_vm2, %v2951_v46  ;;  %v2956_v27 = vadd.f32 %v2940_v57, %v2908_v1  ;;  %v2900_v42 = vadd.f32 %v5381_v9, %v2899_v31 }
 0x674   : > { %v3580_v25 = vpop.f32.mrf.mxu1 }
 0x675   : > { %2972 = vst.msk [vmem:[%s5662_s25 + $0x50] sm:$0xff] %vm1626_vm2, %v2956_v27  ;;  %v2954_v11 = vadd.f32 %v2938_v30, %v2900_v42  ;;  %v2911_v10 = vadd.f32 %v3580_v25, %v5381_v9 }
 0x676   : > { %v2902_v50 = vpop.f32.mrf.mxu1 }
 0x677   : > { %2970 = vst.msk [vmem:[%s5662_s25 + $0x40] sm:$0xff] %vm1626_vm2, %v2954_v11  ;;  %v2957_v29 = vadd.f32 %v2941_v43, %v2911_v10  ;;  %v2903_v18 = vadd.f32 %v5381_v9, %v2902_v50 }
 0x678   : > { %v3583_v34 = vpop.f32.mrf.mxu1 }
 0x679   : > { %2973 = vst.msk [vmem:[%s5662_s25 + $0x58] sm:$0xff] %vm1626_vm2, %v2957_v29  ;;  %v2955_v12 = vadd.f32 %v2939_v58, %v2903_v18  ;;  %v2924_v53 = vadd.f32 %v3583_v34, %v5381_v9 }
 0x67a   : > { %v2915_v40 = vpop.f32.mrf.mxu1 }
 0x67b   : > { %2971 = vst.msk [vmem:[%s5662_s25 + $0x48] sm:$0xff] %vm1626_vm2, %v2955_v12  ;;  %v2960_v16 = vadd.f32 %v2944_v24, %v2924_v53  ;;  %v2916_v8 = vadd.f32 %v5381_v9, %v2915_v40 }
 0x67c   : > { %v3584_v2 = vpop.f32.mrf.mxu1 }
 0x67d   : > { %2976 = vst.msk [vmem:[%s5662_s25 + $0x70] sm:$0xff] %vm1626_vm2, %v2960_v16  ;;  %v2958_v54 = vadd.f32 %v2942_v0, %v2916_v8  ;;  %v2927_v14 = vadd.f32 %v3584_v2, %v5381_v9 }
 0x67e   : > { %v2918_v51 = vpop.f32.mrf.mxu1 }
 0x67f   : > { %2974 = vst.msk [vmem:[%s5662_s25 + $0x60] sm:$0xff] %vm1626_vm2, %v2958_v54  ;;  %v2961_v52 = vadd.f32 %v2945_v7, %v2927_v14  ;;  %v2919_v23 = vadd.f32 %v5381_v9, %v2918_v51 }
 0x681   : > { %2977 = vst.msk [vmem:[%s5662_s25 + $0x78] sm:$0xff] %vm1626_vm2, %v2961_v52  ;;  %v2959_v17 = vadd.f32 %v2943_v63, %v2919_v23 }
 0x683   : > { %2975 = vst.msk [vmem:[%s5662_s25 + $0x68] sm:$0xff] %vm1626_vm2, %v2959_v17 }
 0x684 PF: > { %s5663_s1 = sld [smem:[#allocation8_spill]] }
 0x685   : > { %s5664_s25 = sld [smem:[#allocation5_spill]] }
 0x686   : > { %s5665_s26 = sld [smem:[#allocation11_spill]] }
 0x687   : > { %s5666_s27 = sld [smem:[#allocation6_spill]] }
 0x688   : > { %s5667_s28 = sld [smem:[#allocation7_spill]] }
 0x689   : > { %s5668_s29 = sld [smem:[#allocation9_spill]] }
 0x68a   : > { %s23_s14 = sadd.s32 1, %s5663_s1   ;;  %s5669_s30 = sld [smem:[#allocation10_spill]] }
 0x68b   : > { %p20_p3 = scmp.ge.s32.totalorder %s23_s14, 11  }
 0x68d   :  { %22 = sbr.rel (!%p20_p3) target bundleno = 11 (0xb), region = 189 }

</bundles_post_ra>
